<compile_context>
chip_gen: v7x
topology: tpu7x:2x2x1
jax: 0.10.0
libtpu: 0.0.40
codegen_flags: <defaults>
</compile_context>

<pallas_src>
import math
from functools import partial

import jax
import jax.numpy as jnp
from jax import lax
from jax.experimental import pallas as pl
from jax.experimental.pallas import tpu as pltpu


def _round_up(x, m):
    return (x + m - 1) // m * m


def _cdiv(a, b):
    return -(-a // b)


def _conv_ln_gelu_kernel(x_ref, w_ref, b_ref, o_ref, *, kh, kw, t_h, w_r,
                         c_out_true, add_res, approx_gelu, fold_taps, eps):
    """One (batch, row-tile) step: conv (folded MXU matmul) + LN + GELU (+res).

    x_ref : (hp, wp, Cin)          f32 padded image of this batch element
    w_ref : (kh*kw*Cin, Cout_p)    folded conv weights (compute dtype)
    b_ref : (1, Cout_p)            conv bias (f32, zero padded)
    o_ref : (t_h*w_r, Cout_p)      output tile (lane dense)
    """
    c_in = x_ref.shape[-1]
    c_out_p = o_ref.shape[-1]
    k_dim = kh * kw * c_in
    tm = t_h * w_r
    r0 = pl.program_id(1) * t_h                 # first output row of this tile

    # --- kh*kw shifted views of the resident padded image --------------------
    # kh aligned row-slab loads (full padded width); the kw width shifts are
    # in-register slices of each slab (XLU) -> no unaligned sublane gathers.
    views = []
    for di in range(kh):
        slab = x_ref[pl.ds(r0 + di, t_h), :, :]            # (t_h, wp, Cin) f32
        for dj in range(kw):
            views.append(slab[:, dj:dj + w_r, :])          # (t_h, w_r, Cin)

    # --- Convolution ----------------------------------------------------------
    if fold_taps:
        # All taps folded into one contraction: K = kh*kw*Cin.
        a = jnp.concatenate(views, axis=-1).reshape(tm, k_dim)
        acc = jnp.dot(a.astype(w_ref.dtype), w_ref[...],
                      preferred_element_type=jnp.float32)
    else:
        # Conservative fallback: one matmul per tap, accumulated in f32.
        acc = jnp.zeros((tm, c_out_p), jnp.float32)
        for t, v in enumerate(views):
            acc = acc + jnp.dot(v.reshape(tm, c_in).astype(w_ref.dtype),
                                w_ref[t * c_in:(t + 1) * c_in, :],
                                preferred_element_type=jnp.float32)

    # Bias kept as a single exact-f32 VPU add (deliberately NOT folded into the
    # bf16 matmul so the bias is not rounded; negligible next to the removed
    # per-tap accumulates).
    acc = acc + b_ref[...]

    # --- LayerNorm over channels ----------------------------------------------
    # Padded weight columns / bias lanes are zero, so padded channels of `acc`
    # are exactly zero and the channel sum only sees the true channels.  The
    # variance uses the two-pass (centred) form for numerical stability; the
    # lane mask keeps padded lanes out of the centred sum AND zeroes them in
    # the stored output.
    inv_c = 1.0 / float(c_out_true)
    mean = jnp.sum(acc, axis=-1, keepdims=True) * inv_c
    cen = acc - mean
    if c_out_p != c_out_true:
        lane = lax.broadcasted_iota(jnp.int32, (tm, c_out_p), 1)
        cen = jnp.where(lane < c_out_true, cen, 0.0)
    var = jnp.sum(cen * cen, axis=-1, keepdims=True) * inv_c
    y = cen * lax.rsqrt(var + eps)                          # rsqrt -> EUP slot

    # --- GELU -------------------------------------------------------------------
    if approx_gelu:
        # tanh approximation: the tanh runs on the EUP (separate VLIW slot).
        c0 = math.sqrt(2.0 / math.pi)
        y = 0.5 * y * (1.0 + jnp.tanh(c0 * (y + 0.044715 * (y * y * y))))
    else:
        # exact erf GELU, matching nn.GELU() default numerics.
        y = 0.5 * y * (1.0 + lax.erf(y * (1.0 / math.sqrt(2.0))))

    # Lane-dense full store; padded output channels are exactly zero here
    # (masked before LN, GELU(0) = 0), so the wrapper crop only drops zeros.
    o_ref[...] = y.astype(o_ref.dtype)

    # --- Residual ----------------------------------------------------------------
    if add_res:
        # The residual is the centre-tap view of the resident *f32* padded image:
        # no separate (channel-inflated) residual stream from HBM, exact f32 add.
        # Only the first Cin lanes are touched; padded lanes stay zero.
        res = views[(kh // 2) * kw + (kw // 2)].reshape(tm, c_in)
        o_ref[:, :c_in] = (y[:, :c_in] + res).astype(o_ref.dtype)


def _vmem_policy(vmem_budget_bytes, vmem_limit_bytes):
    """Generation-aware VMEM policy: budget / limit derived from the real per-core
    VMEM capacity (128 MiB on v5e/v6e, 64 MiB on v7x)."""
    try:
        cap = getattr(pltpu.get_tpu_info(), "vmem_capacity_bytes", None)
    except Exception:
        cap = None
    if not cap or cap <= 0:
        cap = 64 * 1024 * 1024              # conservative fallback (v7x per-core)
    if vmem_budget_bytes is None:
        vmem_budget_bytes = int(cap * 0.70)  # ~90 MiB v5e/v6e, ~45 MiB v7x
    if vmem_limit_bytes is None:
        vmem_limit_bytes = int(cap * 0.78)   # headroom for Mosaic internal scratch
    return vmem_budget_bytes, vmem_limit_bytes


def _pick_tile_rows(H, B, ph, w_r, wp, c_in, k_dim, c_out_p, *, max_tile_rows,
                    vmem_budget, img_bufs, w_bufs):
    """Pick the row-tile height t_h.

    Non-divisor t_h is fine (the wrapper pads H up to n_t*t_h), the row cap is
    applied to t_h itself, there is no residual-stream term, and when B < 2 we
    force at least two row tiles so both TensorCores of a v7x megacore get work.
    Accounting includes Mosaic's lane padding of the image's minor (Cin) dim.
    """
    cin_v = _round_up(c_in, 128)            # VMEM lane padding of the image
    cap = max(1, min(H, max_tile_rows))
    n_t_min = 2 if (B < 2 and H >= 2) else 1

    def fits(t_h):
        n_t = _cdiv(H, t_h)
        hp = n_t * t_h + 2 * ph
        tm = t_h * w_r
        est = (img_bufs * hp * wp * cin_v * 4                 # resident f32 image
               + w_bufs * _round_up(k_dim, 8) * c_out_p * 2   # folded bf16 weights
               + 2 * 8 * c_out_p * 4                          # bias
               + 2 * tm * c_out_p * 4                         # output double buffer
               + tm * _round_up(k_dim, 128) * 6               # folded slab (f32+bf16)
               + 3 * tm * c_out_p * 4)                        # acc / LN / GELU temps
        return est <= vmem_budget

    for n_t in range(n_t_min, H + 1):
        t_h = _cdiv(H, n_t)
        if t_h > cap:
            continue
        if fits(t_h):
            return t_h
    return 1
    # TODO(synk): halo-tile the H axis of the image itself if the padded image
    # alone ever exceeds the VMEM budget (very large spatial extents).


def conv2d_layernorm(x_nchw, weight_oihw, bias, *, add_residual=True,
                     compute_dtype=jnp.bfloat16, out_dtype=jnp.float32,
                     approx_gelu=False, max_tile_rows=1024,
                     vmem_budget_bytes=None, vmem_limit_bytes=None):
    """Forward of Conv2dLayerNorm.  x_nchw: (B, Cin, H, W) float32 (NCHW).

    MXU inputs are rounded to `compute_dtype` (bfloat16 default) with f32
    accumulation; bias, LayerNorm, GELU and the residual add are exact f32.
    """
    B, Cin, H, W = x_nchw.shape
    Cout, Cin_w, kh, kw = weight_oihw.shape
    assert Cin_w == Cin, "groups != 1 not supported"   # TODO(synk): grouped conv
    assert kh % 2 == 1 and kw % 2 == 1, "padding='same' assumes odd kernel"
    ph, pw = kh // 2, kw // 2

    w_r = _round_up(W, 8)                     # sublane-friendly row width
    c_out_p = _round_up(Cout, 128)            # lane-dense output stores
    wp = _round_up(w_r + 2 * pw, 8)           # padded width, sublane aligned
    k_dim = kh * kw * Cin                     # folded contraction depth

    vmem_budget, vmem_limit = _vmem_policy(vmem_budget_bytes, vmem_limit_bytes)

    # Buffering of grid-invariant inputs: weights/bias are constant over the grid
    # (single buffer always); the padded image only changes with the batch index,
    # so single-buffer it when that buys a larger row tile.
    have_buffered = hasattr(pl, "Buffered")
    w_bufs = 1 if have_buffered else 2
    pick = partial(_pick_tile_rows, H, B, ph, w_r, wp, Cin, k_dim, c_out_p,
                   max_tile_rows=max_tile_rows, vmem_budget=vmem_budget,
                   w_bufs=w_bufs)
    t_h, img_bufs = pick(img_bufs=2), 2
    if have_buffered:
        t_h_sb = pick(img_bufs=1)
        if t_h_sb > t_h:
            t_h, img_bufs = t_h_sb, 1

    n_t = _cdiv(H, t_h)
    h_pad = n_t * t_h                         # row axis padded so any t_h works
    hp = h_pad + 2 * ph
    tm = t_h * w_r

    # NCHW -> NHWC and zero-pad (rows: conv halo + tile padding; cols: halo +
    # sublane alignment).  The image stays f32: the bf16 cast for the MXU happens
    # inside the kernel and the centre tap of this same buffer doubles as the
    # exact-f32 residual (no separate residual stream, no wrapper-side cast pass).
    # TODO(synk): keep activations NHWC across the conv stack so this transpose
    # (and the one on the way out) can be dropped entirely.
    x = jnp.transpose(x_nchw, (0, 2, 3, 1)).astype(jnp.float32)
    xp = jnp.pad(x, ((0, 0), (ph, ph + (h_pad - H)), (pw, wp - pw - W), (0, 0)))

    # Conv weight (Cout,Cin,kh,kw) -> folded (kh*kw*Cin, Cout_p) matrix whose row
    # order matches the kernel's (di, dj, c) view order; zero-padded channels.
    w = jnp.transpose(weight_oihw, (2, 3, 1, 0)).reshape(k_dim, Cout)
    w = jnp.pad(w, ((0, 0), (0, c_out_p - Cout))).astype(compute_dtype)
    b = jnp.pad(bias.astype(jnp.float32).reshape(1, Cout),
                ((0, 0), (0, c_out_p - Cout)))

    add_res = bool(add_residual and Cout == Cin)

    out_elems = B * h_pad * w_r * c_out_p
    cost = pl.CostEstimate(
        flops=2 * out_elems * k_dim,
        transcendentals=out_elems,
        bytes_accessed=(xp.size * 4 + w.size * w.dtype.itemsize + b.size * 4
                        + out_elems * jnp.dtype(out_dtype).itemsize))

    kernel = partial(_conv_ln_gelu_kernel, kh=kh, kw=kw, t_h=t_h, w_r=w_r,
                     c_out_true=Cout, add_res=add_res, approx_gelu=approx_gelu,
                     eps=1e-5)

    def spec(shape, index_map, bufs, use_pm):
        if use_pm and bufs != 2:
            return pl.BlockSpec(shape, index_map, pipeline_mode=pl.Buffered(bufs))
        return pl.BlockSpec(shape, index_map)

    def call(fold_taps, use_pm):
        in_specs = [
            spec((None, hp, wp, Cin), lambda bb, tt: (bb, 0, 0, 0),
                 img_bufs, use_pm),
            spec((k_dim, c_out_p), lambda bb, tt: (0, 0), w_bufs, use_pm),
            spec((1, c_out_p), lambda bb, tt: (0, 0), w_bufs, use_pm),
        ]
        return pl.pallas_call(
            partial(kernel, fold_taps=fold_taps),
            out_shape=jax.ShapeDtypeStruct((B, h_pad * w_r, c_out_p), out_dtype),
            grid_spec=pltpu.PrefetchScalarGridSpec(
                num_scalar_prefetch=0,
                grid=(B, n_t),
                in_specs=in_specs,
                out_specs=pl.BlockSpec((None, tm, c_out_p),
                                       lambda bb, tt: (bb, tt, 0)),
            ),
            compiler_params=pltpu.CompilerParams(
                dimension_semantics=("parallel", "parallel"),
                vmem_limit_bytes=vmem_limit,
            ),
            cost_estimate=cost,
        )(xp, w, b)

    # Preferred configuration first; degrade gracefully if this jax/Mosaic build
    # rejects pl.Buffered or the folded-tap concatenation.  (Eager pallas_call
    # compiles at call time, so any lowering failure surfaces right here.)
    attempts = []
    if have_buffered and (img_bufs != 2 or w_bufs != 2):
        attempts.append((True, True))     # folded matmul + single-buffered invariants
    attempts.append((True, False))        # folded matmul, default double buffering
    attempts.append((False, False))       # per-tap matmul fallback
    out, last_err = None, None
    for fold_taps, use_pm in attempts:
        try:
            out = call(fold_taps, use_pm)
            break
        except Exception as e:            # pragma: no cover - version dependent
            last_err = e
    if out is None:
        raise last_err

    # (B, H_pad*w_r, Cout_p) -> crop row/width/lane padding -> NCHW.
    # TODO(synk): emit NHWC / bf16 directly and fuse this crop into the consumer
    # when the surrounding stack allows it — this pass is pure layout plumbing.
    out = out.reshape(B, h_pad, w_r, c_out_p)[:, :H, :W, :Cout]
    return jnp.transpose(out, (0, 3, 1, 2))


def _reference_forward(x, weight, bias, *, add_residual=True, cast_dtype=None,
                       approx_gelu=False):
    """Plain-XLA reference of the PyTorch module; optionally round the conv inputs
    to `cast_dtype` to mirror the kernel's MXU input precision."""
    xc, wc = x, weight
    if cast_dtype is not None:
        xc = xc.astype(cast_dtype).astype(jnp.float32)
        wc = wc.astype(cast_dtype).astype(jnp.float32)
    y = lax.conv_general_dilated(
        xc, wc, window_strides=(1, 1), padding="SAME",
        dimension_numbers=("NCHW", "OIHW", "NCHW"),
        precision=lax.Precision.HIGHEST)
    y = y + bias.reshape(1, -1, 1, 1)
    mean = jnp.mean(y, axis=1, keepdims=True)
    var = jnp.mean((y - mean) ** 2, axis=1, keepdims=True)
    y = (y - mean) / jnp.sqrt(var + 1e-5)
    if approx_gelu:
        c0 = math.sqrt(2.0 / math.pi)
        y = 0.5 * y * (1.0 + jnp.tanh(c0 * (y + 0.044715 * y ** 3)))
    else:
        y = 0.5 * y * (1.0 + lax.erf(y * (1.0 / math.sqrt(2.0))))
    if add_residual and y.shape[1] == x.shape[1]:
        y = y + x
    return y


if __name__ == "__main__":
    # Small shapes consistent with the module: B=2, in_c=out_c=4, 16x16, k=3.
    B, Cin, Cout, H, W, ksz = 2, 4, 4, 16, 16, 3

    key = jax.random.PRNGKey(0)
    kx, kw_, kb = jax.random.split(key, 3)
    x = jax.random.normal(kx, (B, Cin, H, W), dtype=jnp.float32)

    fan_in = Cin * ksz * ksz
    bound = 1.0 / math.sqrt(fan_in)
    weight = jax.random.uniform(kw_, (Cout, Cin, ksz, ksz), jnp.float32, -bound, bound)
    bias = jax.random.uniform(kb, (Cout,), jnp.float32, -bound, bound)

    # max_tile_rows=8 forces t_h=8 -> grid (B, 2): exercises the row tiling.
    y = conv2d_layernorm(x, weight, bias, add_residual=True, max_tile_rows=8)
    jax.block_until_ready(y)
    assert y.shape == (B, Cout, H, W)

    # Logic check vs. a reference using the same bf16-rounded conv inputs.
    ref_bf = _reference_forward(x, weight, bias, add_residual=True,
                                cast_dtype=jnp.bfloat16)
    err = float(jnp.max(jnp.abs(y - ref_bf)))
    assert err < 1e-2, f"kernel vs bf16-input reference mismatch: {err}"

    # Sanity check vs. the pure-f32 reference (bf16 MXU inputs -> small drift).
    ref32 = _reference_forward(x, weight, bias, add_residual=True)
    drift = float(jnp.max(jnp.abs(y - ref32)))
    assert drift < 0.5, f"unexpected deviation from f32 reference: {drift}"

    # Full-height tile + no-residual variant.
    y_nr = conv2d_layernorm(x, weight, bias, add_residual=False)
    jax.block_until_ready(y_nr)
    ref_nr = _reference_forward(x, weight, bias, add_residual=False,
                                cast_dtype=jnp.bfloat16)
    err_nr = float(jnp.max(jnp.abs(y_nr - ref_nr)))
    assert err_nr < 1e-2, f"no-residual kernel mismatch: {err_nr}"

    # Non-divisor spatial height (H=10, t_h=4 -> row axis padded to 12).
    x_odd = x[:, :, :10, :]
    y_odd = conv2d_layernorm(x_odd, weight, bias, add_residual=True, max_tile_rows=4)
    jax.block_until_ready(y_odd)
    ref_odd = _reference_forward(x_odd, weight, bias, add_residual=True,
                                 cast_dtype=jnp.bfloat16)
    err_odd = float(jnp.max(jnp.abs(y_odd - ref_odd)))
    assert err_odd < 1e-2, f"non-divisor-H kernel mismatch: {err_odd}"

    # Optional tanh-approximate GELU (EUP path), checked vs. a matching reference.
    y_ap = conv2d_layernorm(x, weight, bias, add_residual=True, approx_gelu=True,
                            max_tile_rows=8)
    jax.block_until_ready(y_ap)
    ref_ap = _reference_forward(x, weight, bias, add_residual=True,
                                cast_dtype=jnp.bfloat16, approx_gelu=True)
    err_ap = float(jnp.max(jnp.abs(y_ap - ref_ap)))
    assert err_ap < 1e-2, f"approx-GELU kernel mismatch: {err_ap}"

    print("KERNEL_OK")
</pallas_src>

<mosaic_0001>
module attributes {stable_mosaic.version = 11 : i64} {
  func.func @_conv_ln_gelu_kernel(%arg0: i32, %arg1: i32, %arg2: memref<1x18x24x4xf32, #tpu.memory_space<vmem>>, %arg3: memref<36x128xbf16, #tpu.memory_space<vmem>>, %arg4: memref<1x128xf32, #tpu.memory_space<vmem>>, %arg5: memref<1x128x128xf32, #tpu.memory_space<vmem>>) attributes {dimension_semantics = [#tpu.dimension_semantics<parallel>, #tpu.dimension_semantics<parallel>], iteration_bounds = array<i64: 2, 2>, scalar_prefetch = 0 : i64, scratch_operands = 0 : i64, tpu.core_type = #tpu.core_type<tc>, window_params = [{transform_indices = @transform_0, window_bounds = array<i64: 1, 18, 24, 4>}, {pipeline_mode = #tpu.pipeline_mode<synchronous>, transform_indices = @transform_1, window_bounds = array<i64: 36, 128>}, {pipeline_mode = #tpu.pipeline_mode<synchronous>, transform_indices = @transform_2, window_bounds = array<i64: 1, 128>}, {transform_indices = @transform_3, window_bounds = array<i64: 1, 128, 128>}]} {
    %c8_i32 = arith.constant 8 : i32
    %0 = arith.muli %arg1, %c8_i32 : i32
    %c0_i32 = arith.constant 0 : i32
    %1 = arith.addi %0, %c0_i32 : i32
    %c0 = arith.constant 0 : index
    %2 = arith.index_cast %1 : i32 to index
    %c0_0 = arith.constant 0 : index
    %c0_1 = arith.constant 0 : index
    %3 = vector.load %arg2[%c0, %2, %c0_0, %c0_1] : memref<1x18x24x4xf32, #tpu.memory_space<vmem>>, vector<1x8x24x4xf32>
    %4 = vector.shape_cast %3 : vector<1x8x24x4xf32> to vector<8x24x4xf32>
    %5 = vector.extract_strided_slice %4 {offsets = [0, 0, 0], sizes = [8, 16, 4], strides = [1, 1, 1]} : vector<8x24x4xf32> to vector<8x16x4xf32>
    %6 = vector.extract_strided_slice %4 {offsets = [0, 1, 0], sizes = [8, 16, 4], strides = [1, 1, 1]} : vector<8x24x4xf32> to vector<8x16x4xf32>
    %7 = vector.extract_strided_slice %4 {offsets = [0, 2, 0], sizes = [8, 16, 4], strides = [1, 1, 1]} : vector<8x24x4xf32> to vector<8x16x4xf32>
    %c1_i32 = arith.constant 1 : i32
    %8 = arith.addi %0, %c1_i32 : i32
    %c0_2 = arith.constant 0 : index
    %9 = arith.index_cast %8 : i32 to index
    %c0_3 = arith.constant 0 : index
    %c0_4 = arith.constant 0 : index
    %10 = vector.load %arg2[%c0_2, %9, %c0_3, %c0_4] : memref<1x18x24x4xf32, #tpu.memory_space<vmem>>, vector<1x8x24x4xf32>
    %11 = vector.shape_cast %10 : vector<1x8x24x4xf32> to vector<8x24x4xf32>
    %12 = vector.extract_strided_slice %11 {offsets = [0, 0, 0], sizes = [8, 16, 4], strides = [1, 1, 1]} : vector<8x24x4xf32> to vector<8x16x4xf32>
    %13 = vector.extract_strided_slice %11 {offsets = [0, 1, 0], sizes = [8, 16, 4], strides = [1, 1, 1]} : vector<8x24x4xf32> to vector<8x16x4xf32>
    %14 = vector.extract_strided_slice %11 {offsets = [0, 2, 0], sizes = [8, 16, 4], strides = [1, 1, 1]} : vector<8x24x4xf32> to vector<8x16x4xf32>
    %c2_i32 = arith.constant 2 : i32
    %15 = arith.addi %0, %c2_i32 : i32
    %c0_5 = arith.constant 0 : index
    %16 = arith.index_cast %15 : i32 to index
    %c0_6 = arith.constant 0 : index
    %c0_7 = arith.constant 0 : index
    %17 = vector.load %arg2[%c0_5, %16, %c0_6, %c0_7] : memref<1x18x24x4xf32, #tpu.memory_space<vmem>>, vector<1x8x24x4xf32>
    %18 = vector.shape_cast %17 : vector<1x8x24x4xf32> to vector<8x24x4xf32>
    %19 = vector.extract_strided_slice %18 {offsets = [0, 0, 0], sizes = [8, 16, 4], strides = [1, 1, 1]} : vector<8x24x4xf32> to vector<8x16x4xf32>
    %20 = vector.extract_strided_slice %18 {offsets = [0, 1, 0], sizes = [8, 16, 4], strides = [1, 1, 1]} : vector<8x24x4xf32> to vector<8x16x4xf32>
    %21 = vector.extract_strided_slice %18 {offsets = [0, 2, 0], sizes = [8, 16, 4], strides = [1, 1, 1]} : vector<8x24x4xf32> to vector<8x16x4xf32>
    %22 = tpu.concatenate %5, %6, %7, %12, %13, %14, %19, %20, %21 in 2 : vector<8x16x4xf32>, vector<8x16x4xf32>, vector<8x16x4xf32>, vector<8x16x4xf32>, vector<8x16x4xf32>, vector<8x16x4xf32>, vector<8x16x4xf32>, vector<8x16x4xf32>, vector<8x16x4xf32> -> vector<8x16x36xf32>
    %23 = vector.shape_cast %22 : vector<8x16x36xf32> to vector<128x36xf32>
    %24 = arith.truncf %23 : vector<128x36xf32> to vector<128x36xbf16>
    %c0_8 = arith.constant 0 : index
    %c0_9 = arith.constant 0 : index
    %25 = vector.load %arg3[%c0_8, %c0_9] : memref<36x128xbf16, #tpu.memory_space<vmem>>, vector<36x128xbf16>
    %cst = arith.constant dense<0.000000e+00> : vector<128x128xf32>
    %26 = tpu.matmul %24, %25, %cst {dimension_numbers = #tpu.dot_dimension_numbers<[1], [0], [0], [1], [0, 0, 1, 1], [], []>} : vector<128x36xbf16>, vector<36x128xbf16>, vector<128x128xf32> -> vector<128x128xf32>
    %c0_10 = arith.constant 0 : index
    %c0_11 = arith.constant 0 : index
    %27 = vector.load %arg4[%c0_10, %c0_11] : memref<1x128xf32, #tpu.memory_space<vmem>>, vector<1x128xf32>
    %28 = vector.broadcast %27 : vector<1x128xf32> to vector<128x128xf32>
    %29 = arith.addf %26, %28 : vector<128x128xf32>
    %cst_12 = arith.constant dense<0.000000e+00> : vector<128xf32>
    %30 = vector.multi_reduction <add>, %29, %cst_12 [1] : vector<128x128xf32> to vector<128xf32>
    %31 = vector.shape_cast %30 : vector<128xf32> to vector<128x1xf32>
    %cst_13 = arith.constant 2.500000e-01 : f32
    %32 = vector.broadcast %cst_13 : f32 to vector<128x1xf32>
    %33 = arith.mulf %31, %32 : vector<128x1xf32>
    %34 = vector.broadcast %33 : vector<128x1xf32> to vector<128x128xf32>
    %35 = arith.subf %29, %34 : vector<128x128xf32>
    %36 = tpu.iota {dimensions = array<i32: 1>} : vector<128x128xi32>
    %c4_i32 = arith.constant 4 : i32
    %37 = vector.broadcast %c4_i32 : i32 to vector<128x128xi32>
    %38 = arith.cmpi slt, %36, %37 : vector<128x128xi32>
    %cst_14 = arith.constant 0.000000e+00 : f32
    %39 = vector.broadcast %cst_14 : f32 to vector<128x128xf32>
    %40 = arith.select %38, %35, %39 : vector<128x128xi1>, vector<128x128xf32>
    %41 = arith.mulf %40, %40 : vector<128x128xf32>
    %cst_15 = arith.constant dense<0.000000e+00> : vector<128xf32>
    %42 = vector.multi_reduction <add>, %41, %cst_15 [1] : vector<128x128xf32> to vector<128xf32>
    %43 = vector.shape_cast %42 : vector<128xf32> to vector<128x1xf32>
    %cst_16 = arith.constant 2.500000e-01 : f32
    %44 = vector.broadcast %cst_16 : f32 to vector<128x1xf32>
    %45 = arith.mulf %43, %44 : vector<128x1xf32>
    %cst_17 = arith.constant 9.99999974E-6 : f32
    %46 = vector.broadcast %cst_17 : f32 to vector<128x1xf32>
    %47 = arith.addf %45, %46 : vector<128x1xf32>
    %48 = math.rsqrt %47 : vector<128x1xf32>
    %49 = vector.broadcast %48 : vector<128x1xf32> to vector<128x128xf32>
    %50 = arith.mulf %40, %49 : vector<128x128xf32>
    %cst_18 = arith.constant 5.000000e-01 : f32
    %51 = vector.broadcast %cst_18 : f32 to vector<128x128xf32>
    %52 = arith.mulf %51, %50 : vector<128x128xf32>
    %cst_19 = arith.constant 0.707106769 : f32
    %53 = vector.broadcast %cst_19 : f32 to vector<128x128xf32>
    %54 = arith.mulf %50, %53 : vector<128x128xf32>
    %55 = math.erf %54 : vector<128x128xf32>
    %cst_20 = arith.constant 1.000000e+00 : f32
    %56 = vector.broadcast %cst_20 : f32 to vector<128x128xf32>
    %57 = arith.addf %56, %55 : vector<128x128xf32>
    %58 = arith.mulf %52, %57 : vector<128x128xf32>
    %c0_21 = arith.constant 0 : index
    %c0_22 = arith.constant 0 : index
    %c0_23 = arith.constant 0 : index
    %59 = vector.load %arg5[%c0_21, %c0_22, %c0_23] : memref<1x128x128xf32, #tpu.memory_space<vmem>>, vector<1x128x128xf32>
    %60 = vector.shape_cast %59 : vector<1x128x128xf32> to vector<128x128xf32>
    %61 = vector.shape_cast %58 : vector<128x128xf32> to vector<1x128x128xf32>
    tpu.vector_store %arg5[%c0_21, %c0_22, %c0_23], %61 {strides = array<i32>} : memref<1x128x128xf32, #tpu.memory_space<vmem>>, vector<1x128x128xf32>,
    %62 = vector.shape_cast %13 : vector<8x16x4xf32> to vector<128x4xf32>
    %63 = vector.extract_strided_slice %58 {offsets = [0, 0], sizes = [128, 4], strides = [1, 1]} : vector<128x128xf32> to vector<128x4xf32>
    %64 = arith.addf %63, %62 : vector<128x4xf32>
    %c0_24 = arith.constant 0 : index
    %c0_25 = arith.constant 0 : index
    %c0_26 = arith.constant 0 : index
    %65 = vector.load %arg5[%c0_24, %c0_25, %c0_26] : memref<1x128x128xf32, #tpu.memory_space<vmem>>, vector<1x128x4xf32>
    %66 = vector.shape_cast %65 : vector<1x128x4xf32> to vector<128x4xf32>
    %67 = vector.shape_cast %64 : vector<128x4xf32> to vector<1x128x4xf32>
    tpu.vector_store %arg5[%c0_24, %c0_25, %c0_26], %67 {strides = array<i32>} : memref<1x128x128xf32, #tpu.memory_space<vmem>>, vector<1x128x4xf32>,
    return
  }
  func.func @transform_0(%arg0: i32, %arg1: i32) -> (i32, i32, i32, i32) {
    %c0_i32 = arith.constant 0 : i32
    %c0_i32_0 = arith.constant 0 : i32
    %c0_i32_1 = arith.constant 0 : i32
    %c0_i32_2 = arith.constant 0 : i32
    return %arg0, %c0_i32, %c0_i32_0, %c0_i32_1 : i32, i32, i32, i32
  }
  func.func @transform_1(%arg0: i32, %arg1: i32) -> (i32, i32) {
    %c0_i32 = arith.constant 0 : i32
    %c0_i32_0 = arith.constant 0 : i32
    %c0_i32_1 = arith.constant 0 : i32
    return %c0_i32, %c0_i32_0 : i32, i32
  }
  func.func @transform_2(%arg0: i32, %arg1: i32) -> (i32, i32) {
    %c0_i32 = arith.constant 0 : i32
    %c0_i32_0 = arith.constant 0 : i32
    %c0_i32_1 = arith.constant 0 : i32
    return %c0_i32, %c0_i32_0 : i32, i32
  }
  func.func @transform_3(%arg0: i32, %arg1: i32) -> (i32, i32, i32) {
    %c0_i32 = arith.constant 0 : i32
    %c0_i32_0 = arith.constant 0 : i32
    return %arg0, %arg1, %c0_i32 : i32, i32, i32
  }
}

module attributes {stable_mosaic.version = 11 : i64} {
  func.func @_conv_ln_gelu_kernel(%arg0: i32, %arg1: i32, %arg2: memref<1x18x24x4xf32, #tpu.memory_space<vmem>>, %arg3: memref<36x128xbf16, #tpu.memory_space<vmem>>, %arg4: memref<1x128xf32, #tpu.memory_space<vmem>>, %arg5: memref<1x128x128xf32, #tpu.memory_space<vmem>>) attributes {dimension_semantics = [#tpu.dimension_semantics<parallel>, #tpu.dimension_semantics<parallel>], iteration_bounds = array<i64: 2, 2>, scalar_prefetch = 0 : i64, scratch_operands = 0 : i64, tpu.core_type = #tpu.core_type<tc>, window_params = [{transform_indices = @transform_0, window_bounds = array<i64: 1, 18, 24, 4>}, {pipeline_mode = #tpu.pipeline_mode<synchronous>, transform_indices = @transform_1, window_bounds = array<i64: 36, 128>}, {pipeline_mode = #tpu.pipeline_mode<synchronous>, transform_indices = @transform_2, window_bounds = array<i64: 1, 128>}, {transform_indices = @transform_3, window_bounds = array<i64: 1, 128, 128>}]} {
    %c8_i32 = arith.constant 8 : i32
    %0 = arith.muli %arg1, %c8_i32 : i32
    %c0_i32 = arith.constant 0 : i32
    %1 = arith.addi %0, %c0_i32 : i32
    %c0 = arith.constant 0 : index
    %2 = arith.index_cast %1 : i32 to index
    %c0_0 = arith.constant 0 : index
    %c0_1 = arith.constant 0 : index
    %3 = vector.load %arg2[%c0, %2, %c0_0, %c0_1] : memref<1x18x24x4xf32, #tpu.memory_space<vmem>>, vector<1x8x24x4xf32>
    %4 = vector.shape_cast %3 : vector<1x8x24x4xf32> to vector<8x24x4xf32>
    %5 = vector.extract_strided_slice %4 {offsets = [0, 0, 0], sizes = [8, 16, 4], strides = [1, 1, 1]} : vector<8x24x4xf32> to vector<8x16x4xf32>
    %6 = vector.extract_strided_slice %4 {offsets = [0, 1, 0], sizes = [8, 16, 4], strides = [1, 1, 1]} : vector<8x24x4xf32> to vector<8x16x4xf32>
    %7 = vector.extract_strided_slice %4 {offsets = [0, 2, 0], sizes = [8, 16, 4], strides = [1, 1, 1]} : vector<8x24x4xf32> to vector<8x16x4xf32>
    %c1_i32 = arith.constant 1 : i32
    %8 = arith.addi %0, %c1_i32 : i32
    %c0_2 = arith.constant 0 : index
    %9 = arith.index_cast %8 : i32 to index
    %c0_3 = arith.constant 0 : index
    %c0_4 = arith.constant 0 : index
    %10 = vector.load %arg2[%c0_2, %9, %c0_3, %c0_4] : memref<1x18x24x4xf32, #tpu.memory_space<vmem>>, vector<1x8x24x4xf32>
    %11 = vector.shape_cast %10 : vector<1x8x24x4xf32> to vector<8x24x4xf32>
    %12 = vector.extract_strided_slice %11 {offsets = [0, 0, 0], sizes = [8, 16, 4], strides = [1, 1, 1]} : vector<8x24x4xf32> to vector<8x16x4xf32>
    %13 = vector.extract_strided_slice %11 {offsets = [0, 1, 0], sizes = [8, 16, 4], strides = [1, 1, 1]} : vector<8x24x4xf32> to vector<8x16x4xf32>
    %14 = vector.extract_strided_slice %11 {offsets = [0, 2, 0], sizes = [8, 16, 4], strides = [1, 1, 1]} : vector<8x24x4xf32> to vector<8x16x4xf32>
    %c2_i32 = arith.constant 2 : i32
    %15 = arith.addi %0, %c2_i32 : i32
    %c0_5 = arith.constant 0 : index
    %16 = arith.index_cast %15 : i32 to index
    %c0_6 = arith.constant 0 : index
    %c0_7 = arith.constant 0 : index
    %17 = vector.load %arg2[%c0_5, %16, %c0_6, %c0_7] : memref<1x18x24x4xf32, #tpu.memory_space<vmem>>, vector<1x8x24x4xf32>
    %18 = vector.shape_cast %17 : vector<1x8x24x4xf32> to vector<8x24x4xf32>
    %19 = vector.extract_strided_slice %18 {offsets = [0, 0, 0], sizes = [8, 16, 4], strides = [1, 1, 1]} : vector<8x24x4xf32> to vector<8x16x4xf32>
    %20 = vector.extract_strided_slice %18 {offsets = [0, 1, 0], sizes = [8, 16, 4], strides = [1, 1, 1]} : vector<8x24x4xf32> to vector<8x16x4xf32>
    %21 = vector.extract_strided_slice %18 {offsets = [0, 2, 0], sizes = [8, 16, 4], strides = [1, 1, 1]} : vector<8x24x4xf32> to vector<8x16x4xf32>
    %22 = tpu.concatenate %5, %6, %7, %12, %13, %14, %19, %20, %21 in 2 : vector<8x16x4xf32>, vector<8x16x4xf32>, vector<8x16x4xf32>, vector<8x16x4xf32>, vector<8x16x4xf32>, vector<8x16x4xf32>, vector<8x16x4xf32>, vector<8x16x4xf32>, vector<8x16x4xf32> -> vector<8x16x36xf32>
    %23 = vector.shape_cast %22 : vector<8x16x36xf32> to vector<128x36xf32>
    %24 = arith.truncf %23 : vector<128x36xf32> to vector<128x36xbf16>
    %c0_8 = arith.constant 0 : index
    %c0_9 = arith.constant 0 : index
    %25 = vector.load %arg3[%c0_8, %c0_9] : memref<36x128xbf16, #tpu.memory_space<vmem>>, vector<36x128xbf16>
    %cst = arith.constant dense<0.000000e+00> : vector<128x128xf32>
    %26 = tpu.matmul %24, %25, %cst {dimension_numbers = #tpu.dot_dimension_numbers<[1], [0], [0], [1], [0, 0, 1, 1], [], []>} : vector<128x36xbf16>, vector<36x128xbf16>, vector<128x128xf32> -> vector<128x128xf32>
    %c0_10 = arith.constant 0 : index
    %c0_11 = arith.constant 0 : index
    %27 = vector.load %arg4[%c0_10, %c0_11] : memref<1x128xf32, #tpu.memory_space<vmem>>, vector<1x128xf32>
    %28 = vector.broadcast %27 : vector<1x128xf32> to vector<128x128xf32>
    %29 = arith.addf %26, %28 : vector<128x128xf32>
    %cst_12 = arith.constant dense<0.000000e+00> : vector<128xf32>
    %30 = vector.multi_reduction <add>, %29, %cst_12 [1] : vector<128x128xf32> to vector<128xf32>
    %31 = vector.shape_cast %30 : vector<128xf32> to vector<128x1xf32>
    %cst_13 = arith.constant 2.500000e-01 : f32
    %32 = vector.broadcast %cst_13 : f32 to vector<128x1xf32>
    %33 = arith.mulf %31, %32 : vector<128x1xf32>
    %34 = vector.broadcast %33 : vector<128x1xf32> to vector<128x128xf32>
    %35 = arith.subf %29, %34 : vector<128x128xf32>
    %36 = tpu.iota {dimensions = array<i32: 1>} : vector<128x128xi32>
    %c4_i32 = arith.constant 4 : i32
    %37 = vector.broadcast %c4_i32 : i32 to vector<128x128xi32>
    %38 = arith.cmpi slt, %36, %37 : vector<128x128xi32>
    %cst_14 = arith.constant 0.000000e+00 : f32
    %39 = vector.broadcast %cst_14 : f32 to vector<128x128xf32>
    %40 = arith.select %38, %35, %39 : vector<128x128xi1>, vector<128x128xf32>
    %41 = arith.mulf %40, %40 : vector<128x128xf32>
    %cst_15 = arith.constant dense<0.000000e+00> : vector<128xf32>
    %42 = vector.multi_reduction <add>, %41, %cst_15 [1] : vector<128x128xf32> to vector<128xf32>
    %43 = vector.shape_cast %42 : vector<128xf32> to vector<128x1xf32>
    %cst_16 = arith.constant 2.500000e-01 : f32
    %44 = vector.broadcast %cst_16 : f32 to vector<128x1xf32>
    %45 = arith.mulf %43, %44 : vector<128x1xf32>
    %cst_17 = arith.constant 9.99999974E-6 : f32
    %46 = vector.broadcast %cst_17 : f32 to vector<128x1xf32>
    %47 = arith.addf %45, %46 : vector<128x1xf32>
    %48 = math.rsqrt %47 : vector<128x1xf32>
    %49 = vector.broadcast %48 : vector<128x1xf32> to vector<128x128xf32>
    %50 = arith.mulf %40, %49 : vector<128x128xf32>
    %cst_18 = arith.constant 5.000000e-01 : f32
    %51 = vector.broadcast %cst_18 : f32 to vector<128x128xf32>
    %52 = arith.mulf %51, %50 : vector<128x128xf32>
    %cst_19 = arith.constant 0.707106769 : f32
    %53 = vector.broadcast %cst_19 : f32 to vector<128x128xf32>
    %54 = arith.mulf %50, %53 : vector<128x128xf32>
    %55 = math.erf %54 : vector<128x128xf32>
    %cst_20 = arith.constant 1.000000e+00 : f32
    %56 = vector.broadcast %cst_20 : f32 to vector<128x128xf32>
    %57 = arith.addf %56, %55 : vector<128x128xf32>
    %58 = arith.mulf %52, %57 : vector<128x128xf32>
    %c0_21 = arith.constant 0 : index
    %c0_22 = arith.constant 0 : index
    %c0_23 = arith.constant 0 : index
    %59 = vector.load %arg5[%c0_21, %c0_22, %c0_23] : memref<1x128x128xf32, #tpu.memory_space<vmem>>, vector<1x128x128xf32>
    %60 = vector.shape_cast %59 : vector<1x128x128xf32> to vector<128x128xf32>
    %61 = vector.shape_cast %58 : vector<128x128xf32> to vector<1x128x128xf32>
    tpu.vector_store %arg5[%c0_21, %c0_22, %c0_23], %61 {strides = array<i32>} : memref<1x128x128xf32, #tpu.memory_space<vmem>>, vector<1x128x128xf32>,
    %62 = vector.shape_cast %13 : vector<8x16x4xf32> to vector<128x4xf32>
    %63 = vector.extract_strided_slice %58 {offsets = [0, 0], sizes = [128, 4], strides = [1, 1]} : vector<128x128xf32> to vector<128x4xf32>
    %64 = arith.addf %63, %62 : vector<128x4xf32>
    %c0_24 = arith.constant 0 : index
    %c0_25 = arith.constant 0 : index
    %c0_26 = arith.constant 0 : index
    %65 = vector.load %arg5[%c0_24, %c0_25, %c0_26] : memref<1x128x128xf32, #tpu.memory_space<vmem>>, vector<1x128x4xf32>
    %66 = vector.shape_cast %65 : vector<1x128x4xf32> to vector<128x4xf32>
    %67 = vector.shape_cast %64 : vector<128x4xf32> to vector<1x128x4xf32>
    tpu.vector_store %arg5[%c0_24, %c0_25, %c0_26], %67 {strides = array<i32>} : memref<1x128x128xf32, #tpu.memory_space<vmem>>, vector<1x128x4xf32>,
    return
  }
  func.func @transform_0(%arg0: i32, %arg1: i32) -> (i32, i32, i32, i32) {
    %c0_i32 = arith.constant 0 : i32
    %c0_i32_0 = arith.constant 0 : i32
    %c0_i32_1 = arith.constant 0 : i32
    %c0_i32_2 = arith.constant 0 : i32
    return %arg0, %c0_i32, %c0_i32_0, %c0_i32_1 : i32, i32, i32, i32
  }
  func.func @transform_1(%arg0: i32, %arg1: i32) -> (i32, i32) {
    %c0_i32 = arith.constant 0 : i32
    %c0_i32_0 = arith.constant 0 : i32
    %c0_i32_1 = arith.constant 0 : i32
    return %c0_i32, %c0_i32_0 : i32, i32
  }
  func.func @transform_2(%arg0: i32, %arg1: i32) -> (i32, i32) {
    %c0_i32 = arith.constant 0 : i32
    %c0_i32_0 = arith.constant 0 : i32
    %c0_i32_1 = arith.constant 0 : i32
    return %c0_i32, %c0_i32_0 : i32, i32
  }
  func.func @transform_3(%arg0: i32, %arg1: i32) -> (i32, i32, i32) {
    %c0_i32 = arith.constant 0 : i32
    %c0_i32_0 = arith.constant 0 : i32
    return %arg0, %arg1, %c0_i32 : i32, i32, i32
  }
}

module attributes {stable_mosaic.version = 11 : i64} {
  func.func @_conv_ln_gelu_kernel(%arg0: i32, %arg1: i32, %arg2: memref<1x18x24x4xf32, #tpu.memory_space<vmem>>, %arg3: memref<36x128xbf16, #tpu.memory_space<vmem>>, %arg4: memref<1x128xf32, #tpu.memory_space<vmem>>, %arg5: memref<1x128x128xf32, #tpu.memory_space<vmem>>) attributes {dimension_semantics = [#tpu.dimension_semantics<parallel>, #tpu.dimension_semantics<parallel>], iteration_bounds = array<i64: 2, 2>, scalar_prefetch = 0 : i64, scratch_operands = 0 : i64, tpu.core_type = #tpu.core_type<tc>, window_params = [{transform_indices = @transform_0, window_bounds = array<i64: 1, 18, 24, 4>}, {pipeline_mode = #tpu.pipeline_mode<synchronous>, transform_indices = @transform_1, window_bounds = array<i64: 36, 128>}, {pipeline_mode = #tpu.pipeline_mode<synchronous>, transform_indices = @transform_2, window_bounds = array<i64: 1, 128>}, {transform_indices = @transform_3, window_bounds = array<i64: 1, 128, 128>}]} {
    %c8_i32 = arith.constant 8 : i32
    %0 = arith.muli %arg1, %c8_i32 : i32
    %c0_i32 = arith.constant 0 : i32
    %1 = arith.addi %0, %c0_i32 : i32
    %c0 = arith.constant 0 : index
    %2 = arith.index_cast %1 : i32 to index
    %c0_0 = arith.constant 0 : index
    %c0_1 = arith.constant 0 : index
    %3 = vector.load %arg2[%c0, %2, %c0_0, %c0_1] : memref<1x18x24x4xf32, #tpu.memory_space<vmem>>, vector<1x8x24x4xf32>
    %4 = vector.shape_cast %3 : vector<1x8x24x4xf32> to vector<8x24x4xf32>
    %5 = vector.extract_strided_slice %4 {offsets = [0, 0, 0], sizes = [8, 16, 4], strides = [1, 1, 1]} : vector<8x24x4xf32> to vector<8x16x4xf32>
    %6 = vector.extract_strided_slice %4 {offsets = [0, 1, 0], sizes = [8, 16, 4], strides = [1, 1, 1]} : vector<8x24x4xf32> to vector<8x16x4xf32>
    %7 = vector.extract_strided_slice %4 {offsets = [0, 2, 0], sizes = [8, 16, 4], strides = [1, 1, 1]} : vector<8x24x4xf32> to vector<8x16x4xf32>
    %c1_i32 = arith.constant 1 : i32
    %8 = arith.addi %0, %c1_i32 : i32
    %c0_2 = arith.constant 0 : index
    %9 = arith.index_cast %8 : i32 to index
    %c0_3 = arith.constant 0 : index
    %c0_4 = arith.constant 0 : index
    %10 = vector.load %arg2[%c0_2, %9, %c0_3, %c0_4] : memref<1x18x24x4xf32, #tpu.memory_space<vmem>>, vector<1x8x24x4xf32>
    %11 = vector.shape_cast %10 : vector<1x8x24x4xf32> to vector<8x24x4xf32>
    %12 = vector.extract_strided_slice %11 {offsets = [0, 0, 0], sizes = [8, 16, 4], strides = [1, 1, 1]} : vector<8x24x4xf32> to vector<8x16x4xf32>
    %13 = vector.extract_strided_slice %11 {offsets = [0, 1, 0], sizes = [8, 16, 4], strides = [1, 1, 1]} : vector<8x24x4xf32> to vector<8x16x4xf32>
    %14 = vector.extract_strided_slice %11 {offsets = [0, 2, 0], sizes = [8, 16, 4], strides = [1, 1, 1]} : vector<8x24x4xf32> to vector<8x16x4xf32>
    %c2_i32 = arith.constant 2 : i32
    %15 = arith.addi %0, %c2_i32 : i32
    %c0_5 = arith.constant 0 : index
    %16 = arith.index_cast %15 : i32 to index
    %c0_6 = arith.constant 0 : index
    %c0_7 = arith.constant 0 : index
    %17 = vector.load %arg2[%c0_5, %16, %c0_6, %c0_7] : memref<1x18x24x4xf32, #tpu.memory_space<vmem>>, vector<1x8x24x4xf32>
    %18 = vector.shape_cast %17 : vector<1x8x24x4xf32> to vector<8x24x4xf32>
    %19 = vector.extract_strided_slice %18 {offsets = [0, 0, 0], sizes = [8, 16, 4], strides = [1, 1, 1]} : vector<8x24x4xf32> to vector<8x16x4xf32>
    %20 = vector.extract_strided_slice %18 {offsets = [0, 1, 0], sizes = [8, 16, 4], strides = [1, 1, 1]} : vector<8x24x4xf32> to vector<8x16x4xf32>
    %21 = vector.extract_strided_slice %18 {offsets = [0, 2, 0], sizes = [8, 16, 4], strides = [1, 1, 1]} : vector<8x24x4xf32> to vector<8x16x4xf32>
    %cst = arith.constant 0.000000e+00 : f32
    %22 = vector.broadcast %cst : f32 to vector<128x128xf32>
    %23 = vector.shape_cast %5 : vector<8x16x4xf32> to vector<128x4xf32>
    %24 = arith.truncf %23 : vector<128x4xf32> to vector<128x4xbf16>
    %c0_8 = arith.constant 0 : index
    %c0_9 = arith.constant 0 : index
    %25 = vector.load %arg3[%c0_8, %c0_9] : memref<36x128xbf16, #tpu.memory_space<vmem>>, vector<4x128xbf16>
    %cst_10 = arith.constant dense<0.000000e+00> : vector<128x128xf32>
    %26 = tpu.matmul %24, %25, %cst_10 {dimension_numbers = #tpu.dot_dimension_numbers<[1], [0], [0], [1], [0, 0, 1, 1], [], []>} : vector<128x4xbf16>, vector<4x128xbf16>, vector<128x128xf32> -> vector<128x128xf32>
    %27 = arith.addf %22, %26 : vector<128x128xf32>
    %28 = vector.shape_cast %6 : vector<8x16x4xf32> to vector<128x4xf32>
    %29 = arith.truncf %28 : vector<128x4xf32> to vector<128x4xbf16>
    %c4 = arith.constant 4 : index
    %c0_11 = arith.constant 0 : index
    %30 = vector.load %arg3[%c4, %c0_11] : memref<36x128xbf16, #tpu.memory_space<vmem>>, vector<4x128xbf16>
    %cst_12 = arith.constant dense<0.000000e+00> : vector<128x128xf32>
    %31 = tpu.matmul %29, %30, %cst_12 {dimension_numbers = #tpu.dot_dimension_numbers<[1], [0], [0], [1], [0, 0, 1, 1], [], []>} : vector<128x4xbf16>, vector<4x128xbf16>, vector<128x128xf32> -> vector<128x128xf32>
    %32 = arith.addf %27, %31 : vector<128x128xf32>
    %33 = vector.shape_cast %7 : vector<8x16x4xf32> to vector<128x4xf32>
    %34 = arith.truncf %33 : vector<128x4xf32> to vector<128x4xbf16>
    %c8 = arith.constant 8 : index
    %c0_13 = arith.constant 0 : index
    %35 = vector.load %arg3[%c8, %c0_13] : memref<36x128xbf16, #tpu.memory_space<vmem>>, vector<4x128xbf16>
    %cst_14 = arith.constant dense<0.000000e+00> : vector<128x128xf32>
    %36 = tpu.matmul %34, %35, %cst_14 {dimension_numbers = #tpu.dot_dimension_numbers<[1], [0], [0], [1], [0, 0, 1, 1], [], []>} : vector<128x4xbf16>, vector<4x128xbf16>, vector<128x128xf32> -> vector<128x128xf32>
    %37 = arith.addf %32, %36 : vector<128x128xf32>
    %38 = vector.shape_cast %12 : vector<8x16x4xf32> to vector<128x4xf32>
    %39 = arith.truncf %38 : vector<128x4xf32> to vector<128x4xbf16>
    %c12 = arith.constant 12 : index
    %c0_15 = arith.constant 0 : index
    %40 = vector.load %arg3[%c12, %c0_15] : memref<36x128xbf16, #tpu.memory_space<vmem>>, vector<4x128xbf16>
    %cst_16 = arith.constant dense<0.000000e+00> : vector<128x128xf32>
    %41 = tpu.matmul %39, %40, %cst_16 {dimension_numbers = #tpu.dot_dimension_numbers<[1], [0], [0], [1], [0, 0, 1, 1], [], []>} : vector<128x4xbf16>, vector<4x128xbf16>, vector<128x128xf32> -> vector<128x128xf32>
    %42 = arith.addf %37, %41 : vector<128x128xf32>
    %43 = vector.shape_cast %13 : vector<8x16x4xf32> to vector<128x4xf32>
    %44 = arith.truncf %43 : vector<128x4xf32> to vector<128x4xbf16>
    %c16 = arith.constant 16 : index
    %c0_17 = arith.constant 0 : index
    %45 = vector.load %arg3[%c16, %c0_17] : memref<36x128xbf16, #tpu.memory_space<vmem>>, vector<4x128xbf16>
    %cst_18 = arith.constant dense<0.000000e+00> : vector<128x128xf32>
    %46 = tpu.matmul %44, %45, %cst_18 {dimension_numbers = #tpu.dot_dimension_numbers<[1], [0], [0], [1], [0, 0, 1, 1], [], []>} : vector<128x4xbf16>, vector<4x128xbf16>, vector<128x128xf32> -> vector<128x128xf32>
    %47 = arith.addf %42, %46 : vector<128x128xf32>
    %48 = vector.shape_cast %14 : vector<8x16x4xf32> to vector<128x4xf32>
    %49 = arith.truncf %48 : vector<128x4xf32> to vector<128x4xbf16>
    %c20 = arith.constant 20 : index
    %c0_19 = arith.constant 0 : index
    %50 = vector.load %arg3[%c20, %c0_19] : memref<36x128xbf16, #tpu.memory_space<vmem>>, vector<4x128xbf16>
    %cst_20 = arith.constant dense<0.000000e+00> : vector<128x128xf32>
    %51 = tpu.matmul %49, %50, %cst_20 {dimension_numbers = #tpu.dot_dimension_numbers<[1], [0], [0], [1], [0, 0, 1, 1], [], []>} : vector<128x4xbf16>, vector<4x128xbf16>, vector<128x128xf32> -> vector<128x128xf32>
    %52 = arith.addf %47, %51 : vector<128x128xf32>
    %53 = vector.shape_cast %19 : vector<8x16x4xf32> to vector<128x4xf32>
    %54 = arith.truncf %53 : vector<128x4xf32> to vector<128x4xbf16>
    %c24 = arith.constant 24 : index
    %c0_21 = arith.constant 0 : index
    %55 = vector.load %arg3[%c24, %c0_21] : memref<36x128xbf16, #tpu.memory_space<vmem>>, vector<4x128xbf16>
    %cst_22 = arith.constant dense<0.000000e+00> : vector<128x128xf32>
    %56 = tpu.matmul %54, %55, %cst_22 {dimension_numbers = #tpu.dot_dimension_numbers<[1], [0], [0], [1], [0, 0, 1, 1], [], []>} : vector<128x4xbf16>, vector<4x128xbf16>, vector<128x128xf32> -> vector<128x128xf32>
    %57 = arith.addf %52, %56 : vector<128x128xf32>
    %58 = vector.shape_cast %20 : vector<8x16x4xf32> to vector<128x4xf32>
    %59 = arith.truncf %58 : vector<128x4xf32> to vector<128x4xbf16>
    %c28 = arith.constant 28 : index
    %c0_23 = arith.constant 0 : index
    %60 = vector.load %arg3[%c28, %c0_23] : memref<36x128xbf16, #tpu.memory_space<vmem>>, vector<4x128xbf16>
    %cst_24 = arith.constant dense<0.000000e+00> : vector<128x128xf32>
    %61 = tpu.matmul %59, %60, %cst_24 {dimension_numbers = #tpu.dot_dimension_numbers<[1], [0], [0], [1], [0, 0, 1, 1], [], []>} : vector<128x4xbf16>, vector<4x128xbf16>, vector<128x128xf32> -> vector<128x128xf32>
    %62 = arith.addf %57, %61 : vector<128x128xf32>
    %63 = vector.shape_cast %21 : vector<8x16x4xf32> to vector<128x4xf32>
    %64 = arith.truncf %63 : vector<128x4xf32> to vector<128x4xbf16>
    %c32 = arith.constant 32 : index
    %c0_25 = arith.constant 0 : index
    %65 = vector.load %arg3[%c32, %c0_25] : memref<36x128xbf16, #tpu.memory_space<vmem>>, vector<4x128xbf16>
    %cst_26 = arith.constant dense<0.000000e+00> : vector<128x128xf32>
    %66 = tpu.matmul %64, %65, %cst_26 {dimension_numbers = #tpu.dot_dimension_numbers<[1], [0], [0], [1], [0, 0, 1, 1], [], []>} : vector<128x4xbf16>, vector<4x128xbf16>, vector<128x128xf32> -> vector<128x128xf32>
    %67 = arith.addf %62, %66 : vector<128x128xf32>
    %c0_27 = arith.constant 0 : index
    %c0_28 = arith.constant 0 : index
    %68 = vector.load %arg4[%c0_27, %c0_28] : memref<1x128xf32, #tpu.memory_space<vmem>>, vector<1x128xf32>
    %69 = vector.broadcast %68 : vector<1x128xf32> to vector<128x128xf32>
    %70 = arith.addf %67, %69 : vector<128x128xf32>
    %cst_29 = arith.constant dense<0.000000e+00> : vector<128xf32>
    %71 = vector.multi_reduction <add>, %70, %cst_29 [1] : vector<128x128xf32> to vector<128xf32>
    %72 = vector.shape_cast %71 : vector<128xf32> to vector<128x1xf32>
    %cst_30 = arith.constant 2.500000e-01 : f32
    %73 = vector.broadcast %cst_30 : f32 to vector<128x1xf32>
    %74 = arith.mulf %72, %73 : vector<128x1xf32>
    %75 = vector.broadcast %74 : vector<128x1xf32> to vector<128x128xf32>
    %76 = arith.subf %70, %75 : vector<128x128xf32>
    %77 = tpu.iota {dimensions = array<i32: 1>} : vector<128x128xi32>
    %c4_i32 = arith.constant 4 : i32
    %78 = vector.broadcast %c4_i32 : i32 to vector<128x128xi32>
    %79 = arith.cmpi slt, %77, %78 : vector<128x128xi32>
    %cst_31 = arith.constant 0.000000e+00 : f32
    %80 = vector.broadcast %cst_31 : f32 to vector<128x128xf32>
    %81 = arith.select %79, %76, %80 : vector<128x128xi1>, vector<128x128xf32>
    %82 = arith.mulf %81, %81 : vector<128x128xf32>
    %cst_32 = arith.constant dense<0.000000e+00> : vector<128xf32>
    %83 = vector.multi_reduction <add>, %82, %cst_32 [1] : vector<128x128xf32> to vector<128xf32>
    %84 = vector.shape_cast %83 : vector<128xf32> to vector<128x1xf32>
    %cst_33 = arith.constant 2.500000e-01 : f32
    %85 = vector.broadcast %cst_33 : f32 to vector<128x1xf32>
    %86 = arith.mulf %84, %85 : vector<128x1xf32>
    %cst_34 = arith.constant 9.99999974E-6 : f32
    %87 = vector.broadcast %cst_34 : f32 to vector<128x1xf32>
    %88 = arith.addf %86, %87 : vector<128x1xf32>
    %89 = math.rsqrt %88 : vector<128x1xf32>
    %90 = vector.broadcast %89 : vector<128x1xf32> to vector<128x128xf32>
    %91 = arith.mulf %81, %90 : vector<128x128xf32>
    %cst_35 = arith.constant 5.000000e-01 : f32
    %92 = vector.broadcast %cst_35 : f32 to vector<128x128xf32>
    %93 = arith.mulf %92, %91 : vector<128x128xf32>
    %cst_36 = arith.constant 0.707106769 : f32
    %94 = vector.broadcast %cst_36 : f32 to vector<128x128xf32>
    %95 = arith.mulf %91, %94 : vector<128x128xf32>
    %96 = math.erf %95 : vector<128x128xf32>
    %cst_37 = arith.constant 1.000000e+00 : f32
    %97 = vector.broadcast %cst_37 : f32 to vector<128x128xf32>
    %98 = arith.addf %97, %96 : vector<128x128xf32>
    %99 = arith.mulf %93, %98 : vector<128x128xf32>
    %c0_38 = arith.constant 0 : index
    %c0_39 = arith.constant 0 : index
    %c0_40 = arith.constant 0 : index
    %100 = vector.load %arg5[%c0_38, %c0_39, %c0_40] : memref<1x128x128xf32, #tpu.memory_space<vmem>>, vector<1x128x128xf32>
    %101 = vector.shape_cast %100 : vector<1x128x128xf32> to vector<128x128xf32>
    %102 = vector.shape_cast %99 : vector<128x128xf32> to vector<1x128x128xf32>
    tpu.vector_store %arg5[%c0_38, %c0_39, %c0_40], %102 {strides = array<i32>} : memref<1x128x128xf32, #tpu.memory_space<vmem>>, vector<1x128x128xf32>,
    %103 = vector.shape_cast %13 : vector<8x16x4xf32> to vector<128x4xf32>
    %104 = vector.extract_strided_slice %99 {offsets = [0, 0], sizes = [128, 4], strides = [1, 1]} : vector<128x128xf32> to vector<128x4xf32>
    %105 = arith.addf %104, %103 : vector<128x4xf32>
    %c0_41 = arith.constant 0 : index
    %c0_42 = arith.constant 0 : index
    %c0_43 = arith.constant 0 : index
    %106 = vector.load %arg5[%c0_41, %c0_42, %c0_43] : memref<1x128x128xf32, #tpu.memory_space<vmem>>, vector<1x128x4xf32>
    %107 = vector.shape_cast %106 : vector<1x128x4xf32> to vector<128x4xf32>
    %108 = vector.shape_cast %105 : vector<128x4xf32> to vector<1x128x4xf32>
    tpu.vector_store %arg5[%c0_41, %c0_42, %c0_43], %108 {strides = array<i32>} : memref<1x128x128xf32, #tpu.memory_space<vmem>>, vector<1x128x4xf32>,
    return
  }
  func.func @transform_0(%arg0: i32, %arg1: i32) -> (i32, i32, i32, i32) {
    %c0_i32 = arith.constant 0 : i32
    %c0_i32_0 = arith.constant 0 : i32
    %c0_i32_1 = arith.constant 0 : i32
    %c0_i32_2 = arith.constant 0 : i32
    return %arg0, %c0_i32, %c0_i32_0, %c0_i32_1 : i32, i32, i32, i32
  }
  func.func @transform_1(%arg0: i32, %arg1: i32) -> (i32, i32) {
    %c0_i32 = arith.constant 0 : i32
    %c0_i32_0 = arith.constant 0 : i32
    %c0_i32_1 = arith.constant 0 : i32
    return %c0_i32, %c0_i32_0 : i32, i32
  }
  func.func @transform_2(%arg0: i32, %arg1: i32) -> (i32, i32) {
    %c0_i32 = arith.constant 0 : i32
    %c0_i32_0 = arith.constant 0 : i32
    %c0_i32_1 = arith.constant 0 : i32
    return %c0_i32, %c0_i32_0 : i32, i32
  }
  func.func @transform_3(%arg0: i32, %arg1: i32) -> (i32, i32, i32) {
    %c0_i32 = arith.constant 0 : i32
    %c0_i32_0 = arith.constant 0 : i32
    return %arg0, %arg1, %c0_i32 : i32, i32, i32
  }
}

</mosaic_0001>

<bundles_post_ra>
// kernel: tpu_custom_call.1
= control target key start
LH: loop header
LB: loop body
LE: loop exit
PB: predicated region body
PF: predicated region fallthrough
CT: control target
= control target key end

     0   :  { %8 = vsyncpa [#allocation3], 0  ;;  %s3466_s0 = inlined_call_operand.vmem [shape: f32[2,18,24,4], index: 0, kind: input, shape index: {}]   ;;  %s3467_s1 = inlined_call_operand.vmem [shape: bf16[36,128], index: 1, kind: input, shape index: {}]   ;;  %s3468_s2 = inlined_call_operand.vmem [shape: f32[1,128], index: 2, kind: input, shape index: {}]   ;;  %s3469_s3 = inlined_call_operand.hbm [shape: f32[2,256,128], index: 3, kind: output, shape index: {}]  }
   0x1   :  { %10 = vsyncpa [#allocation3 + $0x1], 0  ;;  %s2416_s12 = smov 0   ;;  %s2418_s13 = smov 0  }
   0x2   :  { %s2420_s14 = smov 0   ;;  %s2422_s15 = smov 0  }
   0x3   :  { %s2424_s16 = smov 0   ;;  %s2426_s17 = smov 0  }
   0x4   :  { %s2428_s18 = smov 0   ;;  %s2430_s19 = smov 0  }
   0x5 LB: > { %s1702_s20 = sadd.s32 4294967295, %s2384_s19   ;;  %s1703_s21 = sadd.s32 4294967294, %s2384_s19   ;;  %s2384_s19 = sphi %s2430_s19, %s16_s19   ;;  %s2380_s18 = sphi %s2428_s18, %s3489_s18   ;;  %s2376_s17 = sphi %s2426_s17, %s3488_s17   ;;  %s2372_s16 = sphi %s2424_s16, %s3487_s16   ;;  %s2368_s15 = sphi %s2422_s15, %s3486_s15   ;;  %s2364_s14 = sphi %s2420_s14, %s3485_s14   ;;  %s2360_s13 = sphi %s2418_s13, %s3484_s13   ;;  %s2356_s12 = sphi %s2416_s12, %s3483_s12  }
   0x6   : > { %s25_s22 = sadd.s32 1, %s2376_s17  ;;  %s28_s23 = sadd.s32 1, %s2380_s18 }
   0x7   : > { %p26_p0 = scmp.ge.s32.totalorder %s25_s22, 2  ;;  %p115_p1 = scmp.ne.s32.totalorder %s2364_s14, %s2360_s13 }
   0x8   : > { %p116_p2 = scmp.eq.s32.totalorder %s1702_s20, 3  ;;  %p121_p5 = scmp.ne.s32.totalorder %s2360_s13, %s2356_s12 }
   0x9   : > { %s3491_s22 = smov (%p26_p0, %s25_s22), 0  ;;  %s3493_s23 = smov (!%p26_p0, %s28_s23), %s2380_s18 }
   0xa   : > { %s101_s24 = ssub.s32 %s2376_s17, %s3491_s22  ;;  %p2467_p3 = por %p116_p2, %p115_p1 }
   0xb   : > { %p30_p4 = scmp.ge.s32.totalorder %s3493_s23, 2  ;;  %p122_p6 = scmp.eq.s32.totalorder %s1703_s21, 3 }
   0xc   : > { %p1706_p7 = scmp.ge.s32.totalorder %s2384_s19, 1  ;;  %p154_p9 = scmp.lt.s32.totalorder %s2384_s19, 5 }
   0xd   : > { %s3495_s23 = smov (%p30_p4, %s3493_s23), 0  ;;  %p2476_p8 = por %p122_p6, %p121_p5 }
   0xe   : > { %s100_s27 = ssub.s32 %s2380_s18, %s3495_s23  ;;  %s105_s28 = sadd.s32 1, %s2364_s14 }
   0xf   : > { %s102_s29 = sor.u32 %s101_s24, %s100_s27  ;;  %p155_p10 = pnand %p1706_p7, %p154_p9 }
  0x10   : > { %p103_p11 = scmp.eq.s32.totalorder %s102_s29, 0 }
  0x11   : > { %158 = sbr.rel (%p155_p10) target bundleno = 854 (0x356), region = 32 }
  0x12   : > { %s2485_s30 = scalar_select %p103_p11, %s2364_s14, %s105_s28  }
  0x18   : > { %p178_p12 = scmp.lt.s32.totalorder %s2372_s16, 1  ;;  %s1710_s5 = smul.u32 192, %s2368_s15  ;;  %vm290_vm0 = vcmask 1046528   ;;  %vm379_vm1 = vcmask 1045504   ;;  %vm1160_vm2 = vcmask 1041408   ;;  %vm964_vm3 = vcmask 31744  }
  0x19   : > { %s2386_s11 = smov 4   ;;  %s2387_s20 = smov 8   ;;  %vm981_vm4 = vcmask 64512   ;;  %vm998_vm5 = vcmask 97280   ;;  %vm1015_vm6 = vcmask 130048   ;;  %vm1032_vm7 = vcmask 162816  }
  0x1a   : > { %s179_s4 = scalar_select %p178_p12, %s2372_s16, 1  ;;  %vm1049_vm8 = vcmask 195584   ;;  %vm1066_vm9 = vcmask 228352   ;;  %vm1083_vm10 = vcmask 261120   ;;  %vm1135_vm11 = vcmask 293888  }
  0x1b   : > { %s2388_s21 = smov 12   ;;  %s2389_s24 = smov 16  }
  0x1c   : > { %s1822_s6 = smul.u32 432, %s179_s4  ;;  %s2390_s27 = smov 20  }
  0x1d   : > { %s2391_s28 = smov 24   ;;  %s1776_s29 = sshll.u32 %s2368_s15, 4 }
  0x1e   : > { %s182_s9 = scalar_lea.vmem %s3466_s0, %s1822_s6  ;;  %s1777_s4 = sshll.u32 %s2372_s16, 5 }
  0x1f   : > { %s2493_s10 = scalar_lea.vmem %s182_s9, %s1710_s5  ;;  %s2392_s5 = smov 28  }
  0x20   : > { %v2496_v0 = vld [vmem:[%s2493_s10 + $0x18] sm:$0xff]  ;;  %v2499_v1 = vld [vmem:[%s2493_s10 + $0x20] sm:$0xff]  ;;  %v2502_v2 = vld [vmem:[%s2493_s10 + $0x28] sm:$0xff] }
  0x21   : > { %v296_v3 = vrot.slane %v2496_v0, 1  ;;  %v297_v4 = vrot.slane %v2499_v1, 1  ;;  %v299_v5 = vrot.slane %v2502_v2, 1  ;;  %v388_v6 = vrot.slane %v2502_v2, 2  ;;  %v2509_v7 = vld [vmem:[%s2493_s10] sm:$0xff]  ;;  %v2512_v8 = vld [vmem:[%s2493_s10 + $0x8] sm:$0xff] }
  0x22   : > { %v190_v9 = vld [vmem:[%s2493_s10 + $0x10] sm:$0xff]  ;;  %v291_v10 = vrot.slane %v2509_v7, 1  ;;  %v292_v11 = vrot.slane %v2512_v8, 1  ;;  %v2518_v12 = vld [vmem:[%s2493_s10 + $0x78] sm:$0xff]  ;;  %v2521_v13 = vld [vmem:[%s2493_s10 + $0x80] sm:$0xff]  ;;  %v380_v14 = vrot.slane %v2509_v7, 2  ;;  %v1938_v2 = vpack.i.bf16 %v2499_v1, %v2496_v0 }
  0x23   : > { %v2525_v15 = vsel %vm290_vm0, %v296_v3, %v297_v4  ;;  %v2528_v16 = vsel %vm290_vm0, %v297_v4, %v299_v5  ;;  %v294_v17 = vrot.slane %v190_v9, 1  ;;  %v383_v18 = vrot.slane %v190_v9, 2  ;;  %v205_v19 = vld [vmem:[%s2493_s10 + $0x88] sm:$0xff]  ;;  %v2532_v20 = vld [vmem:[%s2493_s10 + $0x60] sm:$0xff]  ;;  %v202_v26 = vld [vmem:[%s2493_s10 + $0x70] sm:$0xff] }
  0x24   : > { %v2535_v21 = vld [vmem:[%s2493_s10 + $0x68] sm:$0xff]  ;;  %v2539_v22 = vpack.i.bf16 %v2528_v16, %v2525_v15  ;;  %v293_v23 = vsel %vm290_vm0, %v291_v10, %v292_v11  ;;  %v316_v24 = vrot.slane %v2518_v12, 1  ;;  %v317_v25 = vrot.slane %v2521_v13, 1  ;;  %v2606_v61 = vld [vmem:[%s2493_s10 + $0x90] sm:$0xff]  ;;  %v2609_v62 = vld [vmem:[%s2493_s10 + $0x98] sm:$0xff] }
  0x25   : > { %v295_v27 = vsel %vm290_vm0, %v292_v11, %v294_v17  ;;  %v319_v28 = vrot.slane %v205_v19, 1  ;;  %v311_v29 = vrot.slane %v2532_v20, 1  ;;  %v312_v30 = vrot.slane %v2535_v21, 1  ;;  %v2612_v63 = vld [vmem:[%s2493_s10 + $0xa0] sm:$0xff]  ;;  %v2622_v4 = vld [vmem:[%s2493_s10 + $0x30] sm:$0xff]  ;;  %v2625_v5 = vld [vmem:[%s2493_s10 + $0x38] sm:$0xff] }
  0x26   : > { %1914 = vrot.lane.b32.xlu1 %v2539_v22, %s2386_s11  ;;  %v1903_v31 = vpack.i.bf16 %v295_v27, %v293_v23  ;;  %v2551_v32 = vsel %vm290_vm0, %v316_v24, %v317_v25  ;;  %v314_v33 = vrot.slane %v202_v26, 1  ;;  %v400_v34 = vrot.slane %v2532_v20, 2  ;;  %v2619_v3 = vld [vmem:[%s2493_s10 + $0x40] sm:$0xff]  ;;  %v2645_v23 = vld [vmem:[%s2493_s10 + $0xc8] sm:$0xff] }
  0x27   : > { %v2555_v35 = vsel %vm290_vm0, %v317_v25, %v319_v28  ;;  %v2558_v36 = vsel %vm290_vm0, %v311_v29, %v312_v30  ;;  %v401_v37 = vrot.slane %v2535_v21, 2  ;;  %v403_v38 = vrot.slane %v202_v26, 2  ;;  %v1736_v25 = vld [vmem:[%s2493_s10 + $0xd0] sm:$0xff]  ;;  %v2659_v29 = vld [vmem:[%s2493_s10 + $0xc0] sm:$0xff] }
  0x28   : > { %1904 = vrot.lane.b32.xlu0 %v1903_v31, %s2386_s11  ;;  %v2564_v39 = vpack.i.bf16 %v2555_v35, %v2551_v32  ;;  %v2567_v40 = vsel %vm290_vm0, %v312_v30, %v314_v33  ;;  %v381_v41 = vrot.slane %v2512_v8, 2  ;;  %v405_v42 = vrot.slane %v2518_v12, 2 }
  0x29   : > { %v2573_v43 = vpack.i.bf16 %v2567_v40, %v2558_v36  ;;  %v402_v44 = vsel %vm379_vm1, %v400_v34, %v401_v37  ;;  %v404_v45 = vsel %vm379_vm1, %v401_v37, %v403_v38  ;;  %v406_v46 = vrot.slane %v2521_v13, 2  ;;  %v2671_v38 = vld [vmem:[%s2493_s10 + $0xe0] sm:$0xff] }
  0x2a   : > { %1919 = vrot.lane.b32.xlu1 %v2564_v39, %s2386_s11  ;;  %v2580_v47 = vpack.i.bf16 %v404_v45, %v402_v44  ;;  %v382_v48 = vsel %vm379_vm1, %v380_v14, %v381_v41  ;;  %v384_v49 = vsel %vm379_vm1, %v381_v41, %v383_v18  ;;  %v408_v50 = vrot.slane %v205_v19, 2  ;;  %v1762_v41 = vld [vmem:[%s2493_s10 + $0xe8] sm:$0xff]  ;;  %v2677_v45 = vld [vmem:[%s2493_s10 + $0xd8] sm:$0xff] }
  0x2b   : > { %v407_v51 = vsel %vm379_vm1, %v405_v42, %v406_v46  ;;  %v385_v52 = vrot.slane %v2496_v0, 2  ;;  %v386_v53 = vrot.slane %v2499_v1, 2  ;;  %v1923_v54 = vpack.i.bf16 %v384_v49, %v382_v48 }
  0x2c   : > { %1909 = vrot.lane.b32.xlu0 %v2573_v43, %s2386_s11  ;;  %v409_v55 = vsel %vm379_vm1, %v406_v46, %v408_v50  ;;  %v2603_v60 = vpack.i.bf16 %v2521_v13, %v2518_v12  ;;  %v2632_v9 = vpack.i.bf16 %v2609_v62, %v2606_v61  ;;  %v565_v10 = vrot.slane %v2606_v61, 1 }
  0x2d   : > { %v387_v56 = vsel %vm379_vm1, %v385_v52, %v386_v53  ;;  %v389_v57 = vsel %vm379_vm1, %v386_v53, %v388_v6  ;;  %v2594_v58 = vpack.i.bf16 %v409_v55, %v407_v51  ;;  %v566_v6 = vrot.slane %v2609_v62, 1 }
  0x2e   : > { %1929 = vrot.lane.b32.xlu1 %v2580_v47, %s2387_s20  ;;  %v2597_v59 = vpack.i.bf16 %v389_v57, %v387_v56  ;;  %v568_v11 = vrot.slane %v2612_v63, 1  ;;  %v546_v14 = vrot.slane %v2625_v5, 1  ;;  %v545_v17 = vrot.slane %v2622_v4, 1 }
  0x2f   : > { %v548_v18 = vrot.slane %v2619_v3, 1  ;;  %v2642_v19 = vpack.i.bf16 %v2625_v5, %v2622_v4  ;;  %v576_v24 = vrot.slane %v2645_v23, 1  ;;  %v654_v26 = vrot.slane %v2609_v62, 2 }
  0x30   : > { %1924 = vrot.lane.b32.xlu0 %v1923_v54, %s2387_s20  ;;  %v2653_v27 = vsel %vm290_vm0, %v565_v10, %v566_v6  ;;  %v2656_v28 = vsel %vm290_vm0, %v566_v6, %v568_v11  ;;  %v664_v30 = vrot.slane %v2645_v23, 2  ;;  %v2663_v31 = vsel %vm290_vm0, %v545_v17, %v546_v14 }
  0x31   : > { %v2666_v33 = vsel %vm290_vm0, %v546_v14, %v548_v18  ;;  %v575_v34 = vrot.slane %v2659_v29, 1  ;;  %v663_v37 = vrot.slane %v2659_v29, 2  ;;  %v578_v42 = vrot.slane %v1736_v25, 1 }
  0x32   : > { %1944 = vrot.lane.b32.xlu1 %v2594_v58, %s2387_s20  ;;  %v666_v44 = vrot.slane %v1736_v25, 2  ;;  %v824_v46 = vrot.slane %v2671_v38, 1  ;;  %v912_v48 = vrot.slane %v2671_v38, 2  ;;  %v2683_v49 = vpack.i.bf16 %v2656_v28, %v2653_v27 }
  0x33   : > { %v2686_v50 = vsel %vm290_vm0, %v575_v34, %v576_v24  ;;  %v665_v51 = vsel %vm379_vm1, %v663_v37, %v664_v30  ;;  %v823_v52 = vrot.slane %v2677_v45, 1  ;;  %v2693_v53 = vsel %vm290_vm0, %v576_v24, %v578_v42 }
  0x34   : > { %1934 = vrot.lane.b32.xlu0 %v2597_v59, %s2387_s20  ;;  %v667_v54 = vsel %vm379_vm1, %v664_v30, %v666_v44  ;;  %v911_v55 = vrot.slane %v2677_v45, 2  ;;  %v826_v56 = vrot.slane %v1762_v41, 1  ;;  %v653_v57 = vrot.slane %v2606_v61, 2 }
  0x35   : > { %v2699_v6 = vpack.i.bf16 %v667_v54, %v665_v51  ;;  %v2702_v10 = vsel %vm290_vm0, %v823_v52, %v824_v46  ;;  %v2708_v11 = vpack.i.bf16 %v2666_v33, %v2663_v31  ;;  %v914_v18 = vrot.slane %v1762_v41, 2  ;;  %v1756_v51 = vld [vmem:[%s2493_s10 + $0xb8] sm:$0xff]  ;;  %v2754_v52 = vld [vmem:[%s2493_s10 + $0x48] sm:$0xff]  ;;  %v2757_v54 = vld [vmem:[%s2493_s10 + $0x50] sm:$0xff] }
  0x36   : > { %1949 = vrot.lane.b32.xlu1 %v2603_v60, %s2388_s21  ;;  %v2711_v14 = vsel %vm290_vm0, %v824_v46, %v826_v56  ;;  %v2714_v17 = vsel %vm379_vm1, %v911_v55, %v912_v48  ;;  %v633_v24 = vrot.slane %v2622_v4, 2  ;;  %v636_v25 = vrot.slane %v2619_v3, 2  ;;  %v2745_v46 = vld [vmem:[%s2493_s10 + $0xa8] sm:$0xff]  ;;  %v1744_v55 = vld [vmem:[%s2493_s10 + $0x58] sm:$0xff] }
  0x37   : > { %v2724_v30 = vsel %vm379_vm1, %v912_v48, %v914_v18  ;;  %v655_v34 = vsel %vm379_vm1, %v653_v57, %v654_v26  ;;  %v2748_v48 = vld [vmem:[%s2493_s10 + $0xb0] sm:$0xff]  ;;  %v813_v57 = vrot.slane %v2745_v46, 1  ;;  %v2013_v18 = vpack.i.bf16 %v2757_v54, %v2754_v52  ;;  %s2393_s10 = smov 32  }
  0x38   : > { %1939 = vrot.lane.b32.xlu0 %v1938_v2, %s2388_s21  ;;  %v656_v2 = vrot.slane %v2612_v63, 2  ;;  %v634_v63 = vrot.slane %v2625_v5, 2  ;;  %v814_v56 = vrot.slane %v2748_v48, 1  ;;  %v882_v3 = vrot.slane %v2757_v54, 2 }
  0x3a   : > { %1959 = vrot.lane.b32.xlu1 %v2632_v9, %s2388_s21  ;;  %v657_v37 = vsel %vm379_vm1, %v654_v26, %v656_v2  ;;  %v635_v41 = vsel %vm379_vm1, %v633_v24, %v634_v63  ;;  %v637_v42 = vsel %vm379_vm1, %v634_v63, %v636_v25  ;;  %v816_v2 = vrot.slane %v1756_v51, 1  ;;  %v2223_v25 = vld [vmem:[%s3467_s1] sm:$0xff]  }
  0x3b   : > { %v2736_v44 = vpack.i.bf16 %v657_v37, %v655_v34  ;;  %v2740_v26 = vpack.i.bf16 %v637_v42, %v635_v41  ;;  %v794_v63 = vrot.slane %v2757_v54, 1  ;;  %v796_v24 = vrot.slane %v1744_v55, 1  ;;  %1792 = vmatprep.subr.bf16.mxu0 %v2223_v25  ;;  %1814 = vmatprep.subr.bf16.mxu1 %v2223_v25 }
  0x3c   : > { %1954 = vrot.lane.b32.xlu0 %v2642_v19, %s2388_s21  ;;  %v2780_v34 = vsel %vm290_vm0, %v813_v57, %v814_v56  ;;  %1793 = vmatpush3.bf16.msra.mxu0 %v2223_v25 }
  0x3d   : > { %3475 = vst [vmem:[#allocation5_spill] sm:$0xff] %v2780_v34  ;;  %v2790_v41 = vsel %vm290_vm0, %v794_v63, %v796_v24  ;;  %1817 = vmatpush3.bf16.msra.mxu1 %v2223_v25  ;;  %v904_v24 = vrot.slane %v1756_v51, 2 }
  0x3e   : > { %1969 = vrot.lane.b32.xlu1 %v2564_v39, %s2389_s24  ;;  %3477 = vst [vmem:[#allocation7_spill] sm:$0xff] %v2790_v41 }
  0x40   : > { %1964 = vrot.lane.b32.xlu0 %v2539_v22, %s2389_s24  ;;  %v881_v22 = vrot.slane %v2754_v52, 2 }
  0x42   : > { %1979 = vrot.lane.b32.xlu1 %v2683_v49, %s2389_s24 }
  0x44   : > { %1974 = vrot.lane.b32.xlu0 %v2708_v11, %s2389_s24 }
  0x46   : > { %1989 = vrot.lane.b32.xlu1 %v2594_v58, %s2390_s27 }
  0x48   : > { %1984 = vrot.lane.b32.xlu0 %v2597_v59, %s2390_s27  ;;  %v2763_v59 = vpack.i.bf16 %v2748_v48, %v2745_v46 }
  0x4a   : > { %1999 = vrot.lane.b32.xlu1 %v2736_v44, %s2390_s27 }
  0x4c   : > { %1994 = vrot.lane.b32.xlu0 %v2740_v26, %s2390_s27 }
  0x4e   : > { %2009 = vrot.lane.b32.xlu1 %v2632_v9, %s2391_s28  ;;  %v793_v9 = vrot.slane %v2754_v52, 1 }
  0x50   : > { %2004 = vrot.lane.b32.xlu0 %v2642_v19, %s2391_s28  ;;  %v2783_v19 = vsel %vm290_vm0, %v814_v56, %v816_v2  ;;  %v2787_v37 = vsel %vm290_vm0, %v793_v9, %v794_v63  ;;  %v2224_v56 = vld [vmem:[%s3467_s1 + $0x8] sm:$0xff]   ;;  %v2225_v2 = vld [vmem:[%s3467_s1 + $0x10] ss:$0 sps:$4 sm:$0x33]   ;;  %v902_v63 = vrot.slane %v2748_v48, 2  ;;  %v901_v9 = vrot.slane %v2745_v46, 2 }
  0x51   : > { %3476 = vst [vmem:[#allocation6_spill] sm:$0xff] %v2783_v19  ;;  %v2038_v42 = vpack.i.bf16 %v2783_v19, %v2780_v34  ;;  %v2033_v57 = vpack.i.bf16 %v2790_v41, %v2787_v37  ;;  %1794 = vmatprep.subr.bf16.mxu0 %v2224_v56  ;;  %1815 = vmatprep.subr.bf16.mxu1 %v2224_v56  ;;  %v1162_v25 = vsel %vm1160_vm2, %v2225_v2, 0  ;;  %v884_v19 = vrot.slane %v1744_v55, 2 }
  0x52   : > { %2019 = vrot.lane.b32.xlu1 %v2763_v59, %s2391_s28  ;;  %1795 = vmatpush3.bf16.msra.mxu0 %v2224_v56  ;;  %v905_v51 = vsel %vm379_vm1, %v902_v63, %v904_v24  ;;  %v883_v34 = vsel %vm379_vm1, %v881_v22, %v882_v3  ;;  %v2138_v22 = vpack.i.bf16 %v2693_v53, %v2686_v50 }
  0x53   : > { %1818 = vmatpush3.bf16.msra.mxu1 %v2224_v56  ;;  %1820 = vmatprep.subr.msk.bf16.mxu0 %vm1160_vm2, %v2225_v2  ;;  %v903_v56 = vsel %vm379_vm1, %v901_v9, %v902_v63  ;;  %v885_v41 = vsel %vm379_vm1, %v882_v3, %v884_v19 }
  0x54   : > { %2014 = vrot.lane.b32.xlu0 %v2013_v18, %s2391_s28  ;;  %1821 = vmatprep.subr.msk.bf16.mxu1 %vm1160_vm2, %v2225_v2  ;;  %v2068_v55 = vpack.i.bf16 %v905_v51, %v903_v56  ;;  %v2063_v2 = vpack.i.bf16 %v885_v41, %v883_v34 }
  0x56   : > { %2029 = vrot.lane.b32.xlu1 %v2683_v49, %s2392_s5  ;;  %1797 = vmatpush3.bf16.msra.mxu0 %v1162_v25 }
  0x57   : > { %1819 = vmatpush3.bf16.msra.mxu1 %v1162_v25 }
  0x58   : > { %2024 = vrot.lane.b32.xlu0 %v2708_v11, %s2392_s5 }
  0x5a   : > { %2039 = vrot.lane.b32.xlu1 %v2038_v42, %s2392_s5 }
  0x5c   : > { %2034 = vrot.lane.b32.xlu0 %v2033_v57, %s2392_s5 }
  0x5e   : > { %2049 = vrot.lane.b32.xlu1 %v2736_v44, %s2393_s10 }
  0x60   : > { %2044 = vrot.lane.b32.xlu0 %v2740_v26, %s2393_s10 }
  0x62   : > { %2059 = vrot.lane.b32.xlu1 %v2683_v49, %s2386_s11  ;;  %v2118_v49 = vpack.i.bf16 %v2645_v23, %v2659_v29  ;;  %v2178_v23 = vpack.i.bf16 %v2671_v38, %v2677_v45 }
  0x64   : > { %2054 = vrot.lane.b32.xlu0 %v2708_v11, %s2386_s11  ;;  %v2113_v11 = vpack.i.bf16 %v2535_v21, %v2532_v20 }
  0x66   : > { %2069 = vrot.lane.b32.xlu1 %v2068_v55, %s2393_s10 }
  0x68   : > { %2064 = vrot.lane.b32.xlu0 %v2063_v2, %s2393_s10 }
  0x6a   : > { %2079 = vrot.lane.b32.xlu1 %v2038_v42, %s2386_s11 }
  0x6c   : > { %2074 = vrot.lane.b32.xlu0 %v2033_v57, %s2386_s11  ;;  %s2394_s11 = smov [#allocation2]  }
  0x6e   : > { %2089 = vrot.lane.b32.xlu1 %v2736_v44, %s2387_s20  ;;  %v3478_v44 = vpack.i.bf16 %v2711_v14, %v2702_v10 }
  0x70   : > { %2084 = vrot.lane.b32.xlu0 %v2740_v26, %s2387_s20  ;;  %v3479_v26 = vpack.i.bf16 %v2724_v30, %v2714_v17 }
  0x72   : > { %2099 = vrot.lane.b32.xlu1 %v2068_v55, %s2387_s20 }
  0x74   : > { %2094 = vrot.lane.b32.xlu0 %v2063_v2, %s2387_s20 }
  0x76   : > { %2109 = vrot.lane.b32.xlu1 %v2763_v59, %s2388_s21 }
  0x78   : > { %2104 = vrot.lane.b32.xlu0 %v2013_v18, %s2388_s21 }
  0x7a   : > { %2119 = vrot.lane.b32.xlu1 %v2118_v49, %s2388_s21 }
  0x7c   : > { %2114 = vrot.lane.b32.xlu0 %v2113_v11, %s2388_s21  ;;  %s2294_s21 = sshll.u32 %s2394_s11, 4  ;;  %s2295_s21 = int_to_ptr.vmem [resolvable:$false] %s2294_s21 }
  0x7e   : > { %2129 = vrot.lane.b32.xlu1 %v2038_v42, %s2389_s24 }
  0x80   : > { %2124 = vrot.lane.b32.xlu0 %v2033_v57, %s2389_s24 }
  0x82   : > { %2139 = vrot.lane.b32.xlu1 %v2138_v22, %s2389_s24 }
  0x84   : > { %2134 = vrot.lane.b32.xlu0 %v2573_v43, %s2389_s24  ;;  %s175_s24 = sand.u32 1, %s2360_s13  }
  0x85   : > { %s3413_s9 = scalar_lea.sflag [#allocation3], %s175_s24 }
  0x86   : > { %2149 = vrot.lane.b32.xlu1 %v2068_v55, %s2390_s27 }
  0x88   : > { %2144 = vrot.lane.b32.xlu0 %v2063_v2, %s2390_s27 }
  0x8a   : > { %2159 = vrot.lane.b32.xlu1 %v2699_v6, %s2390_s27 }
  0x8c   : > { %2154 = vrot.lane.b32.xlu0 %v2580_v47, %s2390_s27  ;;  %s1707_s27 = sshll.u32 %s175_s24, 7 }
  0x8e   : > { %2169 = vrot.lane.b32.xlu1 %v2118_v49, %s2391_s28 }
  0x90   : > { %2164 = vrot.lane.b32.xlu0 %v2113_v11, %s2391_s28 }
  0x92   : > { %2179 = vrot.lane.b32.xlu1 %v2178_v23, %s2391_s28 }
  0x94   : > { %2174 = vrot.lane.b32.xlu0 %v2603_v60, %s2391_s28  ;;  %s3326_s28 = scalar_lea.vmem [#allocation2], %s1707_s27  ;;  %s2296_s27 = scalar_lea.vmem %s2295_s21, 4096 }
  0x95   : > { %s1616_s16 = sshll.u32 %s3326_s28, 4  ;;  %s3407_s16 = int_to_ptr.vmem [resolvable:$true] %s1616_s16 }
  0x96   : > { %2189 = vrot.lane.b32.xlu1 %v2138_v22, %s2392_s5  ;;  %p2297_p2 = scmp.lt.s32.totalorder %s3407_s16, %s2295_s21 }
  0x98   : > { %2184 = vrot.lane.b32.xlu0 %v2573_v43, %s2392_s5  ;;  %v1915_v29 = vpop.permute.xlu1 %1914 }
  0x99   : > { %v1917_v41 = vunpack.i.h.bf16 %v1915_v29  ;;  %v1916_v42 = vunpack.i.l.bf16 %v1915_v29 }
  0x9a   : > { %v1905_v3 = vpop.permute.xlu0 %1904  ;;  %2199 = vrot.lane.b32.xlu1 %v3478_v44, %s2392_s5 }
  0x9b   : > { %v1907_v56 = vunpack.i.h.bf16 %v1905_v3  ;;  %v1906_v51 = vunpack.i.l.bf16 %v1905_v3  ;;  %v968_v11 = vsel %vm964_vm3, %v2499_v1, %v1917_v41  ;;  %v967_v22 = vsel %vm964_vm3, %v2496_v0, %v1916_v42 }
  0x9c   : > { %2194 = vrot.lane.b32.xlu0 %v2564_v39, %s2392_s5  ;;  %v1920_v38 = vpop.permute.xlu1 %1919  ;;  %s1613_s5 = sadd.s32 %s1777_s4, %s1776_s29 }
  0x9d   : > { %v1922_v57 = vunpack.i.h.bf16 %v1920_v38  ;;  %v1921_v63 = vunpack.i.l.bf16 %v1920_v38  ;;  %s1778_s15 = sshll.u32 %s1613_s5, 7 }
  0x9e   : > { %v1910_v45 = vpop.permute.xlu0 %1909  ;;  %2209 = vrot.lane.b32.xlu1 %v2699_v6, %s2393_s10  ;;  %s3401_s8 = scalar_lea.hbm %s3469_s3, %s1778_s15 }
  0x9f   : > { %v1912_v24 = vunpack.i.h.bf16 %v1910_v45  ;;  %v1911_v25 = vunpack.i.l.bf16 %v1910_v45  ;;  %v976_v44 = vsel %vm964_vm3, %v2521_v13, %v1922_v57  ;;  %v975_v38 = vsel %vm964_vm3, %v2518_v12, %v1921_v63 }
  0xa0   : > { %2204 = vrot.lane.b32.xlu0 %v2580_v47, %s2393_s10  ;;  %v1930_v60 = vpop.permute.xlu1 %1929  ;;  %v965_v13 = vsel %vm964_vm3, %v2509_v7, %v1906_v51 }
  0xa1   : > { %v1932_v55 = vunpack.i.h.bf16 %v1930_v60  ;;  %v1931_v2 = vunpack.i.l.bf16 %v1930_v60  ;;  %v973_v1 = vsel %vm964_vm3, %v2532_v20, %v1911_v25 }
  0xa2   : > { %v1925_v43 = vpop.permute.xlu0 %1924  ;;  %2219 = vrot.lane.b32.xlu1 %v3479_v26, %s2393_s10  ;;  %v974_v26 = vsel %vm964_vm3, %v2535_v21, %v1912_v24 }
  0xa3   : > { %v1927_v23 = vunpack.i.h.bf16 %v1925_v43  ;;  %v1926_v29 = vunpack.i.l.bf16 %v1925_v43  ;;  %v966_v43 = vsel %vm964_vm3, %v2512_v8, %v1907_v56  ;;  %v990_v12 = vsel %vm981_vm4, %v973_v1, %v1931_v2 }
  0xa4   : > { %2214 = vrot.lane.b32.xlu0 %v2594_v58, %s2393_s10  ;;  %v1945_v10 = vpop.permute.xlu1 %1944  ;;  %s2290_s10 = scalar_lea.vmem %s3407_s16, 2048 }
  0xa5   : > { %v1947_v3 = vunpack.i.h.bf16 %v1945_v10  ;;  %v1946_v45 = vunpack.i.l.bf16 %v1945_v10  ;;  %v991_v10 = vsel %vm981_vm4, %v974_v26, %v1932_v55  ;;  %v982_v21 = vsel %vm981_vm4, %v965_v13, %v1926_v29  ;;  %p2291_p13 = scmp.ne.s32.totalorder %s3407_s16, %s2290_s10  ;;  %p2298_p4 = scmp.lt.s32.totalorder %s2296_s27, %s2290_s10 }
  0xa6   : > { %v1935_v39 = vpop.permute.xlu0 %1934  ;;  %v983_v57 = vsel %vm981_vm4, %v966_v43, %v1927_v23 }
  0xa7   : > { %v1937_v0 = vunpack.i.h.bf16 %v1935_v39  ;;  %v1936_v41 = vunpack.i.l.bf16 %v1935_v39  ;;  %v992_v8 = vsel %vm981_vm4, %v975_v38, %v1946_v45  ;;  %v993_v63 = vsel %vm981_vm4, %v976_v44, %v1947_v3  ;;  %p2292_p0 = pnand %p2291_p13, %p2467_p3  ;;  %p2299_p5 = por %p2298_p4, %p2297_p2 }
  0xa8   : > { %v2882_v14 = vpop.permute.xlu1 %1949 }
  0xa9   : > { %v1952_v20 = vunpack.i.h.bf16 %v2882_v14  ;;  %v1951_v39 = vunpack.i.l.bf16 %v2882_v14  ;;  %v985_v56 = vsel %vm981_vm4, %v968_v11, %v1937_v0  ;;  %v984_v51 = vsel %vm981_vm4, %v967_v22, %v1936_v41  ;;  %p2293_p1 = pneg %p2292_p0 }
  0xaa   : > { %v2884_v59 = vpop.permute.xlu0 %1939 }
  0xab   : > { %v1942_v7 = vunpack.i.h.bf16 %v2884_v59  ;;  %v1941_v24 = vunpack.i.l.bf16 %v2884_v59  ;;  %v1007_v38 = vsel %vm998_vm5, %v990_v12, %v1951_v39  ;;  %v1008_v11 = vsel %vm998_vm5, %v991_v10, %v1952_v20  ;;  %p2300_p6 = pnand %p2299_p5, %p2293_p1 }
  0xac   : > { %v2886_v6 = vpop.permute.xlu1 %1959 }
  0xad   : > { %v1962_v55 = vunpack.i.h.bf16 %v2886_v6  ;;  %v1961_v2 = vunpack.i.l.bf16 %v2886_v6  ;;  %v999_v6 = vsel %vm998_vm5, %v982_v21, %v1941_v24 }
  0xae   : > { %v2888_v18 = vpop.permute.xlu0 %1954 }
  0xaf   : > { %v1957_v14 = vunpack.i.h.bf16 %v2888_v18  ;;  %v1956_v23 = vunpack.i.l.bf16 %v2888_v18  ;;  %v1000_v18 = vsel %vm998_vm5, %v983_v57, %v1942_v7  ;;  %v1009_v1 = vsel %vm998_vm5, %v992_v8, %v1961_v2 }
  0xb0   : > { %v2890_v47 = vpop.permute.xlu1 %1969  ;;  %v1010_v0 = vsel %vm998_vm5, %v993_v63, %v1962_v55 }
  0xb1   : > { %v1972_v29 = vunpack.i.h.bf16 %v2890_v47  ;;  %v1971_v44 = vunpack.i.l.bf16 %v2890_v47  ;;  %v1002_v13 = vsel %vm998_vm5, %v985_v56, %v1957_v14 }
  0xb2   : > { %v2892_v34 = vpop.permute.xlu0 %1964 }
  0xb3   : > { %v1967_v22 = vunpack.i.h.bf16 %v2892_v34  ;;  %v1966_v3 = vunpack.i.l.bf16 %v2892_v34  ;;  %v1001_v34 = vsel %vm998_vm5, %v984_v51, %v1956_v23  ;;  %v1024_v12 = vsel %vm1015_vm6, %v1007_v38, %v1971_v44 }
  0xb4   : > { %v2894_v19 = vpop.permute.xlu1 %1979  ;;  %v1025_v10 = vsel %vm1015_vm6, %v1008_v11, %v1972_v29 }
  0xb5   : > { %v1982_v45 = vunpack.i.h.bf16 %v2894_v19  ;;  %v1981_v47 = vunpack.i.l.bf16 %v2894_v19  ;;  %v1016_v19 = vsel %vm1015_vm6, %v999_v6, %v1966_v3  ;;  %v1017_v57 = vsel %vm1015_vm6, %v1000_v18, %v1967_v22 }
  0xb6   : > { %v2896_v17 = vpop.permute.xlu0 %1974 }
  0xb7   : > { %v1027_v8 = vsel %vm1015_vm6, %v1010_v0, %v1982_v45  ;;  %v1977_v63 = vunpack.i.h.bf16 %v2896_v17  ;;  %v1976_v7 = vunpack.i.l.bf16 %v2896_v17 }
  0xb8   : > { %v2898_v30 = vpop.permute.xlu1 %1989 }
  0xb9   : > { %v1992_v41 = vunpack.i.h.bf16 %v2898_v30  ;;  %v1991_v43 = vunpack.i.l.bf16 %v2898_v30  ;;  %v1026_v30 = vsel %vm1015_vm6, %v1009_v1, %v1981_v47 }
  0xba   : > { %v2900_v58 = vpop.permute.xlu0 %1984 }
  0xbb   : > { %v1987_v20 = vunpack.i.h.bf16 %v2900_v58  ;;  %v1986_v39 = vunpack.i.l.bf16 %v2900_v58  ;;  %v1041_v56 = vsel %vm1032_vm7, %v1024_v12, %v1991_v43  ;;  %v1042_v51 = vsel %vm1032_vm7, %v1025_v10, %v1992_v41 }
  0xbc   : > { %v2902_v9 = vpop.permute.xlu1 %1999 }
  0xbd   : > { %v1033_v17 = vsel %vm1032_vm7, %v1016_v19, %v1986_v39  ;;  %v1034_v38 = vsel %vm1032_vm7, %v1017_v57, %v1987_v20  ;;  %v2002_v11 = vunpack.i.h.bf16 %v2902_v9  ;;  %v2001_v22 = vunpack.i.l.bf16 %v2902_v9 }
  0xbe   : > { %v2904_v49 = vpop.permute.xlu0 %1994 }
  0xbf   : > { %v1997_v3 = vunpack.i.h.bf16 %v2904_v49 }
  0xc0   : > { %v2914_v60 = vpop.permute.xlu1 %2009 }
  0xc1   : > { %v2012_v55 = vunpack.i.h.bf16 %v2914_v60  ;;  %v2011_v2 = vunpack.i.l.bf16 %v2914_v60  ;;  %v1996_v60 = vunpack.i.l.bf16 %v2904_v49 }
  0xc2   : > { %v2926_v42 = vpop.permute.xlu0 %2004 }
  0xc3   : > { %v2007_v58 = vunpack.i.h.bf16 %v2926_v42  ;;  %v2006_v14 = vunpack.i.l.bf16 %v2926_v42  ;;  %v1058_v42 = vsel %vm1049_vm8, %v1041_v56, %v2011_v2  ;;  %v1059_v47 = vsel %vm1049_vm8, %v1042_v51, %v2012_v55 }
  0xc4   : > { %v2936_v25 = vpop.permute.xlu1 %2019 }
  0xc5   : > { %v1050_v0 = vsel %vm1049_vm8, %v1033_v17, %v2006_v14  ;;  %v1051_v41 = vsel %vm1049_vm8, %v1034_v38, %v2007_v58  ;;  %v2022_v57 = vunpack.i.h.bf16 %v2936_v25  ;;  %v2021_v55 = vunpack.i.l.bf16 %v2936_v25 }
  0xc6   : > { %v2946_v59 = vpop.permute.xlu0 %2014  ;;  %v1019_v25 = vsel %vm1015_vm6, %v1002_v13, %v1977_v63 }
  0xc7   : > { %v2017_v2 = vunpack.i.h.bf16 %v2946_v59 }
  0xc8   : > { %v2030_v26 = vpop.permute.xlu1 %2029 }
  0xc9   : > { %v2032_v23 = vunpack.i.h.bf16 %v2030_v26  ;;  %v2031_v29 = vunpack.i.l.bf16 %v2030_v26 }
  0xca   : > { %v2025_v21 = vpop.permute.xlu0 %2024 }
  0xcb   : > { %v2027_v6 = vunpack.i.h.bf16 %v2025_v21  ;;  %v2026_v18 = vunpack.i.l.bf16 %v2025_v21  ;;  %v1075_v9 = vsel %vm1066_vm9, %v1058_v42, %v2031_v29  ;;  %v1076_v12 = vsel %vm1066_vm9, %v1059_v47, %v2032_v23 }
  0xcc   : > { %v2972_v24 = vpop.permute.xlu1 %2039  ;;  %v2016_v23 = vunpack.i.l.bf16 %v2946_v59  ;;  %v1044_v42 = vsel %vm1032_vm7, %v1027_v8, %v2002_v11  ;;  %v1036_v59 = vsel %vm1032_vm7, %v1019_v25, %v1997_v3 }
  0xcd   : > { %v1067_v39 = vsel %vm1066_vm9, %v1050_v0, %v2026_v18  ;;  %v1068_v56 = vsel %vm1066_vm9, %v1051_v41, %v2027_v6  ;;  %v2042_v29 = vunpack.i.h.bf16 %v2972_v24  ;;  %v2041_v17 = vunpack.i.l.bf16 %v2972_v24 }
  0xce   : > { %v2980_v44 = vpop.permute.xlu0 %2034  ;;  %v1018_v6 = vsel %vm1015_vm6, %v1001_v34, %v1976_v7  ;;  %v1061_v34 = vsel %vm1049_vm8, %v1044_v42, %v2022_v57  ;;  %v1053_v8 = vsel %vm1049_vm8, %v1036_v59, %v2017_v2 }
  0xcf   : > { %v1035_v47 = vsel %vm1032_vm7, %v1018_v6, %v1996_v60  ;;  %v2036_v24 = vunpack.i.l.bf16 %v2980_v44  ;;  %v1078_v11 = vsel %vm1066_vm9, %v1061_v34, %v2042_v29 }
  0xd0   : > { %v2050_v45 = vpop.permute.xlu1 %2049 }
  0xd1   : > { %v2052_v26 = vunpack.i.h.bf16 %v2050_v45  ;;  %v2051_v1 = vunpack.i.l.bf16 %v2050_v45  ;;  %v1043_v45 = vsel %vm1032_vm7, %v1026_v30, %v2001_v22  ;;  %v1052_v30 = vsel %vm1049_vm8, %v1035_v47, %v2016_v23 }
  0xd2   : > { %v2045_v43 = vpop.permute.xlu0 %2044  ;;  %v1060_v0 = vsel %vm1049_vm8, %v1043_v45, %v2021_v55 }
  0xd3   : > { %v2047_v10 = vunpack.i.h.bf16 %v2045_v43  ;;  %v2046_v49 = vunpack.i.l.bf16 %v2045_v43  ;;  %v1092_v21 = vsel %vm1083_vm10, %v1075_v9, %v2051_v1  ;;  %v1093_v19 = vsel %vm1083_vm10, %v1076_v12, %v2052_v26 }
  0xd4   : > { %v2997_v20 = vpop.permute.xlu1 %2059  ;;  %v1104_v51 = vpack.c.bf16 %v1093_v19, %v1092_v21  ;;  %v2037_v26 = vunpack.i.h.bf16 %v2980_v44  ;;  %v1077_v7 = vsel %vm1066_vm9, %v1060_v0, %v2041_v17  ;;  %v1069_v43 = vsel %vm1066_vm9, %v1052_v30, %v2036_v24 }
  0xd5   : > { %v1084_v58 = vsel %vm1083_vm10, %v1067_v39, %v2046_v49  ;;  %v1085_v14 = vsel %vm1083_vm10, %v1068_v56, %v2047_v10  ;;  %v2062_v6 = vunpack.i.h.bf16 %v2997_v20  ;;  %v2061_v25 = vunpack.i.l.bf16 %v2997_v20 }
  0xd6   : > { %v3008_v38 = vpop.permute.xlu0 %2054  ;;  %v1100_v18 = vpack.c.bf16 %v1085_v14, %v1084_v58  ;;  %1806 = vmatprep.mubr.msk.bf16.mxu1 %vm1135_vm11, %v1104_v51  ;;  %v1070_v9 = vsel %vm1066_vm9, %v1053_v8, %v2037_v26 }
  0xd7   : > { %v2057_v42 = vunpack.i.h.bf16 %v3008_v38  ;;  %v2056_v47 = vunpack.i.l.bf16 %v3008_v38  ;;  %v977_v0 = vsel %vm964_vm3, %v2606_v61, %v2061_v25 }
  0xd8   : > { %1798 = vmatprep.mubr.msk.bf16.mxu0 %vm1135_vm11, %v1100_v18  ;;  %v2070_v1 = vpop.permute.xlu1 %2069 }
  0xd9   : > { %v2072_v13 = vunpack.i.h.bf16 %v2070_v1  ;;  %v2071_v63 = vunpack.i.l.bf16 %v2070_v1  ;;  %v978_v1 = vsel %vm964_vm3, %v2609_v62, %v2062_v6  ;;  %v970_v38 = vsel %vm964_vm3, %v2625_v5, %v2057_v42 }
  0xda   : > { %v2065_v22 = vpop.permute.xlu0 %2064 }
  0xdb   : > { %v1094_v44 = vsel %vm1083_vm10, %v1077_v7, %v2071_v63  ;;  %v1095_v3 = vsel %vm1083_vm10, %v1078_v11, %v2072_v13  ;;  %v2067_v60 = vunpack.i.h.bf16 %v2065_v22  ;;  %v2066_v41 = vunpack.i.l.bf16 %v2065_v22 }
  0xdc   : > { %v1105_v12 = vpack.c.bf16 %v1095_v3, %v1094_v44  ;;  %v2080_v10 = vpop.permute.xlu1 %2079  ;;  %v969_v11 = vsel %vm964_vm3, %v2622_v4, %v2056_v47 }
  0xdd   : > { %v1086_v49 = vsel %vm1083_vm10, %v1069_v43, %v2066_v41  ;;  %v1087_v21 = vsel %vm1083_vm10, %v1070_v9, %v2067_v60  ;;  %v2082_v26 = vunpack.i.h.bf16 %v2080_v10  ;;  %v2081_v24 = vunpack.i.l.bf16 %v2080_v10 }
  0xde   : > { %v1101_v19 = vpack.c.bf16 %v1087_v21, %v1086_v49  ;;  %v2075_v57 = vpop.permute.xlu0 %2074  ;;  %1807 = vmatmul.mubr.msk.bf16.vlgmr.msra.gmra.mrb[0].mxu1 %vm1135_vm11, %v1105_v12 }
  0xdf   : > { %v2077_v34 = vunpack.i.h.bf16 %v2075_v57  ;;  %v2076_v13 = vunpack.i.l.bf16 %v2075_v57  ;;  %v980_v61 = vsel %vm964_vm3, %v2748_v48, %v2082_v26  ;;  %v979_v3 = vsel %vm964_vm3, %v2745_v46, %v2081_v24 }
  0xe0   : > { %1799 = vmatmul.mubr.msk.bf16.vlgmr.msra.gmra.mrb[0].mxu0 %vm1135_vm11, %v1101_v19  ;;  %v2090_v39 = vpop.permute.xlu1 %2089 }
  0xe1   : > { %v2092_v20 = vunpack.i.h.bf16 %v2090_v39  ;;  %v2091_v30 = vunpack.i.l.bf16 %v2090_v39  ;;  %v972_v43 = vsel %vm964_vm3, %v2757_v54, %v2077_v34  ;;  %v971_v5 = vsel %vm964_vm3, %v2754_v52, %v2076_v13 }
  0xe2   : > { %v2085_v56 = vpop.permute.xlu0 %2084 }
  0xe3   : > { %v2087_v8 = vunpack.i.h.bf16 %v2085_v56  ;;  %v2086_v7 = vunpack.i.l.bf16 %v2085_v56  ;;  %v994_v10 = vsel %vm981_vm4, %v977_v0, %v2091_v30  ;;  %v995_v49 = vsel %vm981_vm4, %v978_v1, %v2092_v20 }
  0xe4   : > { %v2100_v51 = vpop.permute.xlu1 %2099 }
  0xe5   : > { %v2102_v22 = vunpack.i.h.bf16 %v2100_v51  ;;  %v2101_v44 = vunpack.i.l.bf16 %v2100_v51  ;;  %v986_v48 = vsel %vm981_vm4, %v969_v11, %v2086_v7  ;;  %v987_v46 = vsel %vm981_vm4, %v970_v38, %v2087_v8 }
  0xe6   : > { %v2095_v55 = vpop.permute.xlu0 %2094 }
  0xe7   : > { %v2097_v60 = vunpack.i.h.bf16 %v2095_v55  ;;  %v2096_v41 = vunpack.i.l.bf16 %v2095_v55  ;;  %v996_v21 = vsel %vm981_vm4, %v979_v3, %v2101_v44  ;;  %v997_v19 = vsel %vm981_vm4, %v980_v61, %v2102_v22 }
  0xe8   : > { %v2110_v2 = vpop.permute.xlu1 %2109 }
  0xe9   : > { %v2112_v9 = vunpack.i.h.bf16 %v2110_v2  ;;  %v2111_v4 = vunpack.i.l.bf16 %v2110_v2  ;;  %v988_v52 = vsel %vm981_vm4, %v971_v5, %v2096_v41  ;;  %v989_v56 = vsel %vm981_vm4, %v972_v43, %v2097_v60 }
  0xea   : > { %v2105_v58 = vpop.permute.xlu0 %2104 }
  0xeb   : > { %v2107_v54 = vunpack.i.h.bf16 %v2105_v58  ;;  %v2106_v57 = vunpack.i.l.bf16 %v2105_v58  ;;  %v1011_v2 = vsel %vm998_vm5, %v994_v10, %v2111_v4  ;;  %v1012_v6 = vsel %vm998_vm5, %v995_v49, %v2112_v9 }
  0xec   : > { %v3034_v14 = vpop.permute.xlu1 %2119 }
  0xed   : > { %v2122_v51 = vunpack.i.h.bf16 %v3034_v14  ;;  %v2121_v55 = vunpack.i.l.bf16 %v3034_v14  ;;  %v1003_v0 = vsel %vm998_vm5, %v986_v48, %v2106_v57  ;;  %v1004_v14 = vsel %vm998_vm5, %v987_v46, %v2107_v54 }
  0xee   : > { %v3036_v23 = vpop.permute.xlu0 %2114 }
  0xef   : > { %v2117_v25 = vunpack.i.h.bf16 %v3036_v23  ;;  %v2116_v42 = vunpack.i.l.bf16 %v3036_v23  ;;  %v1013_v23 = vsel %vm998_vm5, %v996_v21, %v2121_v55  ;;  %v1014_v30 = vsel %vm998_vm5, %v997_v19, %v2122_v51 }
  0xf0   : > { %v3038_v29 = vpop.permute.xlu1 %2129 }
  0xf1   : > { %v2132_v58 = vunpack.i.h.bf16 %v3038_v29  ;;  %v2131_v26 = vunpack.i.l.bf16 %v3038_v29  ;;  %v1005_v7 = vsel %vm998_vm5, %v988_v52, %v2116_v42 }
  0xf2   : > { %v3040_v17 = vpop.permute.xlu0 %2124 }
  0xf3   : > { %v2127_v24 = vunpack.i.h.bf16 %v3040_v17  ;;  %v2126_v1 = vunpack.i.l.bf16 %v3040_v17  ;;  %v1006_v17 = vsel %vm998_vm5, %v989_v56, %v2117_v25  ;;  %v1029_v44 = vsel %vm1015_vm6, %v1012_v6, %v2132_v58 }
  0xf4   : > { %v3042_v18 = vpop.permute.xlu1 %2139 }
  0xf5   : > { %v2142_v34 = vunpack.i.h.bf16 %v3042_v18  ;;  %v2141_v13 = vunpack.i.l.bf16 %v3042_v18  ;;  %v1028_v18 = vsel %vm1015_vm6, %v1011_v2, %v2131_v26  ;;  %v1020_v61 = vsel %vm1015_vm6, %v1003_v0, %v2126_v1 }
  0xf6   : > { %v3046_v45 = vpop.permute.xlu0 %2134  ;;  %v1021_v3 = vsel %vm1015_vm6, %v1004_v14, %v2127_v24 }
  0xf7   : > { %v2137_v8 = vunpack.i.h.bf16 %v3046_v45  ;;  %v2136_v29 = vunpack.i.l.bf16 %v3046_v45  ;;  %v1030_v45 = vsel %vm1015_vm6, %v1013_v23, %v2141_v13  ;;  %v1031_v60 = vsel %vm1015_vm6, %v1014_v30, %v2142_v34 }
  0xf8   : > { %v3050_v59 = vpop.permute.xlu1 %2149 }
  0xf9   : > { %v2152_v38 = vunpack.i.h.bf16 %v3050_v59  ;;  %v2151_v11 = vunpack.i.l.bf16 %v3050_v59  ;;  %v1022_v59 = vsel %vm1015_vm6, %v1005_v7, %v2136_v29  ;;  %v1023_v9 = vsel %vm1015_vm6, %v1006_v17, %v2137_v8 }
  0xfa   : > { %v3056_v63 = vpop.permute.xlu0 %2144 }
  0xfb   : > { %v2147_v41 = vunpack.i.h.bf16 %v3056_v63  ;;  %v2146_v43 = vunpack.i.l.bf16 %v3056_v63  ;;  %v1045_v49 = vsel %vm1032_vm7, %v1028_v18, %v2151_v11  ;;  %v1046_v48 = vsel %vm1032_vm7, %v1029_v44, %v2152_v38 }
  0xfc   : > { %v3062_v62 = vpop.permute.xlu1 %2159 }
  0xfd   : > { %v2162_v4 = vunpack.i.h.bf16 %v3062_v62  ;;  %v2161_v10 = vunpack.i.l.bf16 %v3062_v62  ;;  %v1037_v56 = vsel %vm1032_vm7, %v1020_v61, %v2146_v43  ;;  %v1038_v51 = vsel %vm1032_vm7, %v1021_v3, %v2147_v41 }
  0xfe   : > { %v3072_v12 = vpop.permute.xlu0 %2154 }
  0xff   : > { %v2157_v46 = vunpack.i.h.bf16 %v3072_v12  ;;  %v2156_v21 = vunpack.i.l.bf16 %v3072_v12  ;;  %v1047_v6 = vsel %vm1032_vm7, %v1030_v45, %v2161_v10  ;;  %v1048_v25 = vsel %vm1032_vm7, %v1031_v60, %v2162_v4 }
 0x100   : > { %v3080_v39 = vpop.permute.xlu1 %2169 }
 0x101   : > { %v2172_v63 = vunpack.i.h.bf16 %v3080_v39  ;;  %v2171_v54 = vunpack.i.l.bf16 %v3080_v39  ;;  %v1039_v58 = vsel %vm1032_vm7, %v1022_v59, %v2156_v21  ;;  %v1040_v39 = vsel %vm1032_vm7, %v1023_v9, %v2157_v46 }
 0x102   : > { %v2165_v47 = vpop.permute.xlu0 %2164 }
 0x103   : > { %v2167_v57 = vunpack.i.h.bf16 %v2165_v47  ;;  %v2166_v52 = vunpack.i.l.bf16 %v2165_v47  ;;  %v1062_v1 = vsel %vm1049_vm8, %v1045_v49, %v2171_v54  ;;  %v1063_v0 = vsel %vm1049_vm8, %v1046_v48, %v2172_v63 }
 0x104   : > { %v2180_v20 = vpop.permute.xlu1 %2179 }
 0x105   : > { %v2182_v62 = vunpack.i.h.bf16 %v2180_v20  ;;  %v2181_v55 = vunpack.i.l.bf16 %v2180_v20  ;;  %v1054_v14 = vsel %vm1049_vm8, %v1037_v56, %v2166_v52  ;;  %v1055_v34 = vsel %vm1049_vm8, %v1038_v51, %v2167_v57 }
 0x106   : > { %v3106_v22 = vpop.permute.xlu0 %2174 }
 0x107   : > { %v2176_v12 = vunpack.i.l.bf16 %v3106_v22  ;;  %v1064_v13 = vsel %vm1049_vm8, %v1047_v6, %v2181_v55  ;;  %v1065_v20 = vsel %vm1049_vm8, %v1048_v25, %v2182_v62  ;;  %v2177_v23 = vunpack.i.h.bf16 %v3106_v22 }
 0x108   : > { %v2190_v5 = vpop.permute.xlu1 %2189 }
 0x109   : > { %v2191_v42 = vunpack.i.l.bf16 %v2190_v5  ;;  %v2192_v26 = vunpack.i.h.bf16 %v2190_v5  ;;  %v1056_v29 = vsel %vm1049_vm8, %v1039_v58, %v2176_v12  ;;  %v1057_v21 = vsel %vm1049_vm8, %v1040_v39, %v2177_v23  ;;  %v1763_v58 = vld [vmem:[%s3468_s2] ss:$0 sm:$0xff] }
 0x10a   : > { %v2185_v19 = vpop.permute.xlu0 %2184 }
 0x10b   : > { %v2186_v47 = vunpack.i.l.bf16 %v2185_v19  ;;  %v2187_v30 = vunpack.i.h.bf16 %v2185_v19  ;;  %v1079_v7 = vsel %vm1066_vm9, %v1062_v1, %v2191_v42  ;;  %v1080_v11 = vsel %vm1066_vm9, %v1063_v0, %v2192_v26 }
 0x10c   : > { %v2200_v2 = vpop.permute.xlu1 %2199 }
 0x10d   : > { %v1071_v18 = vsel %vm1066_vm9, %v1054_v14, %v2186_v47  ;;  %v2202_v44 = vunpack.i.h.bf16 %v2200_v2  ;;  %v2201_v61 = vunpack.i.l.bf16 %v2200_v2  ;;  %v1072_v43 = vsel %vm1066_vm9, %v1055_v34, %v2187_v30 }
 0x10e   : > { %v2195_v24 = vpop.permute.xlu0 %2194 }
 0x10f   : > { %v2197_v5 = vunpack.i.h.bf16 %v2195_v24  ;;  %v2196_v59 = vunpack.i.l.bf16 %v2195_v24  ;;  %v1081_v19 = vsel %vm1066_vm9, %v1064_v13, %v2201_v61  ;;  %v1082_v63 = vsel %vm1066_vm9, %v1065_v20, %v2202_v44 }
 0x110   : > { %v2210_v8 = vpop.permute.xlu1 %2209 }
 0x111   : > { %v2212_v17 = vunpack.i.h.bf16 %v2210_v8  ;;  %v2211_v38 = vunpack.i.l.bf16 %v2210_v8  ;;  %v1073_v55 = vsel %vm1066_vm9, %v1056_v29, %v2196_v59  ;;  %v1074_v2 = vsel %vm1066_vm9, %v1057_v21, %v2197_v5 }
 0x112   : > { %v2205_v3 = vpop.permute.xlu0 %2204 }
 0x113   : > { %v1096_v45 = vsel %vm1083_vm10, %v1079_v7, %v2211_v38  ;;  %v1097_v60 = vsel %vm1083_vm10, %v1080_v11, %v2212_v17  ;;  %v2207_v22 = vunpack.i.h.bf16 %v2205_v3  ;;  %v2206_v41 = vunpack.i.l.bf16 %v2205_v3 }
 0x114   : > { %v1106_v9 = vpack.c.bf16 %v1097_v60, %v1096_v45  ;;  %v2220_v4 = vpop.permute.xlu1 %2219 }
 0x115   : > { %v1088_v10 = vsel %vm1083_vm10, %v1071_v18, %v2206_v41  ;;  %v1089_v49 = vsel %vm1083_vm10, %v1072_v43, %v2207_v22  ;;  %v2222_v48 = vunpack.i.h.bf16 %v2220_v4  ;;  %v2221_v46 = vunpack.i.l.bf16 %v2220_v4 }
 0x116   : > { %v1102_v54 = vpack.c.bf16 %v1089_v49, %v1088_v10  ;;  %v2215_v57 = vpop.permute.xlu0 %2214  ;;  %1810 = vmatprep.mubr.msk.bf16.mxu1 %vm1135_vm11, %v1106_v9  ;;  %v1325_v49 = vlaneseq }
 0x117   : > { %v1098_v52 = vsel %vm1083_vm10, %v1081_v19, %v2221_v46  ;;  %v1099_v56 = vsel %vm1083_vm10, %v1082_v63, %v2222_v48  ;;  %v2217_v51 = vunpack.i.h.bf16 %v2215_v57  ;;  %v2216_v62 = vunpack.i.l.bf16 %v2215_v57 }
 0x118   : > { %v1107_v6 = vpack.c.bf16 %v1099_v56, %v1098_v52  ;;  %1802 = vmatprep.mubr.msk.bf16.mxu0 %vm1135_vm11, %v1102_v54  ;;  %v3204_v46 = vand.u32 127, %v1325_v49 }
 0x119   : > { %v1090_v25 = vsel %vm1083_vm10, %v1073_v55, %v2216_v62  ;;  %v1091_v12 = vsel %vm1083_vm10, %v1074_v2, %v2217_v51 }
 0x11a   : > { %v1103_v42 = vpack.c.bf16 %v1091_v12, %v1090_v25  ;;  %1811 = vmatmul.mubr.msk.bf16.gmra.mrb[4].mxu1 %vm1135_vm11, %v1107_v6  ;;  %vm1327_vm12 = vcmp.lt.s32.totalorder %v3204_v46, 4 }
 0x11c   : > { %1803 = vmatmul.mubr.msk.bf16.gmra.mrb[4].mxu0 %vm1135_vm11, %v1103_v42 }
 0x1b1   : > { %v1808_v39 = vpop.f32.mrb[0].mxu1 }
 0x1b2   : > { %v3165_v26 = vadd.f32 %v1808_v39, %v1763_v58  ;;  %v1230_v47 = vpop.f32.mrb[1].mxu1 }
 0x1b3   : > { %v1800_v24 = vpop.f32.mrb[0].mxu0  ;;  %v1809_v1 = vpop.f32.mrb[2].mxu1  ;;  %v3168_v20 = vadd.f32 %v1763_v58, %v1230_v47 }
 0x1b4   : > { %v1207_v0 = vadd.f32 %v1800_v24, %v1763_v58  ;;  %v1198_v14 = vpop.f32.mrb[1].mxu0  ;;  %1281 = vadd.xlane.f32.xlu1 %v3165_v26  ;;  %v1233_v34 = vpop.f32.mrb[3].mxu1  ;;  %v3174_v7 = vadd.f32 %v1809_v1, %v1763_v58 }
 0x1b5   : > { %v1801_v13 = vpop.f32.mrb[2].mxu0  ;;  %v1199_v30 = vadd.f32 %v1763_v58, %v1198_v14  ;;  %v3177_v17 = vadd.f32 %v1763_v58, %v1233_v34 }
 0x1b6   : > { %1265 = vadd.xlane.f32.xlu0 %v1207_v0  ;;  %v1201_v23 = vpop.f32.mrb[3].mxu0  ;;  %v1210_v29 = vadd.f32 %v1801_v13, %v1763_v58 }
 0x1b7   : > { %v3171_v8 = vadd.f32 %v1763_v58, %v1201_v23 }
 0x1b8   : > { %1277 = vadd.xlane.f32.xlu1 %v3168_v20 }
 0x1ba   : > { %1261 = vadd.xlane.f32.xlu0 %v1199_v30 }
 0x1bc   : > { %1263 = vadd.xlane.f32.xlu1 %v3171_v8 }
 0x1be   : > { %1267 = vadd.xlane.f32.xlu0 %v1210_v29 }
 0x1c2   : > { %1283 = vadd.xlane.f32.xlu0 %v3174_v7 }
 0x1c6   : > { %1279 = vadd.xlane.f32.xlu0 %v3177_v17 }
 0x1ed   : > { %v1812_v38 = vpop.f32.mrb[4].mxu1 }
 0x1ee   : > { %v1246_v11 = vpop.f32.mrb[5].mxu1  ;;  %v3197_v4 = vadd.f32 %v1812_v38, %v1763_v58 }
 0x1ef   : > { %v1804_v18 = vpop.f32.mrb[4].mxu0  ;;  %v1813_v44 = vpop.f32.mrb[6].mxu1  ;;  %v3191_v59 = vadd.f32 %v1763_v58, %v1246_v11 }
 0x1f0   : > { %v3180_v61 = vadd.f32 %v1804_v18, %v1763_v58  ;;  %v1214_v3 = vpop.f32.mrb[5].mxu0  ;;  %v1249_v45 = vpop.f32.mrb[7].mxu1  ;;  %v3200_v10 = vadd.f32 %v1813_v44, %v1763_v58 }
 0x1f1   : > { %v1805_v60 = vpop.f32.mrb[6].mxu0  ;;  %v3185_v43 = vadd.f32 %v1763_v58, %v1214_v3  ;;  %v3194_v9 = vadd.f32 %v1763_v58, %v1249_v45 }
 0x1f2   : > { %v3182_v22 = vadd.f32 %v1805_v60, %v1763_v58  ;;  %v1217_v41 = vpop.f32.mrb[7].mxu0  ;;  %1273 = vadd.xlane.f32.xlu1 %v3180_v61 }
 0x1f3   : > { %v3188_v5 = vadd.f32 %v1763_v58, %v1217_v41 }
 0x1f4   : > { %1275 = vadd.xlane.f32.xlu0 %v3182_v22 }
 0x1f6   : > { %1269 = vadd.xlane.f32.xlu1 %v3185_v43 }
 0x1f8   : > { %1271 = vadd.xlane.f32.xlu0 %v3188_v5 }
 0x1fa   : > { %1285 = vadd.xlane.f32.xlu1 %v3191_v59 }
 0x1fc   : > { %1287 = vadd.xlane.f32.xlu0 %v3194_v9 }
 0x1fe   : > { %1289 = vadd.xlane.f32.xlu1 %v3197_v4 }
 0x200   : > { %1291 = vadd.xlane.f32.xlu0 %v3200_v10 }
 0x241   : > { %v1282_v48 = vpop.xlane.xlu1 %1281 }
 0x242   : > { %v1303_v21 = vmul.f32 0.25, %v1282_v48 }
 0x243   : > { %v1266_v19 = vpop.xlane.xlu0 %1265 }
 0x244   : > { %v1295_v63 = vmul.f32 0.25, %v1266_v19  ;;  %v1319_v57 = vsub.f32 %v3165_v26, %v1303_v21 }
 0x245   : > { %v1278_v54 = vpop.xlane.xlu1 %1277 }
 0x246   : > { %v1311_v52 = vsub.f32 %v1207_v0, %v1295_v63  ;;  %v1301_v2 = vmul.f32 0.25, %v1278_v54  ;;  %v3216_v25 = vsel %vm1327_vm12, %v1319_v57, 0.0 }
 0x247   : > { %v1262_v56 = vpop.xlane.xlu0 %1261  ;;  %v1354_v39 = vmul.f32 %v3216_v25, %v3216_v25 }
 0x248   : > { %v1293_v51 = vmul.f32 0.25, %v1262_v56  ;;  %v3210_v62 = vsel %vm1327_vm12, %v1311_v52, 0.0  ;;  %v1317_v26 = vsub.f32 %v3168_v20, %v1301_v2 }
 0x249   : > { %v1346_v55 = vmul.f32 %v3210_v62, %v3210_v62  ;;  %v1264_v12 = vpop.xlane.xlu1 %1263 }
 0x24a   : > { %v1309_v6 = vsub.f32 %v1199_v30, %v1293_v51  ;;  %v1294_v47 = vmul.f32 0.25, %v1264_v12 }
 0x24b   : > { %1364 = vadd.xlane.f32.xlu1 %v1346_v55  ;;  %v1268_v42 = vpop.xlane.xlu0 %1267 }
 0x24c   : > { %v1296_v58 = vmul.f32 0.25, %v1268_v42  ;;  %v3223_v1 = vsel %vm1327_vm12, %v1309_v6, 0.0  ;;  %v1310_v20 = vsub.f32 %v3171_v8, %v1294_v47 }
 0x24d   : > { %v1344_v13 = vmul.f32 %v3223_v1, %v3223_v1 }
 0x24e   : > { %v1312_v24 = vsub.f32 %v1210_v29, %v1296_v58  ;;  %v3237_v29 = vsel %vm1327_vm12, %v1317_v26, 0.0  ;;  %v3250_v3 = vsel %vm1327_vm12, %v1310_v20, 0.0 }
 0x24f   : > { %1380 = vadd.xlane.f32.xlu1 %v1354_v39  ;;  %v1284_v0 = vpop.xlane.xlu0 %1283  ;;  %v1352_v44 = vmul.f32 %v3237_v29, %v3237_v29  ;;  %v1345_v45 = vmul.f32 %v3250_v3, %v3250_v3 }
 0x250   : > { %v1304_v14 = vmul.f32 0.25, %v1284_v0  ;;  %v3227_v34 = vsel %vm1327_vm12, %v1312_v24, 0.0 }
 0x251   : > { %v1347_v23 = vmul.f32 %v3227_v34, %v3227_v34 }
 0x252   : > { %v1320_v30 = vsub.f32 %v3174_v7, %v1304_v14 }
 0x253   : > { %1360 = vadd.xlane.f32.xlu1 %v1344_v13  ;;  %1366 = vadd.xlane.f32.xlu0 %v1347_v23  ;;  %v1280_v38 = vpop.xlane.xlu0 %1279 }
 0x254   : > { %v1302_v11 = vmul.f32 0.25, %v1280_v38  ;;  %v3241_v18 = vsel %vm1327_vm12, %v1320_v30, 0.0 }
 0x255   : > { %v1355_v8 = vmul.f32 %v3241_v18, %v3241_v18 }
 0x256   : > { %v1318_v7 = vsub.f32 %v3177_v17, %v1302_v11 }
 0x257   : > { %1376 = vadd.xlane.f32.xlu1 %v1352_v44  ;;  %1382 = vadd.xlane.f32.xlu0 %v1355_v8 }
 0x258   : > { %v3256_v60 = vsel %vm1327_vm12, %v1318_v7, 0.0 }
 0x259   : > { %v1353_v41 = vmul.f32 %v3256_v60, %v3256_v60 }
 0x25b   : > { %1362 = vadd.xlane.f32.xlu0 %v1345_v45 }
 0x25f   : > { %1378 = vadd.xlane.f32.xlu0 %v1353_v41 }
 0x27f   : > { %v1274_v49 = vpop.xlane.xlu1 %1273 }
 0x280   : > { %v1299_v17 = vmul.f32 0.25, %v1274_v49 }
 0x281   : > { %v1276_v48 = vpop.xlane.xlu0 %1275 }
 0x282   : > { %v1315_v21 = vsub.f32 %v3180_v61, %v1299_v17  ;;  %v1300_v19 = vmul.f32 0.25, %v1276_v48 }
 0x283   : > { %v1270_v63 = vpop.xlane.xlu1 %1269 }
 0x284   : > { %v1316_v54 = vsub.f32 %v3182_v22, %v1300_v19  ;;  %v1297_v57 = vmul.f32 0.25, %v1270_v63  ;;  %v3264_v52 = vsel %vm1327_vm12, %v1315_v21, 0.0 }
 0x285   : > { %v1272_v56 = vpop.xlane.xlu0 %1271  ;;  %v1350_v51 = vmul.f32 %v3264_v52, %v3264_v52 }
 0x286   : > { %v1313_v55 = vsub.f32 %v3185_v43, %v1297_v57  ;;  %v1298_v2 = vmul.f32 0.25, %v1272_v56  ;;  %v3271_v6 = vsel %vm1327_vm12, %v1316_v54, 0.0 }
 0x287   : > { %v1286_v61 = vpop.xlane.xlu1 %1285  ;;  %1372 = vadd.xlane.f32.xlu1 %v1350_v51  ;;  %v1351_v22 = vmul.f32 %v3271_v6, %v3271_v6 }
 0x288   : > { %v1314_v12 = vsub.f32 %v3188_v5, %v1298_v2  ;;  %v1305_v42 = vmul.f32 0.25, %v1286_v61  ;;  %v3278_v58 = vsel %vm1327_vm12, %v1313_v55, 0.0 }
 0x289   : > { %1374 = vadd.xlane.f32.xlu0 %v1351_v22  ;;  %v1288_v39 = vpop.xlane.xlu0 %1287  ;;  %v1348_v43 = vmul.f32 %v3278_v58, %v3278_v58 }
 0x28a   : > { %v1321_v26 = vsub.f32 %v3191_v59, %v1305_v42  ;;  %v1306_v47 = vmul.f32 0.25, %v1288_v39  ;;  %v3285_v24 = vsel %vm1327_vm12, %v1314_v12, 0.0 }
 0x28b   : > { %v1290_v0 = vpop.xlane.xlu1 %1289  ;;  %1368 = vadd.xlane.f32.xlu1 %v1348_v43  ;;  %v1349_v5 = vmul.f32 %v3285_v24, %v3285_v24 }
 0x28c   : > { %v1322_v14 = vsub.f32 %v3194_v9, %v1306_v47  ;;  %v1307_v13 = vmul.f32 0.25, %v1290_v0  ;;  %v3292_v23 = vsel %vm1327_vm12, %v1321_v26, 0.0 }
 0x28d   : > { %1370 = vadd.xlane.f32.xlu0 %v1349_v5  ;;  %v1292_v20 = vpop.xlane.xlu0 %1291  ;;  %v1356_v59 = vmul.f32 %v3292_v23, %v3292_v23 }
 0x28e   : > { %v1323_v30 = vsub.f32 %v3197_v4, %v1307_v13  ;;  %v1308_v38 = vmul.f32 0.25, %v1292_v20  ;;  %v3299_v11 = vsel %vm1327_vm12, %v1322_v14, 0.0 }
 0x28f   : > { %1384 = vadd.xlane.f32.xlu1 %v1356_v59  ;;  %v1357_v9 = vmul.f32 %v3299_v11, %v3299_v11 }
 0x290   : > { %v1324_v44 = vsub.f32 %v3200_v10, %v1308_v38  ;;  %v3306_v8 = vsel %vm1327_vm12, %v1323_v30, 0.0 }
 0x291   : > { %1386 = vadd.xlane.f32.xlu0 %v1357_v9  ;;  %v1358_v7 = vmul.f32 %v3306_v8, %v3306_v8 }
 0x292   : > { %v3312_v4 = vsel %vm1327_vm12, %v1324_v44, 0.0 }
 0x293   : > { %1388 = vadd.xlane.f32.xlu1 %v1358_v7  ;;  %v1359_v45 = vmul.f32 %v3312_v4, %v3312_v4 }
 0x295   : > { %1390 = vadd.xlane.f32.xlu0 %v1359_v45 }
 0x2d8   : > { %v1365_v41 = vpop.xlane.xlu1 %1364 }
 0x2d9   : > { %v1394_v49 = vmul.f32 0.25, %v1365_v41 }
 0x2db   : > { %v1410_v10 = vadd.f32 1e-05, %v1394_v49 }
 0x2dc   : > { %v1381_v17 = vpop.xlane.xlu1 %1380 }
 0x2dd   : > { %2226 = vrsqrt.f32 %v1410_v10  ;;  %v1402_v48 = vmul.f32 0.25, %v1381_v17 }
 0x2df   : > { %v1418_v21 = vadd.f32 1e-05, %v1402_v48 }
 0x2e0   : > { %v1361_v19 = vpop.xlane.xlu1 %1360  ;;  %v1367_v63 = vpop.xlane.xlu0 %1366 }
 0x2e1   : > { %2228 = vrsqrt.f32 %v1418_v21  ;;  %v1392_v54 = vmul.f32 0.25, %v1361_v19  ;;  %v1395_v57 = vmul.f32 0.25, %v1367_v63 }
 0x2e3   : > { %v1408_v46 = vadd.f32 1e-05, %v1392_v54  ;;  %v1411_v56 = vadd.f32 1e-05, %v1395_v57 }
 0x2e4   : > { %v1377_v51 = vpop.xlane.xlu1 %1376  ;;  %v1383_v55 = vpop.xlane.xlu0 %1382 }
 0x2e5   : > { %2230 = vrsqrt.f32 %v1408_v46  ;;  %v1400_v2 = vmul.f32 0.25, %v1377_v51  ;;  %v1403_v61 = vmul.f32 0.25, %v1383_v55 }
 0x2e6   : > { %2232 = vrsqrt.f32 %v1411_v56 }
 0x2e7   : > { %v2227_v22 = vpop.eup %2226  ;;  %v1416_v12 = vadd.f32 1e-05, %v1400_v2  ;;  %v1419_v42 = vadd.f32 1e-05, %v1403_v61 }
 0x2e8   : > { %v1442_v39 = vmul.f32 %v2227_v22, %v3210_v62  ;;  %v1363_v43 = vpop.xlane.xlu0 %1362 }
 0x2e9   : > { %2234 = vrsqrt.f32 %v1416_v12  ;;  %v1393_v26 = vmul.f32 0.25, %v1363_v43 }
 0x2ea   : > { %v1474_v47 = vmul.f32 0.70710677, %v1442_v39  ;;  %2236 = vrsqrt.f32 %v1419_v42 }
 0x2eb   : > { %v2229_v0 = vpop.eup %2228  ;;  %v1409_v5 = vadd.f32 1e-05, %v1393_v26 }
 0x2ec   : > { %2238 = verf.f32 %v1474_v47  ;;  %v1450_v14 = vmul.f32 %v2229_v0, %v3216_v25  ;;  %v1379_v13 = vpop.xlane.xlu0 %1378 }
 0x2ed   : > { %2240 = vrsqrt.f32 %v1409_v5  ;;  %v1401_v20 = vmul.f32 0.25, %v1379_v13 }
 0x2ee   : > { %v1482_v59 = vmul.f32 0.70710677, %v1450_v14 }
 0x2ef   : > { %v2231_v30 = vpop.eup %2230  ;;  %v1417_v38 = vadd.f32 1e-05, %v1401_v20 }
 0x2f0   : > { %v2233_v9 = vpop.eup %2232  ;;  %2242 = verf.f32 %v1482_v59  ;;  %v1440_v62 = vmul.f32 %v2231_v30, %v3223_v1  ;;  %v1458_v1 = vmul.f32 0.5, %v1442_v39 }
 0x2f1   : > { %v1443_v44 = vmul.f32 %v2233_v9, %v3227_v34  ;;  %2244 = vrsqrt.f32 %v1417_v38 }
 0x2f2   : > { %v1472_v7 = vmul.f32 0.70710677, %v1440_v62  ;;  %v1456_v42 = vmul.f32 0.5, %v1440_v62 }
 0x2f3   : > { %v2235_v45 = vpop.eup %2234  ;;  %v1475_v41 = vmul.f32 0.70710677, %v1443_v44 }
 0x2f4   : > { %v2237_v49 = vpop.eup %2236  ;;  %2246 = verf.f32 %v1472_v7  ;;  %v1448_v25 = vmul.f32 %v2235_v45, %v3237_v29 }
 0x2f5   : > { %2248 = verf.f32 %v1475_v41  ;;  %v1451_v10 = vmul.f32 %v2237_v49, %v3241_v18  ;;  %v1466_v18 = vmul.f32 0.5, %v1450_v14 }
 0x2f6   : > { %v2239_v17 = vpop.eup %2238  ;;  %v1480_v48 = vmul.f32 0.70710677, %v1448_v25  ;;  %v1464_v14 = vmul.f32 0.5, %v1448_v25 }
 0x2f7   : > { %v2241_v21 = vpop.eup %2240  ;;  %v1506_v19 = vadd.f32 1.0, %v2239_v17  ;;  %v1483_v34 = vmul.f32 0.70710677, %v1451_v10  ;;  %v1467_v20 = vmul.f32 0.5, %v1451_v10 }
 0x2f8   : > { %2250 = verf.f32 %v1480_v48  ;;  %v1441_v63 = vmul.f32 %v2241_v21, %v3250_v3 }
 0x2f9   : > { %v1522_v54 = vmul.f32 %v1506_v19, %v1458_v1  ;;  %2252 = verf.f32 %v1483_v34 }
 0x2fa   : > { %v2243_v57 = vpop.eup %2242  ;;  %v1473_v46 = vmul.f32 0.70710677, %v1441_v63  ;;  %v1457_v62 = vmul.f32 0.5, %v1441_v63 }
 0x2fb   : > { %v2245_v56 = vpop.eup %2244  ;;  %1538 = vst [vmem:[%s3326_s28 + $0x10] sm:$0xff] %v1522_v54  ;;  %v1570_v29 = vadd.f32 %v1522_v54, %v2663_v31  ;;  %v1514_v51 = vadd.f32 1.0, %v2243_v57  ;;  %v1459_v31 = vmul.f32 0.5, %v1443_v44 }
 0x2fc   : > { %2254 = verf.f32 %v1473_v46  ;;  %v1449_v55 = vmul.f32 %v2245_v56, %v3256_v60 }
 0x2fd   : > { %1586 = vst.msk [vmem:[%s3326_s28 + $0x10] sm:$0xff] %vm964_vm3, %v1570_v29  ;;  %v1530_v3 = vmul.f32 %v1514_v51, %v1466_v18 }
 0x2fe   : > { %v2247_v2 = vpop.eup %2246  ;;  %v1481_v61 = vmul.f32 0.70710677, %v1449_v55  ;;  %v1465_v49 = vmul.f32 0.5, %v1449_v55 }
 0x2ff   : > { %v2249_v22 = vpop.eup %2248  ;;  %1546 = vst [vmem:[%s3326_s28 + $0x50] sm:$0xff] %v1530_v3  ;;  %v1578_v12 = vadd.f32 %v1530_v3, %v2653_v27  ;;  %v1504_v39 = vadd.f32 1.0, %v2247_v2 }
 0x300   : > { %v1507_v43 = vadd.f32 1.0, %v2249_v22  ;;  %2256 = verf.f32 %v1481_v61 }
 0x301   : > { %1594 = vst.msk [vmem:[%s3326_s28 + $0x50] sm:$0xff] %vm964_vm3, %v1578_v12  ;;  %v1520_v60 = vmul.f32 %v1504_v39, %v1456_v42 }
 0x302   : > { %v2251_v26 = vpop.eup %2250  ;;  %v1523_v47 = vmul.f32 %v1507_v43, %v1459_v31 }
 0x303   : > { %v2253_v0 = vpop.eup %2252  ;;  %1536 = vst [vmem:[%s3326_s28] sm:$0xff] %v1520_v60  ;;  %v1568_v5 = vadd.f32 %v1520_v60, %v2525_v15  ;;  %v1512_v27 = vadd.f32 1.0, %v2251_v26 }
 0x304   : > { %1539 = vst [vmem:[%s3326_s28 + $0x18] sm:$0xff] %v1523_v47  ;;  %v1571_v13 = vadd.f32 %v1523_v47, %v2666_v33  ;;  %v1515_v59 = vadd.f32 1.0, %v2253_v0 }
 0x305   : > { %1584 = vst.msk [vmem:[%s3326_s28] sm:$0xff] %vm964_vm3, %v1568_v5  ;;  %v1528_v30 = vmul.f32 %v1512_v27, %v1464_v14 }
 0x306   : > { %v2255_v38 = vpop.eup %2254  ;;  %1587 = vst.msk [vmem:[%s3326_s28 + $0x18] sm:$0xff] %vm964_vm3, %v1571_v13  ;;  %v1531_v9 = vmul.f32 %v1515_v59, %v1467_v20 }
 0x307   : > { %1544 = vst [vmem:[%s3326_s28 + $0x40] sm:$0xff] %v1528_v30  ;;  %v1576_v15 = vadd.f32 %v1528_v30, %v2551_v32  ;;  %v1505_v44 = vadd.f32 1.0, %v2255_v38 }
 0x308   : > { %1547 = vst [vmem:[%s3326_s28 + $0x58] sm:$0xff] %v1531_v9  ;;  %v1579_v33 = vadd.f32 %v1531_v9, %v2656_v28 }
 0x309   : > { %1592 = vst.msk [vmem:[%s3326_s28 + $0x40] sm:$0xff] %vm964_vm3, %v1576_v15  ;;  %v1521_v7 = vmul.f32 %v1505_v44, %v1457_v62 }
 0x30a   : > { %v2257_v45 = vpop.eup %2256  ;;  %1595 = vst.msk [vmem:[%s3326_s28 + $0x58] sm:$0xff] %vm964_vm3, %v1579_v33 }
 0x30b   : > { %1537 = vst [vmem:[%s3326_s28 + $0x8] sm:$0xff] %v1521_v7  ;;  %v1569_v41 = vadd.f32 %v1521_v7, %v2528_v16  ;;  %v1513_v25 = vadd.f32 1.0, %v2257_v45 }
 0x30d   : > { %1585 = vst.msk [vmem:[%s3326_s28 + $0x8] sm:$0xff] %vm964_vm3, %v1569_v41  ;;  %v1529_v32 = vmul.f32 %v1513_v25, %v1465_v49 }
 0x30f   : > { %1545 = vst [vmem:[%s3326_s28 + $0x48] sm:$0xff] %v1529_v32  ;;  %v1577_v10 = vadd.f32 %v1529_v32, %v2555_v35 }
 0x311   : > { %1593 = vst.msk [vmem:[%s3326_s28 + $0x48] sm:$0xff] %vm964_vm3, %v1577_v10 }
 0x314   : > { %v1373_v28 = vpop.xlane.xlu1 %1372 }
 0x315   : > { %v1398_v17 = vmul.f32 0.25, %v1373_v28 }
 0x316   : > { %v1375_v48 = vpop.xlane.xlu0 %1374 }
 0x317   : > { %v1414_v21 = vadd.f32 1e-05, %v1398_v17  ;;  %v1399_v1 = vmul.f32 0.25, %v1375_v48 }
 0x318   : > { %v1369_v19 = vpop.xlane.xlu1 %1368 }
 0x319   : > { %2258 = vrsqrt.f32 %v1414_v21  ;;  %v1415_v34 = vadd.f32 1e-05, %v1399_v1  ;;  %v1396_v63 = vmul.f32 0.25, %v1369_v19 }
 0x31a   : > { %v1371_v16 = vpop.xlane.xlu0 %1370 }
 0x31b   : > { %2260 = vrsqrt.f32 %v1415_v34  ;;  %v1412_v54 = vadd.f32 1e-05, %v1396_v63  ;;  %v1397_v57 = vmul.f32 0.25, %v1371_v16 }
 0x31c   : > { %v1385_v46 = vpop.xlane.xlu1 %1384 }
 0x31d   : > { %2262 = vrsqrt.f32 %v1412_v54  ;;  %v1413_v56 = vadd.f32 1e-05, %v1397_v57  ;;  %v1404_v29 = vmul.f32 0.25, %v1385_v46 }
 0x31e   : > { %v1387_v35 = vpop.xlane.xlu0 %1386 }
 0x31f   : > { %2264 = vrsqrt.f32 %v1413_v56  ;;  %v1420_v18 = vadd.f32 1e-05, %v1404_v29  ;;  %v1405_v51 = vmul.f32 0.25, %v1387_v35 }
 0x320   : > { %v1389_v55 = vpop.xlane.xlu1 %1388 }
 0x321   : > { %2266 = vrsqrt.f32 %v1420_v18  ;;  %v1421_v3 = vadd.f32 1e-05, %v1405_v51  ;;  %v1406_v2 = vmul.f32 0.25, %v1389_v55 }
 0x322   : > { %v1391_v61 = vpop.xlane.xlu0 %1390 }
 0x323   : > { %v2259_v22 = vpop.eup %2258  ;;  %2268 = vrsqrt.f32 %v1421_v3  ;;  %v1422_v12 = vadd.f32 1e-05, %v1406_v2  ;;  %v1407_v42 = vmul.f32 0.25, %v1391_v61 }
 0x324   : > { %v1446_v39 = vmul.f32 %v2259_v22, %v3264_v52  ;;  %v3482_v22 = vld [vmem:[#allocation6_spill] sm:$0xff] }
 0x325   : > { %v2261_v31 = vpop.eup %2260  ;;  %2270 = vrsqrt.f32 %v1422_v12  ;;  %v1423_v43 = vadd.f32 1e-05, %v1407_v42 }
 0x326   : > { %v1478_v60 = vmul.f32 0.70710677, %v1446_v39  ;;  %v1447_v26 = vmul.f32 %v2261_v31, %v3271_v6  ;;  %v1462_v7 = vmul.f32 0.5, %v1446_v39 }
 0x327   : > { %v2263_v47 = vpop.eup %2262  ;;  %2272 = vrsqrt.f32 %v1423_v43 }
 0x328   : > { %2274 = verf.f32 %v1478_v60  ;;  %v1479_v0 = vmul.f32 0.70710677, %v1447_v26  ;;  %v1444_v5 = vmul.f32 %v2263_v47, %v3278_v58  ;;  %v1463_v49 = vmul.f32 0.5, %v1447_v26 }
 0x329   : > { %v2265_v14 = vpop.eup %2264 }
 0x32a   : > { %2276 = verf.f32 %v1479_v0  ;;  %v1476_v27 = vmul.f32 0.70710677, %v1444_v5  ;;  %v1445_v13 = vmul.f32 %v2265_v14, %v3285_v24  ;;  %v1460_v28 = vmul.f32 0.5, %v1444_v5 }
 0x32b   : > { %v2267_v20 = vpop.eup %2266 }
 0x32c   : > { %2278 = verf.f32 %v1476_v27  ;;  %v1477_v52 = vmul.f32 0.70710677, %v1445_v13  ;;  %v1452_v59 = vmul.f32 %v2267_v20, %v3292_v23  ;;  %v1461_v1 = vmul.f32 0.5, %v1445_v13 }
 0x32d   : > { %v2269_v30 = vpop.eup %2268 }
 0x32e   : > { %2280 = verf.f32 %v1477_v52  ;;  %v1484_v38 = vmul.f32 0.70710677, %v1452_v59  ;;  %v1453_v6 = vmul.f32 %v2269_v30, %v3299_v11  ;;  %v1468_v16 = vmul.f32 0.5, %v1452_v59 }
 0x32f   : > { %v2271_v9 = vpop.eup %2270 }
 0x330   : > { %2282 = verf.f32 %v1484_v38  ;;  %v1485_v15 = vmul.f32 0.70710677, %v1453_v6  ;;  %v1454_v58 = vmul.f32 %v2271_v9, %v3306_v8  ;;  %v1469_v29 = vmul.f32 0.5, %v1453_v6 }
 0x331   : > { %v2273_v62 = vpop.eup %2272 }
 0x332   : > { %v2275_v44 = vpop.eup %2274  ;;  %2284 = verf.f32 %v1485_v15  ;;  %v1486_v24 = vmul.f32 0.70710677, %v1454_v58  ;;  %v1455_v33 = vmul.f32 %v2273_v62, %v3312_v4  ;;  %v1470_v3 = vmul.f32 0.5, %v1454_v58 }
 0x333   : > { %v1510_v23 = vadd.f32 1.0, %v2275_v44 }
 0x334   : > { %v2277_v45 = vpop.eup %2276  ;;  %2286 = verf.f32 %v1486_v24  ;;  %v1487_v41 = vmul.f32 0.70710677, %v1455_v33  ;;  %v1471_v39 = vmul.f32 0.5, %v1455_v33 }
 0x335   : > { %v1526_v11 = vmul.f32 %v1510_v23, %v1462_v7  ;;  %v1511_v25 = vadd.f32 1.0, %v2277_v45 }
 0x336   : > { %v2279_v32 = vpop.eup %2278  ;;  %2288 = verf.f32 %v1487_v41 }
 0x337   : > { %1542 = vst [vmem:[%s3326_s28 + $0x30] sm:$0xff] %v1526_v11  ;;  %v1574_v8 = vadd.f32 %v1526_v11, %v2558_v36  ;;  %v1527_v10 = vmul.f32 %v1511_v25, %v1463_v49  ;;  %v1508_v4 = vadd.f32 1.0, %v2279_v32 }
 0x338   : > { %v2281_v17 = vpop.eup %2280 }
 0x339   : > { %1590 = vst.msk [vmem:[%s3326_s28 + $0x30] sm:$0xff] %vm964_vm3, %v1574_v8  ;;  %1543 = vst [vmem:[%s3326_s28 + $0x38] sm:$0xff] %v1527_v10  ;;  %v1575_v48 = vadd.f32 %v1527_v10, %v2567_v40  ;;  %v1524_v21 = vmul.f32 %v1508_v4, %v1460_v28  ;;  %v1509_v19 = vadd.f32 1.0, %v2281_v17  ;;  %v3480_v40 = vld [vmem:[#allocation7_spill] sm:$0xff] }
 0x33a   : > { %v2283_v34 = vpop.eup %2282 }
 0x33b   : > { %1591 = vst.msk [vmem:[%s3326_s28 + $0x38] sm:$0xff] %vm964_vm3, %v1575_v48  ;;  %1540 = vst [vmem:[%s3326_s28 + $0x20] sm:$0xff] %v1524_v21  ;;  %v1572_v36 = vadd.f32 %v1524_v21, %v2787_v37  ;;  %v1525_v63 = vmul.f32 %v1509_v19, %v1461_v1  ;;  %v1516_v54 = vadd.f32 1.0, %v2283_v34  ;;  %v3481_v37 = vld [vmem:[#allocation5_spill] sm:$0xff] }
 0x33c   : > { %v2285_v57 = vpop.eup %2284 }
 0x33d   : > { %1588 = vst.msk [vmem:[%s3326_s28 + $0x20] sm:$0xff] %vm964_vm3, %v1572_v36  ;;  %1541 = vst [vmem:[%s3326_s28 + $0x28] sm:$0xff] %v1525_v63  ;;  %v1573_v46 = vadd.f32 %v1525_v63, %v3480_v40  ;;  %v1532_v56 = vmul.f32 %v1516_v54, %v1468_v16  ;;  %v1517_v35 = vadd.f32 1.0, %v2285_v57 }
 0x33e   : > { %v2287_v18 = vpop.eup %2286 }
 0x33f   : > { %1589 = vst.msk [vmem:[%s3326_s28 + $0x28] sm:$0xff] %vm964_vm3, %v1573_v46  ;;  %1548 = vst [vmem:[%s3326_s28 + $0x60] sm:$0xff] %v1532_v56  ;;  %v1580_v51 = vadd.f32 %v1532_v56, %v3481_v37  ;;  %v1533_v55 = vmul.f32 %v1517_v35, %v1469_v29  ;;  %v1518_v2 = vadd.f32 1.0, %v2287_v18 }
 0x340   : > { %v2289_v61 = vpop.eup %2288 }
 0x341   : > { %1596 = vst.msk [vmem:[%s3326_s28 + $0x60] sm:$0xff] %vm964_vm3, %v1580_v51  ;;  %1549 = vst [vmem:[%s3326_s28 + $0x68] sm:$0xff] %v1533_v55  ;;  %v1581_v12 = vadd.f32 %v1533_v55, %v3482_v22  ;;  %v1534_v42 = vmul.f32 %v1518_v2, %v1470_v3  ;;  %v1519_v31 = vadd.f32 1.0, %v2289_v61 }
 0x343   : > { %1597 = vst.msk [vmem:[%s3326_s28 + $0x68] sm:$0xff] %vm964_vm3, %v1581_v12  ;;  %1550 = vst [vmem:[%s3326_s28 + $0x70] sm:$0xff] %v1534_v42  ;;  %v1582_v43 = vadd.f32 %v1534_v42, %v2686_v50  ;;  %v1535_v60 = vmul.f32 %v1519_v31, %v1471_v39 }
 0x345   : > { %1598 = vst.msk [vmem:[%s3326_s28 + $0x70] sm:$0xff] %vm964_vm3, %v1582_v43  ;;  %1551 = vst [vmem:[%s3326_s28 + $0x78] sm:$0xff] %v1535_v60  ;;  %v1583_v26 = vadd.f32 %v1535_v60, %v2693_v53 }
 0x347   : > { %1599 = vst.msk [vmem:[%s3326_s28 + $0x78] sm:$0xff] %vm964_vm3, %v1583_v26 }
 0x348   : > { %2303 = shalt.err (!%p2300_p6)
}
 0x349   : > { %s2304_s24 = scalar_lea.hbm %s3401_s8, 2048  ;;  %s2308_s4 = scalar_lea.hbm %s3469_s3, 8192 }
 0x34a   : > { %p2305_p7 = scmp.ne.s32.totalorder %s3401_s8, %s2304_s24  ;;  %p2309_p11 = scmp.lt.u32.totalorder %s3401_s8, %s3469_s3 }
 0x34b   : > { %p2310_p12 = scmp.lt.u32.totalorder %s2308_s4, %s2304_s24  ;;  %p2312_p0 = scmp.lt.u32.totalorder %s2304_s24, %s3401_s8 }
 0x34c   : > { %p2306_p9 = pnand %p2305_p7, %p2467_p3 }
 0x34d   : > { %p2311_p13 = por %p2310_p12, %p2309_p11 }
 0x34e   : > { %p2307_p10 = pneg %p2306_p9 }
 0x34f   : > { %p2313_p1 = por %p2312_p0, %p2311_p13 }
 0x351   : > { %p2314_p2 = pnand %p2313_p1, %p2307_p10 }
 0x353   : > { %2317 = shalt.err (!%p2314_p2)
}
 0x354   : > { %s2395_s6 = smov 128  }
 0x355   : > { %1823 = dma.vmem_to_hbm [thread:$0]  (%p2467_p3), %s3407_s16, 2048, %s3401_s8, %s3413_s9, %s2395_s6, %s2395_s6, %s2387_s20  }
 0x356 PF: > { %p1829_p4 = scmp.ge.s32.totalorder %s2384_s19, 2  ;;  %s1631_s7 = sand.u32 1, %s2356_s12  }
 0x357   : > { %s1632_s10 = scalar_lea.sflag [#allocation3], %s1631_s7 }
 0x358   : > { %p1826_p5 = pnand %p1829_p4, %p2476_p8 }
 0x35a   : > { %2351 = dma.done.wait (!%p1826_p5), %s1632_s10, 2048  }
 0x35b   : > { %2353 = vsyncadd (!%p1826_p5), %s1632_s10, 4294965248  ;;  %s16_s19 = sadd.s32 1, %s2384_s19   ;;  %s3483_s12 = smov %s2360_s13 }
 0x35c   : > { %p13_p6 = scmp.ge.s32.totalorder %s16_s19, 6   ;;  %s3484_s13 = smov %s2364_s14 }
 0x35d   : > { %s3485_s14 = smov %s2485_s30  ;;  %s3486_s15 = smov %s2376_s17 }
 0x35e   : > { %s3487_s16 = smov %s2380_s18  ;;  %s3488_s17 = smov %s3491_s22 }
 0x35f   : > { %s3489_s18 = smov %s3495_s23  ;;  %15 = sbr.rel (!%p13_p6) target bundleno = 5 (0x5), region = 70 }
 0x366   :  { %1637 = vsyncpa [#allocation3], 1 }
 0x367   :  { %1639 = vsyncpa [#allocation3 + $0x1], 1 }

// kernel: tpu_custom_call.1
= control target key start
LH: loop header
LB: loop body
LE: loop exit
PB: predicated region body
PF: predicated region fallthrough
CT: control target
= control target key end

     0   :  { %8 = vsyncpa [#allocation3], 0  ;;  %s3466_s0 = inlined_call_operand.vmem [shape: f32[2,18,24,4], index: 0, kind: input, shape index: {}]   ;;  %s3467_s1 = inlined_call_operand.vmem [shape: bf16[36,128], index: 1, kind: input, shape index: {}]   ;;  %s3468_s2 = inlined_call_operand.vmem [shape: f32[1,128], index: 2, kind: input, shape index: {}]   ;;  %s3469_s3 = inlined_call_operand.hbm [shape: f32[2,256,128], index: 3, kind: output, shape index: {}]  }
   0x1   :  { %10 = vsyncpa [#allocation3 + $0x1], 0  ;;  %s2416_s12 = smov 0   ;;  %s2418_s13 = smov 0  }
   0x2   :  { %s2420_s14 = smov 0   ;;  %s2422_s15 = smov 0  }
   0x3   :  { %s2424_s16 = smov 0   ;;  %s2426_s17 = smov 0  }
   0x4   :  { %s2428_s18 = smov 0   ;;  %s2430_s19 = smov 0  }
   0x5 LB: > { %s1702_s20 = sadd.s32 4294967295, %s2384_s19   ;;  %s1703_s21 = sadd.s32 4294967294, %s2384_s19   ;;  %s2384_s19 = sphi %s2430_s19, %s16_s19   ;;  %s2380_s18 = sphi %s2428_s18, %s3489_s18   ;;  %s2376_s17 = sphi %s2426_s17, %s3488_s17   ;;  %s2372_s16 = sphi %s2424_s16, %s3487_s16   ;;  %s2368_s15 = sphi %s2422_s15, %s3486_s15   ;;  %s2364_s14 = sphi %s2420_s14, %s3485_s14   ;;  %s2360_s13 = sphi %s2418_s13, %s3484_s13   ;;  %s2356_s12 = sphi %s2416_s12, %s3483_s12  }
   0x6   : > { %s25_s22 = sadd.s32 1, %s2376_s17  ;;  %s28_s23 = sadd.s32 1, %s2380_s18 }
   0x7   : > { %p26_p0 = scmp.ge.s32.totalorder %s25_s22, 2  ;;  %p115_p1 = scmp.ne.s32.totalorder %s2364_s14, %s2360_s13 }
   0x8   : > { %p116_p2 = scmp.eq.s32.totalorder %s1702_s20, 3  ;;  %p121_p5 = scmp.ne.s32.totalorder %s2360_s13, %s2356_s12 }
   0x9   : > { %s3491_s22 = smov (%p26_p0, %s25_s22), 0  ;;  %s3493_s23 = smov (!%p26_p0, %s28_s23), %s2380_s18 }
   0xa   : > { %s101_s24 = ssub.s32 %s2376_s17, %s3491_s22  ;;  %p2467_p3 = por %p116_p2, %p115_p1 }
   0xb   : > { %p30_p4 = scmp.ge.s32.totalorder %s3493_s23, 2  ;;  %p122_p6 = scmp.eq.s32.totalorder %s1703_s21, 3 }
   0xc   : > { %p1706_p7 = scmp.ge.s32.totalorder %s2384_s19, 1  ;;  %p154_p9 = scmp.lt.s32.totalorder %s2384_s19, 5 }
   0xd   : > { %s3495_s23 = smov (%p30_p4, %s3493_s23), 0  ;;  %p2476_p8 = por %p122_p6, %p121_p5 }
   0xe   : > { %s100_s27 = ssub.s32 %s2380_s18, %s3495_s23  ;;  %s105_s28 = sadd.s32 1, %s2364_s14 }
   0xf   : > { %s102_s29 = sor.u32 %s101_s24, %s100_s27  ;;  %p155_p10 = pnand %p1706_p7, %p154_p9 }
  0x10   : > { %p103_p11 = scmp.eq.s32.totalorder %s102_s29, 0 }
  0x11   : > { %158 = sbr.rel (%p155_p10) target bundleno = 854 (0x356), region = 32 }
  0x12   : > { %s2485_s30 = scalar_select %p103_p11, %s2364_s14, %s105_s28  }
  0x18   : > { %p178_p12 = scmp.lt.s32.totalorder %s2372_s16, 1  ;;  %s1710_s5 = smul.u32 192, %s2368_s15  ;;  %vm290_vm0 = vcmask 1046528   ;;  %vm379_vm1 = vcmask 1045504   ;;  %vm1160_vm2 = vcmask 1041408   ;;  %vm964_vm3 = vcmask 31744  }
  0x19   : > { %s2386_s11 = smov 4   ;;  %s2387_s20 = smov 8   ;;  %vm981_vm4 = vcmask 64512   ;;  %vm998_vm5 = vcmask 97280   ;;  %vm1015_vm6 = vcmask 130048   ;;  %vm1032_vm7 = vcmask 162816  }
  0x1a   : > { %s179_s4 = scalar_select %p178_p12, %s2372_s16, 1  ;;  %vm1049_vm8 = vcmask 195584   ;;  %vm1066_vm9 = vcmask 228352   ;;  %vm1083_vm10 = vcmask 261120   ;;  %vm1135_vm11 = vcmask 293888  }
  0x1b   : > { %s2388_s21 = smov 12   ;;  %s2389_s24 = smov 16  }
  0x1c   : > { %s1822_s6 = smul.u32 432, %s179_s4  ;;  %s2390_s27 = smov 20  }
  0x1d   : > { %s2391_s28 = smov 24   ;;  %s1776_s29 = sshll.u32 %s2368_s15, 4 }
  0x1e   : > { %s182_s9 = scalar_lea.vmem %s3466_s0, %s1822_s6  ;;  %s1777_s4 = sshll.u32 %s2372_s16, 5 }
  0x1f   : > { %s2493_s10 = scalar_lea.vmem %s182_s9, %s1710_s5  ;;  %s2392_s5 = smov 28  }
  0x20   : > { %v2496_v0 = vld [vmem:[%s2493_s10 + $0x18] sm:$0xff]  ;;  %v2499_v1 = vld [vmem:[%s2493_s10 + $0x20] sm:$0xff]  ;;  %v2502_v2 = vld [vmem:[%s2493_s10 + $0x28] sm:$0xff] }
  0x21   : > { %v296_v3 = vrot.slane %v2496_v0, 1  ;;  %v297_v4 = vrot.slane %v2499_v1, 1  ;;  %v299_v5 = vrot.slane %v2502_v2, 1  ;;  %v388_v6 = vrot.slane %v2502_v2, 2  ;;  %v2509_v7 = vld [vmem:[%s2493_s10] sm:$0xff]  ;;  %v2512_v8 = vld [vmem:[%s2493_s10 + $0x8] sm:$0xff] }
  0x22   : > { %v190_v9 = vld [vmem:[%s2493_s10 + $0x10] sm:$0xff]  ;;  %v291_v10 = vrot.slane %v2509_v7, 1  ;;  %v292_v11 = vrot.slane %v2512_v8, 1  ;;  %v2518_v12 = vld [vmem:[%s2493_s10 + $0x78] sm:$0xff]  ;;  %v2521_v13 = vld [vmem:[%s2493_s10 + $0x80] sm:$0xff]  ;;  %v380_v14 = vrot.slane %v2509_v7, 2  ;;  %v1938_v2 = vpack.i.bf16 %v2499_v1, %v2496_v0 }
  0x23   : > { %v2525_v15 = vsel %vm290_vm0, %v296_v3, %v297_v4  ;;  %v2528_v16 = vsel %vm290_vm0, %v297_v4, %v299_v5  ;;  %v294_v17 = vrot.slane %v190_v9, 1  ;;  %v383_v18 = vrot.slane %v190_v9, 2  ;;  %v205_v19 = vld [vmem:[%s2493_s10 + $0x88] sm:$0xff]  ;;  %v2532_v20 = vld [vmem:[%s2493_s10 + $0x60] sm:$0xff]  ;;  %v202_v26 = vld [vmem:[%s2493_s10 + $0x70] sm:$0xff] }
  0x24   : > { %v2535_v21 = vld [vmem:[%s2493_s10 + $0x68] sm:$0xff]  ;;  %v2539_v22 = vpack.i.bf16 %v2528_v16, %v2525_v15  ;;  %v293_v23 = vsel %vm290_vm0, %v291_v10, %v292_v11  ;;  %v316_v24 = vrot.slane %v2518_v12, 1  ;;  %v317_v25 = vrot.slane %v2521_v13, 1  ;;  %v2606_v61 = vld [vmem:[%s2493_s10 + $0x90] sm:$0xff]  ;;  %v2609_v62 = vld [vmem:[%s2493_s10 + $0x98] sm:$0xff] }
  0x25   : > { %v295_v27 = vsel %vm290_vm0, %v292_v11, %v294_v17  ;;  %v319_v28 = vrot.slane %v205_v19, 1  ;;  %v311_v29 = vrot.slane %v2532_v20, 1  ;;  %v312_v30 = vrot.slane %v2535_v21, 1  ;;  %v2612_v63 = vld [vmem:[%s2493_s10 + $0xa0] sm:$0xff]  ;;  %v2622_v4 = vld [vmem:[%s2493_s10 + $0x30] sm:$0xff]  ;;  %v2625_v5 = vld [vmem:[%s2493_s10 + $0x38] sm:$0xff] }
  0x26   : > { %1914 = vrot.lane.b32.xlu1 %v2539_v22, %s2386_s11  ;;  %v1903_v31 = vpack.i.bf16 %v295_v27, %v293_v23  ;;  %v2551_v32 = vsel %vm290_vm0, %v316_v24, %v317_v25  ;;  %v314_v33 = vrot.slane %v202_v26, 1  ;;  %v400_v34 = vrot.slane %v2532_v20, 2  ;;  %v2619_v3 = vld [vmem:[%s2493_s10 + $0x40] sm:$0xff]  ;;  %v2645_v23 = vld [vmem:[%s2493_s10 + $0xc8] sm:$0xff] }
  0x27   : > { %v2555_v35 = vsel %vm290_vm0, %v317_v25, %v319_v28  ;;  %v2558_v36 = vsel %vm290_vm0, %v311_v29, %v312_v30  ;;  %v401_v37 = vrot.slane %v2535_v21, 2  ;;  %v403_v38 = vrot.slane %v202_v26, 2  ;;  %v1736_v25 = vld [vmem:[%s2493_s10 + $0xd0] sm:$0xff]  ;;  %v2659_v29 = vld [vmem:[%s2493_s10 + $0xc0] sm:$0xff] }
  0x28   : > { %1904 = vrot.lane.b32.xlu0 %v1903_v31, %s2386_s11  ;;  %v2564_v39 = vpack.i.bf16 %v2555_v35, %v2551_v32  ;;  %v2567_v40 = vsel %vm290_vm0, %v312_v30, %v314_v33  ;;  %v381_v41 = vrot.slane %v2512_v8, 2  ;;  %v405_v42 = vrot.slane %v2518_v12, 2 }
  0x29   : > { %v2573_v43 = vpack.i.bf16 %v2567_v40, %v2558_v36  ;;  %v402_v44 = vsel %vm379_vm1, %v400_v34, %v401_v37  ;;  %v404_v45 = vsel %vm379_vm1, %v401_v37, %v403_v38  ;;  %v406_v46 = vrot.slane %v2521_v13, 2  ;;  %v2671_v38 = vld [vmem:[%s2493_s10 + $0xe0] sm:$0xff] }
  0x2a   : > { %1919 = vrot.lane.b32.xlu1 %v2564_v39, %s2386_s11  ;;  %v2580_v47 = vpack.i.bf16 %v404_v45, %v402_v44  ;;  %v382_v48 = vsel %vm379_vm1, %v380_v14, %v381_v41  ;;  %v384_v49 = vsel %vm379_vm1, %v381_v41, %v383_v18  ;;  %v408_v50 = vrot.slane %v205_v19, 2  ;;  %v1762_v41 = vld [vmem:[%s2493_s10 + $0xe8] sm:$0xff]  ;;  %v2677_v45 = vld [vmem:[%s2493_s10 + $0xd8] sm:$0xff] }
  0x2b   : > { %v407_v51 = vsel %vm379_vm1, %v405_v42, %v406_v46  ;;  %v385_v52 = vrot.slane %v2496_v0, 2  ;;  %v386_v53 = vrot.slane %v2499_v1, 2  ;;  %v1923_v54 = vpack.i.bf16 %v384_v49, %v382_v48 }
  0x2c   : > { %1909 = vrot.lane.b32.xlu0 %v2573_v43, %s2386_s11  ;;  %v409_v55 = vsel %vm379_vm1, %v406_v46, %v408_v50  ;;  %v2603_v60 = vpack.i.bf16 %v2521_v13, %v2518_v12  ;;  %v2632_v9 = vpack.i.bf16 %v2609_v62, %v2606_v61  ;;  %v565_v10 = vrot.slane %v2606_v61, 1 }
  0x2d   : > { %v387_v56 = vsel %vm379_vm1, %v385_v52, %v386_v53  ;;  %v389_v57 = vsel %vm379_vm1, %v386_v53, %v388_v6  ;;  %v2594_v58 = vpack.i.bf16 %v409_v55, %v407_v51  ;;  %v566_v6 = vrot.slane %v2609_v62, 1 }
  0x2e   : > { %1929 = vrot.lane.b32.xlu1 %v2580_v47, %s2387_s20  ;;  %v2597_v59 = vpack.i.bf16 %v389_v57, %v387_v56  ;;  %v568_v11 = vrot.slane %v2612_v63, 1  ;;  %v546_v14 = vrot.slane %v2625_v5, 1  ;;  %v545_v17 = vrot.slane %v2622_v4, 1 }
  0x2f   : > { %v548_v18 = vrot.slane %v2619_v3, 1  ;;  %v2642_v19 = vpack.i.bf16 %v2625_v5, %v2622_v4  ;;  %v576_v24 = vrot.slane %v2645_v23, 1  ;;  %v654_v26 = vrot.slane %v2609_v62, 2 }
  0x30   : > { %1924 = vrot.lane.b32.xlu0 %v1923_v54, %s2387_s20  ;;  %v2653_v27 = vsel %vm290_vm0, %v565_v10, %v566_v6  ;;  %v2656_v28 = vsel %vm290_vm0, %v566_v6, %v568_v11  ;;  %v664_v30 = vrot.slane %v2645_v23, 2  ;;  %v2663_v31 = vsel %vm290_vm0, %v545_v17, %v546_v14 }
  0x31   : > { %v2666_v33 = vsel %vm290_vm0, %v546_v14, %v548_v18  ;;  %v575_v34 = vrot.slane %v2659_v29, 1  ;;  %v663_v37 = vrot.slane %v2659_v29, 2  ;;  %v578_v42 = vrot.slane %v1736_v25, 1 }
  0x32   : > { %1944 = vrot.lane.b32.xlu1 %v2594_v58, %s2387_s20  ;;  %v666_v44 = vrot.slane %v1736_v25, 2  ;;  %v824_v46 = vrot.slane %v2671_v38, 1  ;;  %v912_v48 = vrot.slane %v2671_v38, 2  ;;  %v2683_v49 = vpack.i.bf16 %v2656_v28, %v2653_v27 }
  0x33   : > { %v2686_v50 = vsel %vm290_vm0, %v575_v34, %v576_v24  ;;  %v665_v51 = vsel %vm379_vm1, %v663_v37, %v664_v30  ;;  %v823_v52 = vrot.slane %v2677_v45, 1  ;;  %v2693_v53 = vsel %vm290_vm0, %v576_v24, %v578_v42 }
  0x34   : > { %1934 = vrot.lane.b32.xlu0 %v2597_v59, %s2387_s20  ;;  %v667_v54 = vsel %vm379_vm1, %v664_v30, %v666_v44  ;;  %v911_v55 = vrot.slane %v2677_v45, 2  ;;  %v826_v56 = vrot.slane %v1762_v41, 1  ;;  %v653_v57 = vrot.slane %v2606_v61, 2 }
  0x35   : > { %v2699_v6 = vpack.i.bf16 %v667_v54, %v665_v51  ;;  %v2702_v10 = vsel %vm290_vm0, %v823_v52, %v824_v46  ;;  %v2708_v11 = vpack.i.bf16 %v2666_v33, %v2663_v31  ;;  %v914_v18 = vrot.slane %v1762_v41, 2  ;;  %v1756_v51 = vld [vmem:[%s2493_s10 + $0xb8] sm:$0xff]  ;;  %v2754_v52 = vld [vmem:[%s2493_s10 + $0x48] sm:$0xff]  ;;  %v2757_v54 = vld [vmem:[%s2493_s10 + $0x50] sm:$0xff] }
  0x36   : > { %1949 = vrot.lane.b32.xlu1 %v2603_v60, %s2388_s21  ;;  %v2711_v14 = vsel %vm290_vm0, %v824_v46, %v826_v56  ;;  %v2714_v17 = vsel %vm379_vm1, %v911_v55, %v912_v48  ;;  %v633_v24 = vrot.slane %v2622_v4, 2  ;;  %v636_v25 = vrot.slane %v2619_v3, 2  ;;  %v2745_v46 = vld [vmem:[%s2493_s10 + $0xa8] sm:$0xff]  ;;  %v1744_v55 = vld [vmem:[%s2493_s10 + $0x58] sm:$0xff] }
  0x37   : > { %v2724_v30 = vsel %vm379_vm1, %v912_v48, %v914_v18  ;;  %v655_v34 = vsel %vm379_vm1, %v653_v57, %v654_v26  ;;  %v2748_v48 = vld [vmem:[%s2493_s10 + $0xb0] sm:$0xff]  ;;  %v813_v57 = vrot.slane %v2745_v46, 1  ;;  %v2013_v18 = vpack.i.bf16 %v2757_v54, %v2754_v52  ;;  %s2393_s10 = smov 32  }
  0x38   : > { %1939 = vrot.lane.b32.xlu0 %v1938_v2, %s2388_s21  ;;  %v656_v2 = vrot.slane %v2612_v63, 2  ;;  %v634_v63 = vrot.slane %v2625_v5, 2  ;;  %v814_v56 = vrot.slane %v2748_v48, 1  ;;  %v882_v3 = vrot.slane %v2757_v54, 2 }
  0x3a   : > { %1959 = vrot.lane.b32.xlu1 %v2632_v9, %s2388_s21  ;;  %v657_v37 = vsel %vm379_vm1, %v654_v26, %v656_v2  ;;  %v635_v41 = vsel %vm379_vm1, %v633_v24, %v634_v63  ;;  %v637_v42 = vsel %vm379_vm1, %v634_v63, %v636_v25  ;;  %v816_v2 = vrot.slane %v1756_v51, 1  ;;  %v2223_v25 = vld [vmem:[%s3467_s1] sm:$0xff]  }
  0x3b   : > { %v2736_v44 = vpack.i.bf16 %v657_v37, %v655_v34  ;;  %v2740_v26 = vpack.i.bf16 %v637_v42, %v635_v41  ;;  %v794_v63 = vrot.slane %v2757_v54, 1  ;;  %v796_v24 = vrot.slane %v1744_v55, 1  ;;  %1792 = vmatprep.subr.bf16.mxu0 %v2223_v25  ;;  %1814 = vmatprep.subr.bf16.mxu1 %v2223_v25 }
  0x3c   : > { %1954 = vrot.lane.b32.xlu0 %v2642_v19, %s2388_s21  ;;  %v2780_v34 = vsel %vm290_vm0, %v813_v57, %v814_v56  ;;  %1793 = vmatpush3.bf16.msra.mxu0 %v2223_v25 }
  0x3d   : > { %3475 = vst [vmem:[#allocation5_spill] sm:$0xff] %v2780_v34  ;;  %v2790_v41 = vsel %vm290_vm0, %v794_v63, %v796_v24  ;;  %1817 = vmatpush3.bf16.msra.mxu1 %v2223_v25  ;;  %v904_v24 = vrot.slane %v1756_v51, 2 }
  0x3e   : > { %1969 = vrot.lane.b32.xlu1 %v2564_v39, %s2389_s24  ;;  %3477 = vst [vmem:[#allocation7_spill] sm:$0xff] %v2790_v41 }
  0x40   : > { %1964 = vrot.lane.b32.xlu0 %v2539_v22, %s2389_s24  ;;  %v881_v22 = vrot.slane %v2754_v52, 2 }
  0x42   : > { %1979 = vrot.lane.b32.xlu1 %v2683_v49, %s2389_s24 }
  0x44   : > { %1974 = vrot.lane.b32.xlu0 %v2708_v11, %s2389_s24 }
  0x46   : > { %1989 = vrot.lane.b32.xlu1 %v2594_v58, %s2390_s27 }
  0x48   : > { %1984 = vrot.lane.b32.xlu0 %v2597_v59, %s2390_s27  ;;  %v2763_v59 = vpack.i.bf16 %v2748_v48, %v2745_v46 }
  0x4a   : > { %1999 = vrot.lane.b32.xlu1 %v2736_v44, %s2390_s27 }
  0x4c   : > { %1994 = vrot.lane.b32.xlu0 %v2740_v26, %s2390_s27 }
  0x4e   : > { %2009 = vrot.lane.b32.xlu1 %v2632_v9, %s2391_s28  ;;  %v793_v9 = vrot.slane %v2754_v52, 1 }
  0x50   : > { %2004 = vrot.lane.b32.xlu0 %v2642_v19, %s2391_s28  ;;  %v2783_v19 = vsel %vm290_vm0, %v814_v56, %v816_v2  ;;  %v2787_v37 = vsel %vm290_vm0, %v793_v9, %v794_v63  ;;  %v2224_v56 = vld [vmem:[%s3467_s1 + $0x8] sm:$0xff]   ;;  %v2225_v2 = vld [vmem:[%s3467_s1 + $0x10] ss:$0 sps:$4 sm:$0x33]   ;;  %v902_v63 = vrot.slane %v2748_v48, 2  ;;  %v901_v9 = vrot.slane %v2745_v46, 2 }
  0x51   : > { %3476 = vst [vmem:[#allocation6_spill] sm:$0xff] %v2783_v19  ;;  %v2038_v42 = vpack.i.bf16 %v2783_v19, %v2780_v34  ;;  %v2033_v57 = vpack.i.bf16 %v2790_v41, %v2787_v37  ;;  %1794 = vmatprep.subr.bf16.mxu0 %v2224_v56  ;;  %1815 = vmatprep.subr.bf16.mxu1 %v2224_v56  ;;  %v1162_v25 = vsel %vm1160_vm2, %v2225_v2, 0  ;;  %v884_v19 = vrot.slane %v1744_v55, 2 }
  0x52   : > { %2019 = vrot.lane.b32.xlu1 %v2763_v59, %s2391_s28  ;;  %1795 = vmatpush3.bf16.msra.mxu0 %v2224_v56  ;;  %v905_v51 = vsel %vm379_vm1, %v902_v63, %v904_v24  ;;  %v883_v34 = vsel %vm379_vm1, %v881_v22, %v882_v3  ;;  %v2138_v22 = vpack.i.bf16 %v2693_v53, %v2686_v50 }
  0x53   : > { %1818 = vmatpush3.bf16.msra.mxu1 %v2224_v56  ;;  %1820 = vmatprep.subr.msk.bf16.mxu0 %vm1160_vm2, %v2225_v2  ;;  %v903_v56 = vsel %vm379_vm1, %v901_v9, %v902_v63  ;;  %v885_v41 = vsel %vm379_vm1, %v882_v3, %v884_v19 }
  0x54   : > { %2014 = vrot.lane.b32.xlu0 %v2013_v18, %s2391_s28  ;;  %1821 = vmatprep.subr.msk.bf16.mxu1 %vm1160_vm2, %v2225_v2  ;;  %v2068_v55 = vpack.i.bf16 %v905_v51, %v903_v56  ;;  %v2063_v2 = vpack.i.bf16 %v885_v41, %v883_v34 }
  0x56   : > { %2029 = vrot.lane.b32.xlu1 %v2683_v49, %s2392_s5  ;;  %1797 = vmatpush3.bf16.msra.mxu0 %v1162_v25 }
  0x57   : > { %1819 = vmatpush3.bf16.msra.mxu1 %v1162_v25 }
  0x58   : > { %2024 = vrot.lane.b32.xlu0 %v2708_v11, %s2392_s5 }
  0x5a   : > { %2039 = vrot.lane.b32.xlu1 %v2038_v42, %s2392_s5 }
  0x5c   : > { %2034 = vrot.lane.b32.xlu0 %v2033_v57, %s2392_s5 }
  0x5e   : > { %2049 = vrot.lane.b32.xlu1 %v2736_v44, %s2393_s10 }
  0x60   : > { %2044 = vrot.lane.b32.xlu0 %v2740_v26, %s2393_s10 }
  0x62   : > { %2059 = vrot.lane.b32.xlu1 %v2683_v49, %s2386_s11  ;;  %v2118_v49 = vpack.i.bf16 %v2645_v23, %v2659_v29  ;;  %v2178_v23 = vpack.i.bf16 %v2671_v38, %v2677_v45 }
  0x64   : > { %2054 = vrot.lane.b32.xlu0 %v2708_v11, %s2386_s11  ;;  %v2113_v11 = vpack.i.bf16 %v2535_v21, %v2532_v20 }
  0x66   : > { %2069 = vrot.lane.b32.xlu1 %v2068_v55, %s2393_s10 }
  0x68   : > { %2064 = vrot.lane.b32.xlu0 %v2063_v2, %s2393_s10 }
  0x6a   : > { %2079 = vrot.lane.b32.xlu1 %v2038_v42, %s2386_s11 }
  0x6c   : > { %2074 = vrot.lane.b32.xlu0 %v2033_v57, %s2386_s11  ;;  %s2394_s11 = smov [#allocation2]  }
  0x6e   : > { %2089 = vrot.lane.b32.xlu1 %v2736_v44, %s2387_s20  ;;  %v3478_v44 = vpack.i.bf16 %v2711_v14, %v2702_v10 }
  0x70   : > { %2084 = vrot.lane.b32.xlu0 %v2740_v26, %s2387_s20  ;;  %v3479_v26 = vpack.i.bf16 %v2724_v30, %v2714_v17 }
  0x72   : > { %2099 = vrot.lane.b32.xlu1 %v2068_v55, %s2387_s20 }
  0x74   : > { %2094 = vrot.lane.b32.xlu0 %v2063_v2, %s2387_s20 }
  0x76   : > { %2109 = vrot.lane.b32.xlu1 %v2763_v59, %s2388_s21 }
  0x78   : > { %2104 = vrot.lane.b32.xlu0 %v2013_v18, %s2388_s21 }
  0x7a   : > { %2119 = vrot.lane.b32.xlu1 %v2118_v49, %s2388_s21 }
  0x7c   : > { %2114 = vrot.lane.b32.xlu0 %v2113_v11, %s2388_s21  ;;  %s2294_s21 = sshll.u32 %s2394_s11, 4  ;;  %s2295_s21 = int_to_ptr.vmem [resolvable:$false] %s2294_s21 }
  0x7e   : > { %2129 = vrot.lane.b32.xlu1 %v2038_v42, %s2389_s24 }
  0x80   : > { %2124 = vrot.lane.b32.xlu0 %v2033_v57, %s2389_s24 }
  0x82   : > { %2139 = vrot.lane.b32.xlu1 %v2138_v22, %s2389_s24 }
  0x84   : > { %2134 = vrot.lane.b32.xlu0 %v2573_v43, %s2389_s24  ;;  %s175_s24 = sand.u32 1, %s2360_s13  }
  0x85   : > { %s3413_s9 = scalar_lea.sflag [#allocation3], %s175_s24 }
  0x86   : > { %2149 = vrot.lane.b32.xlu1 %v2068_v55, %s2390_s27 }
  0x88   : > { %2144 = vrot.lane.b32.xlu0 %v2063_v2, %s2390_s27 }
  0x8a   : > { %2159 = vrot.lane.b32.xlu1 %v2699_v6, %s2390_s27 }
  0x8c   : > { %2154 = vrot.lane.b32.xlu0 %v2580_v47, %s2390_s27  ;;  %s1707_s27 = sshll.u32 %s175_s24, 7 }
  0x8e   : > { %2169 = vrot.lane.b32.xlu1 %v2118_v49, %s2391_s28 }
  0x90   : > { %2164 = vrot.lane.b32.xlu0 %v2113_v11, %s2391_s28 }
  0x92   : > { %2179 = vrot.lane.b32.xlu1 %v2178_v23, %s2391_s28 }
  0x94   : > { %2174 = vrot.lane.b32.xlu0 %v2603_v60, %s2391_s28  ;;  %s3326_s28 = scalar_lea.vmem [#allocation2], %s1707_s27  ;;  %s2296_s27 = scalar_lea.vmem %s2295_s21, 4096 }
  0x95   : > { %s1616_s16 = sshll.u32 %s3326_s28, 4  ;;  %s3407_s16 = int_to_ptr.vmem [resolvable:$true] %s1616_s16 }
  0x96   : > { %2189 = vrot.lane.b32.xlu1 %v2138_v22, %s2392_s5  ;;  %p2297_p2 = scmp.lt.s32.totalorder %s3407_s16, %s2295_s21 }
  0x98   : > { %2184 = vrot.lane.b32.xlu0 %v2573_v43, %s2392_s5  ;;  %v1915_v29 = vpop.permute.xlu1 %1914 }
  0x99   : > { %v1917_v41 = vunpack.i.h.bf16 %v1915_v29  ;;  %v1916_v42 = vunpack.i.l.bf16 %v1915_v29 }
  0x9a   : > { %v1905_v3 = vpop.permute.xlu0 %1904  ;;  %2199 = vrot.lane.b32.xlu1 %v3478_v44, %s2392_s5 }
  0x9b   : > { %v1907_v56 = vunpack.i.h.bf16 %v1905_v3  ;;  %v1906_v51 = vunpack.i.l.bf16 %v1905_v3  ;;  %v968_v11 = vsel %vm964_vm3, %v2499_v1, %v1917_v41  ;;  %v967_v22 = vsel %vm964_vm3, %v2496_v0, %v1916_v42 }
  0x9c   : > { %2194 = vrot.lane.b32.xlu0 %v2564_v39, %s2392_s5  ;;  %v1920_v38 = vpop.permute.xlu1 %1919  ;;  %s1613_s5 = sadd.s32 %s1777_s4, %s1776_s29 }
  0x9d   : > { %v1922_v57 = vunpack.i.h.bf16 %v1920_v38  ;;  %v1921_v63 = vunpack.i.l.bf16 %v1920_v38  ;;  %s1778_s15 = sshll.u32 %s1613_s5, 7 }
  0x9e   : > { %v1910_v45 = vpop.permute.xlu0 %1909  ;;  %2209 = vrot.lane.b32.xlu1 %v2699_v6, %s2393_s10  ;;  %s3401_s8 = scalar_lea.hbm %s3469_s3, %s1778_s15 }
  0x9f   : > { %v1912_v24 = vunpack.i.h.bf16 %v1910_v45  ;;  %v1911_v25 = vunpack.i.l.bf16 %v1910_v45  ;;  %v976_v44 = vsel %vm964_vm3, %v2521_v13, %v1922_v57  ;;  %v975_v38 = vsel %vm964_vm3, %v2518_v12, %v1921_v63 }
  0xa0   : > { %2204 = vrot.lane.b32.xlu0 %v2580_v47, %s2393_s10  ;;  %v1930_v60 = vpop.permute.xlu1 %1929  ;;  %v965_v13 = vsel %vm964_vm3, %v2509_v7, %v1906_v51 }
  0xa1   : > { %v1932_v55 = vunpack.i.h.bf16 %v1930_v60  ;;  %v1931_v2 = vunpack.i.l.bf16 %v1930_v60  ;;  %v973_v1 = vsel %vm964_vm3, %v2532_v20, %v1911_v25 }
  0xa2   : > { %v1925_v43 = vpop.permute.xlu0 %1924  ;;  %2219 = vrot.lane.b32.xlu1 %v3479_v26, %s2393_s10  ;;  %v974_v26 = vsel %vm964_vm3, %v2535_v21, %v1912_v24 }
  0xa3   : > { %v1927_v23 = vunpack.i.h.bf16 %v1925_v43  ;;  %v1926_v29 = vunpack.i.l.bf16 %v1925_v43  ;;  %v966_v43 = vsel %vm964_vm3, %v2512_v8, %v1907_v56  ;;  %v990_v12 = vsel %vm981_vm4, %v973_v1, %v1931_v2 }
  0xa4   : > { %2214 = vrot.lane.b32.xlu0 %v2594_v58, %s2393_s10  ;;  %v1945_v10 = vpop.permute.xlu1 %1944  ;;  %s2290_s10 = scalar_lea.vmem %s3407_s16, 2048 }
  0xa5   : > { %v1947_v3 = vunpack.i.h.bf16 %v1945_v10  ;;  %v1946_v45 = vunpack.i.l.bf16 %v1945_v10  ;;  %v991_v10 = vsel %vm981_vm4, %v974_v26, %v1932_v55  ;;  %v982_v21 = vsel %vm981_vm4, %v965_v13, %v1926_v29  ;;  %p2291_p13 = scmp.ne.s32.totalorder %s3407_s16, %s2290_s10  ;;  %p2298_p4 = scmp.lt.s32.totalorder %s2296_s27, %s2290_s10 }
  0xa6   : > { %v1935_v39 = vpop.permute.xlu0 %1934  ;;  %v983_v57 = vsel %vm981_vm4, %v966_v43, %v1927_v23 }
  0xa7   : > { %v1937_v0 = vunpack.i.h.bf16 %v1935_v39  ;;  %v1936_v41 = vunpack.i.l.bf16 %v1935_v39  ;;  %v992_v8 = vsel %vm981_vm4, %v975_v38, %v1946_v45  ;;  %v993_v63 = vsel %vm981_vm4, %v976_v44, %v1947_v3  ;;  %p2292_p0 = pnand %p2291_p13, %p2467_p3  ;;  %p2299_p5 = por %p2298_p4, %p2297_p2 }
  0xa8   : > { %v2882_v14 = vpop.permute.xlu1 %1949 }
  0xa9   : > { %v1952_v20 = vunpack.i.h.bf16 %v2882_v14  ;;  %v1951_v39 = vunpack.i.l.bf16 %v2882_v14  ;;  %v985_v56 = vsel %vm981_vm4, %v968_v11, %v1937_v0  ;;  %v984_v51 = vsel %vm981_vm4, %v967_v22, %v1936_v41  ;;  %p2293_p1 = pneg %p2292_p0 }
  0xaa   : > { %v2884_v59 = vpop.permute.xlu0 %1939 }
  0xab   : > { %v1942_v7 = vunpack.i.h.bf16 %v2884_v59  ;;  %v1941_v24 = vunpack.i.l.bf16 %v2884_v59  ;;  %v1007_v38 = vsel %vm998_vm5, %v990_v12, %v1951_v39  ;;  %v1008_v11 = vsel %vm998_vm5, %v991_v10, %v1952_v20  ;;  %p2300_p6 = pnand %p2299_p5, %p2293_p1 }
  0xac   : > { %v2886_v6 = vpop.permute.xlu1 %1959 }
  0xad   : > { %v1962_v55 = vunpack.i.h.bf16 %v2886_v6  ;;  %v1961_v2 = vunpack.i.l.bf16 %v2886_v6  ;;  %v999_v6 = vsel %vm998_vm5, %v982_v21, %v1941_v24 }
  0xae   : > { %v2888_v18 = vpop.permute.xlu0 %1954 }
  0xaf   : > { %v1957_v14 = vunpack.i.h.bf16 %v2888_v18  ;;  %v1956_v23 = vunpack.i.l.bf16 %v2888_v18  ;;  %v1000_v18 = vsel %vm998_vm5, %v983_v57, %v1942_v7  ;;  %v1009_v1 = vsel %vm998_vm5, %v992_v8, %v1961_v2 }
  0xb0   : > { %v2890_v47 = vpop.permute.xlu1 %1969  ;;  %v1010_v0 = vsel %vm998_vm5, %v993_v63, %v1962_v55 }
  0xb1   : > { %v1972_v29 = vunpack.i.h.bf16 %v2890_v47  ;;  %v1971_v44 = vunpack.i.l.bf16 %v2890_v47  ;;  %v1002_v13 = vsel %vm998_vm5, %v985_v56, %v1957_v14 }
  0xb2   : > { %v2892_v34 = vpop.permute.xlu0 %1964 }
  0xb3   : > { %v1967_v22 = vunpack.i.h.bf16 %v2892_v34  ;;  %v1966_v3 = vunpack.i.l.bf16 %v2892_v34  ;;  %v1001_v34 = vsel %vm998_vm5, %v984_v51, %v1956_v23  ;;  %v1024_v12 = vsel %vm1015_vm6, %v1007_v38, %v1971_v44 }
  0xb4   : > { %v2894_v19 = vpop.permute.xlu1 %1979  ;;  %v1025_v10 = vsel %vm1015_vm6, %v1008_v11, %v1972_v29 }
  0xb5   : > { %v1982_v45 = vunpack.i.h.bf16 %v2894_v19  ;;  %v1981_v47 = vunpack.i.l.bf16 %v2894_v19  ;;  %v1016_v19 = vsel %vm1015_vm6, %v999_v6, %v1966_v3  ;;  %v1017_v57 = vsel %vm1015_vm6, %v1000_v18, %v1967_v22 }
  0xb6   : > { %v2896_v17 = vpop.permute.xlu0 %1974 }
  0xb7   : > { %v1027_v8 = vsel %vm1015_vm6, %v1010_v0, %v1982_v45  ;;  %v1977_v63 = vunpack.i.h.bf16 %v2896_v17  ;;  %v1976_v7 = vunpack.i.l.bf16 %v2896_v17 }
  0xb8   : > { %v2898_v30 = vpop.permute.xlu1 %1989 }
  0xb9   : > { %v1992_v41 = vunpack.i.h.bf16 %v2898_v30  ;;  %v1991_v43 = vunpack.i.l.bf16 %v2898_v30  ;;  %v1026_v30 = vsel %vm1015_vm6, %v1009_v1, %v1981_v47 }
  0xba   : > { %v2900_v58 = vpop.permute.xlu0 %1984 }
  0xbb   : > { %v1987_v20 = vunpack.i.h.bf16 %v2900_v58  ;;  %v1986_v39 = vunpack.i.l.bf16 %v2900_v58  ;;  %v1041_v56 = vsel %vm1032_vm7, %v1024_v12, %v1991_v43  ;;  %v1042_v51 = vsel %vm1032_vm7, %v1025_v10, %v1992_v41 }
  0xbc   : > { %v2902_v9 = vpop.permute.xlu1 %1999 }
  0xbd   : > { %v1033_v17 = vsel %vm1032_vm7, %v1016_v19, %v1986_v39  ;;  %v1034_v38 = vsel %vm1032_vm7, %v1017_v57, %v1987_v20  ;;  %v2002_v11 = vunpack.i.h.bf16 %v2902_v9  ;;  %v2001_v22 = vunpack.i.l.bf16 %v2902_v9 }
  0xbe   : > { %v2904_v49 = vpop.permute.xlu0 %1994 }
  0xbf   : > { %v1997_v3 = vunpack.i.h.bf16 %v2904_v49 }
  0xc0   : > { %v2914_v60 = vpop.permute.xlu1 %2009 }
  0xc1   : > { %v2012_v55 = vunpack.i.h.bf16 %v2914_v60  ;;  %v2011_v2 = vunpack.i.l.bf16 %v2914_v60  ;;  %v1996_v60 = vunpack.i.l.bf16 %v2904_v49 }
  0xc2   : > { %v2926_v42 = vpop.permute.xlu0 %2004 }
  0xc3   : > { %v2007_v58 = vunpack.i.h.bf16 %v2926_v42  ;;  %v2006_v14 = vunpack.i.l.bf16 %v2926_v42  ;;  %v1058_v42 = vsel %vm1049_vm8, %v1041_v56, %v2011_v2  ;;  %v1059_v47 = vsel %vm1049_vm8, %v1042_v51, %v2012_v55 }
  0xc4   : > { %v2936_v25 = vpop.permute.xlu1 %2019 }
  0xc5   : > { %v1050_v0 = vsel %vm1049_vm8, %v1033_v17, %v2006_v14  ;;  %v1051_v41 = vsel %vm1049_vm8, %v1034_v38, %v2007_v58  ;;  %v2022_v57 = vunpack.i.h.bf16 %v2936_v25  ;;  %v2021_v55 = vunpack.i.l.bf16 %v2936_v25 }
  0xc6   : > { %v2946_v59 = vpop.permute.xlu0 %2014  ;;  %v1019_v25 = vsel %vm1015_vm6, %v1002_v13, %v1977_v63 }
  0xc7   : > { %v2017_v2 = vunpack.i.h.bf16 %v2946_v59 }
  0xc8   : > { %v2030_v26 = vpop.permute.xlu1 %2029 }
  0xc9   : > { %v2032_v23 = vunpack.i.h.bf16 %v2030_v26  ;;  %v2031_v29 = vunpack.i.l.bf16 %v2030_v26 }
  0xca   : > { %v2025_v21 = vpop.permute.xlu0 %2024 }
  0xcb   : > { %v2027_v6 = vunpack.i.h.bf16 %v2025_v21  ;;  %v2026_v18 = vunpack.i.l.bf16 %v2025_v21  ;;  %v1075_v9 = vsel %vm1066_vm9, %v1058_v42, %v2031_v29  ;;  %v1076_v12 = vsel %vm1066_vm9, %v1059_v47, %v2032_v23 }
  0xcc   : > { %v2972_v24 = vpop.permute.xlu1 %2039  ;;  %v2016_v23 = vunpack.i.l.bf16 %v2946_v59  ;;  %v1044_v42 = vsel %vm1032_vm7, %v1027_v8, %v2002_v11  ;;  %v1036_v59 = vsel %vm1032_vm7, %v1019_v25, %v1997_v3 }
  0xcd   : > { %v1067_v39 = vsel %vm1066_vm9, %v1050_v0, %v2026_v18  ;;  %v1068_v56 = vsel %vm1066_vm9, %v1051_v41, %v2027_v6  ;;  %v2042_v29 = vunpack.i.h.bf16 %v2972_v24  ;;  %v2041_v17 = vunpack.i.l.bf16 %v2972_v24 }
  0xce   : > { %v2980_v44 = vpop.permute.xlu0 %2034  ;;  %v1018_v6 = vsel %vm1015_vm6, %v1001_v34, %v1976_v7  ;;  %v1061_v34 = vsel %vm1049_vm8, %v1044_v42, %v2022_v57  ;;  %v1053_v8 = vsel %vm1049_vm8, %v1036_v59, %v2017_v2 }
  0xcf   : > { %v1035_v47 = vsel %vm1032_vm7, %v1018_v6, %v1996_v60  ;;  %v2036_v24 = vunpack.i.l.bf16 %v2980_v44  ;;  %v1078_v11 = vsel %vm1066_vm9, %v1061_v34, %v2042_v29 }
  0xd0   : > { %v2050_v45 = vpop.permute.xlu1 %2049 }
  0xd1   : > { %v2052_v26 = vunpack.i.h.bf16 %v2050_v45  ;;  %v2051_v1 = vunpack.i.l.bf16 %v2050_v45  ;;  %v1043_v45 = vsel %vm1032_vm7, %v1026_v30, %v2001_v22  ;;  %v1052_v30 = vsel %vm1049_vm8, %v1035_v47, %v2016_v23 }
  0xd2   : > { %v2045_v43 = vpop.permute.xlu0 %2044  ;;  %v1060_v0 = vsel %vm1049_vm8, %v1043_v45, %v2021_v55 }
  0xd3   : > { %v2047_v10 = vunpack.i.h.bf16 %v2045_v43  ;;  %v2046_v49 = vunpack.i.l.bf16 %v2045_v43  ;;  %v1092_v21 = vsel %vm1083_vm10, %v1075_v9, %v2051_v1  ;;  %v1093_v19 = vsel %vm1083_vm10, %v1076_v12, %v2052_v26 }
  0xd4   : > { %v2997_v20 = vpop.permute.xlu1 %2059  ;;  %v1104_v51 = vpack.c.bf16 %v1093_v19, %v1092_v21  ;;  %v2037_v26 = vunpack.i.h.bf16 %v2980_v44  ;;  %v1077_v7 = vsel %vm1066_vm9, %v1060_v0, %v2041_v17  ;;  %v1069_v43 = vsel %vm1066_vm9, %v1052_v30, %v2036_v24 }
  0xd5   : > { %v1084_v58 = vsel %vm1083_vm10, %v1067_v39, %v2046_v49  ;;  %v1085_v14 = vsel %vm1083_vm10, %v1068_v56, %v2047_v10  ;;  %v2062_v6 = vunpack.i.h.bf16 %v2997_v20  ;;  %v2061_v25 = vunpack.i.l.bf16 %v2997_v20 }
  0xd6   : > { %v3008_v38 = vpop.permute.xlu0 %2054  ;;  %v1100_v18 = vpack.c.bf16 %v1085_v14, %v1084_v58  ;;  %1806 = vmatprep.mubr.msk.bf16.mxu1 %vm1135_vm11, %v1104_v51  ;;  %v1070_v9 = vsel %vm1066_vm9, %v1053_v8, %v2037_v26 }
  0xd7   : > { %v2057_v42 = vunpack.i.h.bf16 %v3008_v38  ;;  %v2056_v47 = vunpack.i.l.bf16 %v3008_v38  ;;  %v977_v0 = vsel %vm964_vm3, %v2606_v61, %v2061_v25 }
  0xd8   : > { %1798 = vmatprep.mubr.msk.bf16.mxu0 %vm1135_vm11, %v1100_v18  ;;  %v2070_v1 = vpop.permute.xlu1 %2069 }
  0xd9   : > { %v2072_v13 = vunpack.i.h.bf16 %v2070_v1  ;;  %v2071_v63 = vunpack.i.l.bf16 %v2070_v1  ;;  %v978_v1 = vsel %vm964_vm3, %v2609_v62, %v2062_v6  ;;  %v970_v38 = vsel %vm964_vm3, %v2625_v5, %v2057_v42 }
  0xda   : > { %v2065_v22 = vpop.permute.xlu0 %2064 }
  0xdb   : > { %v1094_v44 = vsel %vm1083_vm10, %v1077_v7, %v2071_v63  ;;  %v1095_v3 = vsel %vm1083_vm10, %v1078_v11, %v2072_v13  ;;  %v2067_v60 = vunpack.i.h.bf16 %v2065_v22  ;;  %v2066_v41 = vunpack.i.l.bf16 %v2065_v22 }
  0xdc   : > { %v1105_v12 = vpack.c.bf16 %v1095_v3, %v1094_v44  ;;  %v2080_v10 = vpop.permute.xlu1 %2079  ;;  %v969_v11 = vsel %vm964_vm3, %v2622_v4, %v2056_v47 }
  0xdd   : > { %v1086_v49 = vsel %vm1083_vm10, %v1069_v43, %v2066_v41  ;;  %v1087_v21 = vsel %vm1083_vm10, %v1070_v9, %v2067_v60  ;;  %v2082_v26 = vunpack.i.h.bf16 %v2080_v10  ;;  %v2081_v24 = vunpack.i.l.bf16 %v2080_v10 }
  0xde   : > { %v1101_v19 = vpack.c.bf16 %v1087_v21, %v1086_v49  ;;  %v2075_v57 = vpop.permute.xlu0 %2074  ;;  %1807 = vmatmul.mubr.msk.bf16.vlgmr.msra.gmra.mrb[0].mxu1 %vm1135_vm11, %v1105_v12 }
  0xdf   : > { %v2077_v34 = vunpack.i.h.bf16 %v2075_v57  ;;  %v2076_v13 = vunpack.i.l.bf16 %v2075_v57  ;;  %v980_v61 = vsel %vm964_vm3, %v2748_v48, %v2082_v26  ;;  %v979_v3 = vsel %vm964_vm3, %v2745_v46, %v2081_v24 }
  0xe0   : > { %1799 = vmatmul.mubr.msk.bf16.vlgmr.msra.gmra.mrb[0].mxu0 %vm1135_vm11, %v1101_v19  ;;  %v2090_v39 = vpop.permute.xlu1 %2089 }
  0xe1   : > { %v2092_v20 = vunpack.i.h.bf16 %v2090_v39  ;;  %v2091_v30 = vunpack.i.l.bf16 %v2090_v39  ;;  %v972_v43 = vsel %vm964_vm3, %v2757_v54, %v2077_v34  ;;  %v971_v5 = vsel %vm964_vm3, %v2754_v52, %v2076_v13 }
  0xe2   : > { %v2085_v56 = vpop.permute.xlu0 %2084 }
  0xe3   : > { %v2087_v8 = vunpack.i.h.bf16 %v2085_v56  ;;  %v2086_v7 = vunpack.i.l.bf16 %v2085_v56  ;;  %v994_v10 = vsel %vm981_vm4, %v977_v0, %v2091_v30  ;;  %v995_v49 = vsel %vm981_vm4, %v978_v1, %v2092_v20 }
  0xe4   : > { %v2100_v51 = vpop.permute.xlu1 %2099 }
  0xe5   : > { %v2102_v22 = vunpack.i.h.bf16 %v2100_v51  ;;  %v2101_v44 = vunpack.i.l.bf16 %v2100_v51  ;;  %v986_v48 = vsel %vm981_vm4, %v969_v11, %v2086_v7  ;;  %v987_v46 = vsel %vm981_vm4, %v970_v38, %v2087_v8 }
  0xe6   : > { %v2095_v55 = vpop.permute.xlu0 %2094 }
  0xe7   : > { %v2097_v60 = vunpack.i.h.bf16 %v2095_v55  ;;  %v2096_v41 = vunpack.i.l.bf16 %v2095_v55  ;;  %v996_v21 = vsel %vm981_vm4, %v979_v3, %v2101_v44  ;;  %v997_v19 = vsel %vm981_vm4, %v980_v61, %v2102_v22 }
  0xe8   : > { %v2110_v2 = vpop.permute.xlu1 %2109 }
  0xe9   : > { %v2112_v9 = vunpack.i.h.bf16 %v2110_v2  ;;  %v2111_v4 = vunpack.i.l.bf16 %v2110_v2  ;;  %v988_v52 = vsel %vm981_vm4, %v971_v5, %v2096_v41  ;;  %v989_v56 = vsel %vm981_vm4, %v972_v43, %v2097_v60 }
  0xea   : > { %v2105_v58 = vpop.permute.xlu0 %2104 }
  0xeb   : > { %v2107_v54 = vunpack.i.h.bf16 %v2105_v58  ;;  %v2106_v57 = vunpack.i.l.bf16 %v2105_v58  ;;  %v1011_v2 = vsel %vm998_vm5, %v994_v10, %v2111_v4  ;;  %v1012_v6 = vsel %vm998_vm5, %v995_v49, %v2112_v9 }
  0xec   : > { %v3034_v14 = vpop.permute.xlu1 %2119 }
  0xed   : > { %v2122_v51 = vunpack.i.h.bf16 %v3034_v14  ;;  %v2121_v55 = vunpack.i.l.bf16 %v3034_v14  ;;  %v1003_v0 = vsel %vm998_vm5, %v986_v48, %v2106_v57  ;;  %v1004_v14 = vsel %vm998_vm5, %v987_v46, %v2107_v54 }
  0xee   : > { %v3036_v23 = vpop.permute.xlu0 %2114 }
  0xef   : > { %v2117_v25 = vunpack.i.h.bf16 %v3036_v23  ;;  %v2116_v42 = vunpack.i.l.bf16 %v3036_v23  ;;  %v1013_v23 = vsel %vm998_vm5, %v996_v21, %v2121_v55  ;;  %v1014_v30 = vsel %vm998_vm5, %v997_v19, %v2122_v51 }
  0xf0   : > { %v3038_v29 = vpop.permute.xlu1 %2129 }
  0xf1   : > { %v2132_v58 = vunpack.i.h.bf16 %v3038_v29  ;;  %v2131_v26 = vunpack.i.l.bf16 %v3038_v29  ;;  %v1005_v7 = vsel %vm998_vm5, %v988_v52, %v2116_v42 }
  0xf2   : > { %v3040_v17 = vpop.permute.xlu0 %2124 }
  0xf3   : > { %v2127_v24 = vunpack.i.h.bf16 %v3040_v17  ;;  %v2126_v1 = vunpack.i.l.bf16 %v3040_v17  ;;  %v1006_v17 = vsel %vm998_vm5, %v989_v56, %v2117_v25  ;;  %v1029_v44 = vsel %vm1015_vm6, %v1012_v6, %v2132_v58 }
  0xf4   : > { %v3042_v18 = vpop.permute.xlu1 %2139 }
  0xf5   : > { %v2142_v34 = vunpack.i.h.bf16 %v3042_v18  ;;  %v2141_v13 = vunpack.i.l.bf16 %v3042_v18  ;;  %v1028_v18 = vsel %vm1015_vm6, %v1011_v2, %v2131_v26  ;;  %v1020_v61 = vsel %vm1015_vm6, %v1003_v0, %v2126_v1 }
  0xf6   : > { %v3046_v45 = vpop.permute.xlu0 %2134  ;;  %v1021_v3 = vsel %vm1015_vm6, %v1004_v14, %v2127_v24 }
  0xf7   : > { %v2137_v8 = vunpack.i.h.bf16 %v3046_v45  ;;  %v2136_v29 = vunpack.i.l.bf16 %v3046_v45  ;;  %v1030_v45 = vsel %vm1015_vm6, %v1013_v23, %v2141_v13  ;;  %v1031_v60 = vsel %vm1015_vm6, %v1014_v30, %v2142_v34 }
  0xf8   : > { %v3050_v59 = vpop.permute.xlu1 %2149 }
  0xf9   : > { %v2152_v38 = vunpack.i.h.bf16 %v3050_v59  ;;  %v2151_v11 = vunpack.i.l.bf16 %v3050_v59  ;;  %v1022_v59 = vsel %vm1015_vm6, %v1005_v7, %v2136_v29  ;;  %v1023_v9 = vsel %vm1015_vm6, %v1006_v17, %v2137_v8 }
  0xfa   : > { %v3056_v63 = vpop.permute.xlu0 %2144 }
  0xfb   : > { %v2147_v41 = vunpack.i.h.bf16 %v3056_v63  ;;  %v2146_v43 = vunpack.i.l.bf16 %v3056_v63  ;;  %v1045_v49 = vsel %vm1032_vm7, %v1028_v18, %v2151_v11  ;;  %v1046_v48 = vsel %vm1032_vm7, %v1029_v44, %v2152_v38 }
  0xfc   : > { %v3062_v62 = vpop.permute.xlu1 %2159 }
  0xfd   : > { %v2162_v4 = vunpack.i.h.bf16 %v3062_v62  ;;  %v2161_v10 = vunpack.i.l.bf16 %v3062_v62  ;;  %v1037_v56 = vsel %vm1032_vm7, %v1020_v61, %v2146_v43  ;;  %v1038_v51 = vsel %vm1032_vm7, %v1021_v3, %v2147_v41 }
  0xfe   : > { %v3072_v12 = vpop.permute.xlu0 %2154 }
  0xff   : > { %v2157_v46 = vunpack.i.h.bf16 %v3072_v12  ;;  %v2156_v21 = vunpack.i.l.bf16 %v3072_v12  ;;  %v1047_v6 = vsel %vm1032_vm7, %v1030_v45, %v2161_v10  ;;  %v1048_v25 = vsel %vm1032_vm7, %v1031_v60, %v2162_v4 }
 0x100   : > { %v3080_v39 = vpop.permute.xlu1 %2169 }
 0x101   : > { %v2172_v63 = vunpack.i.h.bf16 %v3080_v39  ;;  %v2171_v54 = vunpack.i.l.bf16 %v3080_v39  ;;  %v1039_v58 = vsel %vm1032_vm7, %v1022_v59, %v2156_v21  ;;  %v1040_v39 = vsel %vm1032_vm7, %v1023_v9, %v2157_v46 }
 0x102   : > { %v2165_v47 = vpop.permute.xlu0 %2164 }
 0x103   : > { %v2167_v57 = vunpack.i.h.bf16 %v2165_v47  ;;  %v2166_v52 = vunpack.i.l.bf16 %v2165_v47  ;;  %v1062_v1 = vsel %vm1049_vm8, %v1045_v49, %v2171_v54  ;;  %v1063_v0 = vsel %vm1049_vm8, %v1046_v48, %v2172_v63 }
 0x104   : > { %v2180_v20 = vpop.permute.xlu1 %2179 }
 0x105   : > { %v2182_v62 = vunpack.i.h.bf16 %v2180_v20  ;;  %v2181_v55 = vunpack.i.l.bf16 %v2180_v20  ;;  %v1054_v14 = vsel %vm1049_vm8, %v1037_v56, %v2166_v52  ;;  %v1055_v34 = vsel %vm1049_vm8, %v1038_v51, %v2167_v57 }
 0x106   : > { %v3106_v22 = vpop.permute.xlu0 %2174 }
 0x107   : > { %v2176_v12 = vunpack.i.l.bf16 %v3106_v22  ;;  %v1064_v13 = vsel %vm1049_vm8, %v1047_v6, %v2181_v55  ;;  %v1065_v20 = vsel %vm1049_vm8, %v1048_v25, %v2182_v62  ;;  %v2177_v23 = vunpack.i.h.bf16 %v3106_v22 }
 0x108   : > { %v2190_v5 = vpop.permute.xlu1 %2189 }
 0x109   : > { %v2191_v42 = vunpack.i.l.bf16 %v2190_v5  ;;  %v2192_v26 = vunpack.i.h.bf16 %v2190_v5  ;;  %v1056_v29 = vsel %vm1049_vm8, %v1039_v58, %v2176_v12  ;;  %v1057_v21 = vsel %vm1049_vm8, %v1040_v39, %v2177_v23  ;;  %v1763_v58 = vld [vmem:[%s3468_s2] ss:$0 sm:$0xff] }
 0x10a   : > { %v2185_v19 = vpop.permute.xlu0 %2184 }
 0x10b   : > { %v2186_v47 = vunpack.i.l.bf16 %v2185_v19  ;;  %v2187_v30 = vunpack.i.h.bf16 %v2185_v19  ;;  %v1079_v7 = vsel %vm1066_vm9, %v1062_v1, %v2191_v42  ;;  %v1080_v11 = vsel %vm1066_vm9, %v1063_v0, %v2192_v26 }
 0x10c   : > { %v2200_v2 = vpop.permute.xlu1 %2199 }
 0x10d   : > { %v1071_v18 = vsel %vm1066_vm9, %v1054_v14, %v2186_v47  ;;  %v2202_v44 = vunpack.i.h.bf16 %v2200_v2  ;;  %v2201_v61 = vunpack.i.l.bf16 %v2200_v2  ;;  %v1072_v43 = vsel %vm1066_vm9, %v1055_v34, %v2187_v30 }
 0x10e   : > { %v2195_v24 = vpop.permute.xlu0 %2194 }
 0x10f   : > { %v2197_v5 = vunpack.i.h.bf16 %v2195_v24  ;;  %v2196_v59 = vunpack.i.l.bf16 %v2195_v24  ;;  %v1081_v19 = vsel %vm1066_vm9, %v1064_v13, %v2201_v61  ;;  %v1082_v63 = vsel %vm1066_vm9, %v1065_v20, %v2202_v44 }
 0x110   : > { %v2210_v8 = vpop.permute.xlu1 %2209 }
 0x111   : > { %v2212_v17 = vunpack.i.h.bf16 %v2210_v8  ;;  %v2211_v38 = vunpack.i.l.bf16 %v2210_v8  ;;  %v1073_v55 = vsel %vm1066_vm9, %v1056_v29, %v2196_v59  ;;  %v1074_v2 = vsel %vm1066_vm9, %v1057_v21, %v2197_v5 }
 0x112   : > { %v2205_v3 = vpop.permute.xlu0 %2204 }
 0x113   : > { %v1096_v45 = vsel %vm1083_vm10, %v1079_v7, %v2211_v38  ;;  %v1097_v60 = vsel %vm1083_vm10, %v1080_v11, %v2212_v17  ;;  %v2207_v22 = vunpack.i.h.bf16 %v2205_v3  ;;  %v2206_v41 = vunpack.i.l.bf16 %v2205_v3 }
 0x114   : > { %v1106_v9 = vpack.c.bf16 %v1097_v60, %v1096_v45  ;;  %v2220_v4 = vpop.permute.xlu1 %2219 }
 0x115   : > { %v1088_v10 = vsel %vm1083_vm10, %v1071_v18, %v2206_v41  ;;  %v1089_v49 = vsel %vm1083_vm10, %v1072_v43, %v2207_v22  ;;  %v2222_v48 = vunpack.i.h.bf16 %v2220_v4  ;;  %v2221_v46 = vunpack.i.l.bf16 %v2220_v4 }
 0x116   : > { %v1102_v54 = vpack.c.bf16 %v1089_v49, %v1088_v10  ;;  %v2215_v57 = vpop.permute.xlu0 %2214  ;;  %1810 = vmatprep.mubr.msk.bf16.mxu1 %vm1135_vm11, %v1106_v9  ;;  %v1325_v49 = vlaneseq }
 0x117   : > { %v1098_v52 = vsel %vm1083_vm10, %v1081_v19, %v2221_v46  ;;  %v1099_v56 = vsel %vm1083_vm10, %v1082_v63, %v2222_v48  ;;  %v2217_v51 = vunpack.i.h.bf16 %v2215_v57  ;;  %v2216_v62 = vunpack.i.l.bf16 %v2215_v57 }
 0x118   : > { %v1107_v6 = vpack.c.bf16 %v1099_v56, %v1098_v52  ;;  %1802 = vmatprep.mubr.msk.bf16.mxu0 %vm1135_vm11, %v1102_v54  ;;  %v3204_v46 = vand.u32 127, %v1325_v49 }
 0x119   : > { %v1090_v25 = vsel %vm1083_vm10, %v1073_v55, %v2216_v62  ;;  %v1091_v12 = vsel %vm1083_vm10, %v1074_v2, %v2217_v51 }
 0x11a   : > { %v1103_v42 = vpack.c.bf16 %v1091_v12, %v1090_v25  ;;  %1811 = vmatmul.mubr.msk.bf16.gmra.mrb[4].mxu1 %vm1135_vm11, %v1107_v6  ;;  %vm1327_vm12 = vcmp.lt.s32.totalorder %v3204_v46, 4 }
 0x11c   : > { %1803 = vmatmul.mubr.msk.bf16.gmra.mrb[4].mxu0 %vm1135_vm11, %v1103_v42 }
 0x1b1   : > { %v1808_v39 = vpop.f32.mrb[0].mxu1 }
 0x1b2   : > { %v3165_v26 = vadd.f32 %v1808_v39, %v1763_v58  ;;  %v1230_v47 = vpop.f32.mrb[1].mxu1 }
 0x1b3   : > { %v1800_v24 = vpop.f32.mrb[0].mxu0  ;;  %v1809_v1 = vpop.f32.mrb[2].mxu1  ;;  %v3168_v20 = vadd.f32 %v1763_v58, %v1230_v47 }
 0x1b4   : > { %v1207_v0 = vadd.f32 %v1800_v24, %v1763_v58  ;;  %v1198_v14 = vpop.f32.mrb[1].mxu0  ;;  %1281 = vadd.xlane.f32.xlu1 %v3165_v26  ;;  %v1233_v34 = vpop.f32.mrb[3].mxu1  ;;  %v3174_v7 = vadd.f32 %v1809_v1, %v1763_v58 }
 0x1b5   : > { %v1801_v13 = vpop.f32.mrb[2].mxu0  ;;  %v1199_v30 = vadd.f32 %v1763_v58, %v1198_v14  ;;  %v3177_v17 = vadd.f32 %v1763_v58, %v1233_v34 }
 0x1b6   : > { %1265 = vadd.xlane.f32.xlu0 %v1207_v0  ;;  %v1201_v23 = vpop.f32.mrb[3].mxu0  ;;  %v1210_v29 = vadd.f32 %v1801_v13, %v1763_v58 }
 0x1b7   : > { %v3171_v8 = vadd.f32 %v1763_v58, %v1201_v23 }
 0x1b8   : > { %1277 = vadd.xlane.f32.xlu1 %v3168_v20 }
 0x1ba   : > { %1261 = vadd.xlane.f32.xlu0 %v1199_v30 }
 0x1bc   : > { %1263 = vadd.xlane.f32.xlu1 %v3171_v8 }
 0x1be   : > { %1267 = vadd.xlane.f32.xlu0 %v1210_v29 }
 0x1c2   : > { %1283 = vadd.xlane.f32.xlu0 %v3174_v7 }
 0x1c6   : > { %1279 = vadd.xlane.f32.xlu0 %v3177_v17 }
 0x1ed   : > { %v1812_v38 = vpop.f32.mrb[4].mxu1 }
 0x1ee   : > { %v1246_v11 = vpop.f32.mrb[5].mxu1  ;;  %v3197_v4 = vadd.f32 %v1812_v38, %v1763_v58 }
 0x1ef   : > { %v1804_v18 = vpop.f32.mrb[4].mxu0  ;;  %v1813_v44 = vpop.f32.mrb[6].mxu1  ;;  %v3191_v59 = vadd.f32 %v1763_v58, %v1246_v11 }
 0x1f0   : > { %v3180_v61 = vadd.f32 %v1804_v18, %v1763_v58  ;;  %v1214_v3 = vpop.f32.mrb[5].mxu0  ;;  %v1249_v45 = vpop.f32.mrb[7].mxu1  ;;  %v3200_v10 = vadd.f32 %v1813_v44, %v1763_v58 }
 0x1f1   : > { %v1805_v60 = vpop.f32.mrb[6].mxu0  ;;  %v3185_v43 = vadd.f32 %v1763_v58, %v1214_v3  ;;  %v3194_v9 = vadd.f32 %v1763_v58, %v1249_v45 }
 0x1f2   : > { %v3182_v22 = vadd.f32 %v1805_v60, %v1763_v58  ;;  %v1217_v41 = vpop.f32.mrb[7].mxu0  ;;  %1273 = vadd.xlane.f32.xlu1 %v3180_v61 }
 0x1f3   : > { %v3188_v5 = vadd.f32 %v1763_v58, %v1217_v41 }
 0x1f4   : > { %1275 = vadd.xlane.f32.xlu0 %v3182_v22 }
 0x1f6   : > { %1269 = vadd.xlane.f32.xlu1 %v3185_v43 }
 0x1f8   : > { %1271 = vadd.xlane.f32.xlu0 %v3188_v5 }
 0x1fa   : > { %1285 = vadd.xlane.f32.xlu1 %v3191_v59 }
 0x1fc   : > { %1287 = vadd.xlane.f32.xlu0 %v3194_v9 }
 0x1fe   : > { %1289 = vadd.xlane.f32.xlu1 %v3197_v4 }
 0x200   : > { %1291 = vadd.xlane.f32.xlu0 %v3200_v10 }
 0x241   : > { %v1282_v48 = vpop.xlane.xlu1 %1281 }
 0x242   : > { %v1303_v21 = vmul.f32 0.25, %v1282_v48 }
 0x243   : > { %v1266_v19 = vpop.xlane.xlu0 %1265 }
 0x244   : > { %v1295_v63 = vmul.f32 0.25, %v1266_v19  ;;  %v1319_v57 = vsub.f32 %v3165_v26, %v1303_v21 }
 0x245   : > { %v1278_v54 = vpop.xlane.xlu1 %1277 }
 0x246   : > { %v1311_v52 = vsub.f32 %v1207_v0, %v1295_v63  ;;  %v1301_v2 = vmul.f32 0.25, %v1278_v54  ;;  %v3216_v25 = vsel %vm1327_vm12, %v1319_v57, 0.0 }
 0x247   : > { %v1262_v56 = vpop.xlane.xlu0 %1261  ;;  %v1354_v39 = vmul.f32 %v3216_v25, %v3216_v25 }
 0x248   : > { %v1293_v51 = vmul.f32 0.25, %v1262_v56  ;;  %v3210_v62 = vsel %vm1327_vm12, %v1311_v52, 0.0  ;;  %v1317_v26 = vsub.f32 %v3168_v20, %v1301_v2 }
 0x249   : > { %v1346_v55 = vmul.f32 %v3210_v62, %v3210_v62  ;;  %v1264_v12 = vpop.xlane.xlu1 %1263 }
 0x24a   : > { %v1309_v6 = vsub.f32 %v1199_v30, %v1293_v51  ;;  %v1294_v47 = vmul.f32 0.25, %v1264_v12 }
 0x24b   : > { %1364 = vadd.xlane.f32.xlu1 %v1346_v55  ;;  %v1268_v42 = vpop.xlane.xlu0 %1267 }
 0x24c   : > { %v1296_v58 = vmul.f32 0.25, %v1268_v42  ;;  %v3223_v1 = vsel %vm1327_vm12, %v1309_v6, 0.0  ;;  %v1310_v20 = vsub.f32 %v3171_v8, %v1294_v47 }
 0x24d   : > { %v1344_v13 = vmul.f32 %v3223_v1, %v3223_v1 }
 0x24e   : > { %v1312_v24 = vsub.f32 %v1210_v29, %v1296_v58  ;;  %v3237_v29 = vsel %vm1327_vm12, %v1317_v26, 0.0  ;;  %v3250_v3 = vsel %vm1327_vm12, %v1310_v20, 0.0 }
 0x24f   : > { %1380 = vadd.xlane.f32.xlu1 %v1354_v39  ;;  %v1284_v0 = vpop.xlane.xlu0 %1283  ;;  %v1352_v44 = vmul.f32 %v3237_v29, %v3237_v29  ;;  %v1345_v45 = vmul.f32 %v3250_v3, %v3250_v3 }
 0x250   : > { %v1304_v14 = vmul.f32 0.25, %v1284_v0  ;;  %v3227_v34 = vsel %vm1327_vm12, %v1312_v24, 0.0 }
 0x251   : > { %v1347_v23 = vmul.f32 %v3227_v34, %v3227_v34 }
 0x252   : > { %v1320_v30 = vsub.f32 %v3174_v7, %v1304_v14 }
 0x253   : > { %1360 = vadd.xlane.f32.xlu1 %v1344_v13  ;;  %1366 = vadd.xlane.f32.xlu0 %v1347_v23  ;;  %v1280_v38 = vpop.xlane.xlu0 %1279 }
 0x254   : > { %v1302_v11 = vmul.f32 0.25, %v1280_v38  ;;  %v3241_v18 = vsel %vm1327_vm12, %v1320_v30, 0.0 }
 0x255   : > { %v1355_v8 = vmul.f32 %v3241_v18, %v3241_v18 }
 0x256   : > { %v1318_v7 = vsub.f32 %v3177_v17, %v1302_v11 }
 0x257   : > { %1376 = vadd.xlane.f32.xlu1 %v1352_v44  ;;  %1382 = vadd.xlane.f32.xlu0 %v1355_v8 }
 0x258   : > { %v3256_v60 = vsel %vm1327_vm12, %v1318_v7, 0.0 }
 0x259   : > { %v1353_v41 = vmul.f32 %v3256_v60, %v3256_v60 }
 0x25b   : > { %1362 = vadd.xlane.f32.xlu0 %v1345_v45 }
 0x25f   : > { %1378 = vadd.xlane.f32.xlu0 %v1353_v41 }
 0x27f   : > { %v1274_v49 = vpop.xlane.xlu1 %1273 }
 0x280   : > { %v1299_v17 = vmul.f32 0.25, %v1274_v49 }
 0x281   : > { %v1276_v48 = vpop.xlane.xlu0 %1275 }
 0x282   : > { %v1315_v21 = vsub.f32 %v3180_v61, %v1299_v17  ;;  %v1300_v19 = vmul.f32 0.25, %v1276_v48 }
 0x283   : > { %v1270_v63 = vpop.xlane.xlu1 %1269 }
 0x284   : > { %v1316_v54 = vsub.f32 %v3182_v22, %v1300_v19  ;;  %v1297_v57 = vmul.f32 0.25, %v1270_v63  ;;  %v3264_v52 = vsel %vm1327_vm12, %v1315_v21, 0.0 }
 0x285   : > { %v1272_v56 = vpop.xlane.xlu0 %1271  ;;  %v1350_v51 = vmul.f32 %v3264_v52, %v3264_v52 }
 0x286   : > { %v1313_v55 = vsub.f32 %v3185_v43, %v1297_v57  ;;  %v1298_v2 = vmul.f32 0.25, %v1272_v56  ;;  %v3271_v6 = vsel %vm1327_vm12, %v1316_v54, 0.0 }
 0x287   : > { %v1286_v61 = vpop.xlane.xlu1 %1285  ;;  %1372 = vadd.xlane.f32.xlu1 %v1350_v51  ;;  %v1351_v22 = vmul.f32 %v3271_v6, %v3271_v6 }
 0x288   : > { %v1314_v12 = vsub.f32 %v3188_v5, %v1298_v2  ;;  %v1305_v42 = vmul.f32 0.25, %v1286_v61  ;;  %v3278_v58 = vsel %vm1327_vm12, %v1313_v55, 0.0 }
 0x289   : > { %1374 = vadd.xlane.f32.xlu0 %v1351_v22  ;;  %v1288_v39 = vpop.xlane.xlu0 %1287  ;;  %v1348_v43 = vmul.f32 %v3278_v58, %v3278_v58 }
 0x28a   : > { %v1321_v26 = vsub.f32 %v3191_v59, %v1305_v42  ;;  %v1306_v47 = vmul.f32 0.25, %v1288_v39  ;;  %v3285_v24 = vsel %vm1327_vm12, %v1314_v12, 0.0 }
 0x28b   : > { %v1290_v0 = vpop.xlane.xlu1 %1289  ;;  %1368 = vadd.xlane.f32.xlu1 %v1348_v43  ;;  %v1349_v5 = vmul.f32 %v3285_v24, %v3285_v24 }
 0x28c   : > { %v1322_v14 = vsub.f32 %v3194_v9, %v1306_v47  ;;  %v1307_v13 = vmul.f32 0.25, %v1290_v0  ;;  %v3292_v23 = vsel %vm1327_vm12, %v1321_v26, 0.0 }
 0x28d   : > { %1370 = vadd.xlane.f32.xlu0 %v1349_v5  ;;  %v1292_v20 = vpop.xlane.xlu0 %1291  ;;  %v1356_v59 = vmul.f32 %v3292_v23, %v3292_v23 }
 0x28e   : > { %v1323_v30 = vsub.f32 %v3197_v4, %v1307_v13  ;;  %v1308_v38 = vmul.f32 0.25, %v1292_v20  ;;  %v3299_v11 = vsel %vm1327_vm12, %v1322_v14, 0.0 }
 0x28f   : > { %1384 = vadd.xlane.f32.xlu1 %v1356_v59  ;;  %v1357_v9 = vmul.f32 %v3299_v11, %v3299_v11 }
 0x290   : > { %v1324_v44 = vsub.f32 %v3200_v10, %v1308_v38  ;;  %v3306_v8 = vsel %vm1327_vm12, %v1323_v30, 0.0 }
 0x291   : > { %1386 = vadd.xlane.f32.xlu0 %v1357_v9  ;;  %v1358_v7 = vmul.f32 %v3306_v8, %v3306_v8 }
 0x292   : > { %v3312_v4 = vsel %vm1327_vm12, %v1324_v44, 0.0 }
 0x293   : > { %1388 = vadd.xlane.f32.xlu1 %v1358_v7  ;;  %v1359_v45 = vmul.f32 %v3312_v4, %v3312_v4 }
 0x295   : > { %1390 = vadd.xlane.f32.xlu0 %v1359_v45 }
 0x2d8   : > { %v1365_v41 = vpop.xlane.xlu1 %1364 }
 0x2d9   : > { %v1394_v49 = vmul.f32 0.25, %v1365_v41 }
 0x2db   : > { %v1410_v10 = vadd.f32 1e-05, %v1394_v49 }
 0x2dc   : > { %v1381_v17 = vpop.xlane.xlu1 %1380 }
 0x2dd   : > { %2226 = vrsqrt.f32 %v1410_v10  ;;  %v1402_v48 = vmul.f32 0.25, %v1381_v17 }
 0x2df   : > { %v1418_v21 = vadd.f32 1e-05, %v1402_v48 }
 0x2e0   : > { %v1361_v19 = vpop.xlane.xlu1 %1360  ;;  %v1367_v63 = vpop.xlane.xlu0 %1366 }
 0x2e1   : > { %2228 = vrsqrt.f32 %v1418_v21  ;;  %v1392_v54 = vmul.f32 0.25, %v1361_v19  ;;  %v1395_v57 = vmul.f32 0.25, %v1367_v63 }
 0x2e3   : > { %v1408_v46 = vadd.f32 1e-05, %v1392_v54  ;;  %v1411_v56 = vadd.f32 1e-05, %v1395_v57 }
 0x2e4   : > { %v1377_v51 = vpop.xlane.xlu1 %1376  ;;  %v1383_v55 = vpop.xlane.xlu0 %1382 }
 0x2e5   : > { %2230 = vrsqrt.f32 %v1408_v46  ;;  %v1400_v2 = vmul.f32 0.25, %v1377_v51  ;;  %v1403_v61 = vmul.f32 0.25, %v1383_v55 }
 0x2e6   : > { %2232 = vrsqrt.f32 %v1411_v56 }
 0x2e7   : > { %v2227_v22 = vpop.eup %2226  ;;  %v1416_v12 = vadd.f32 1e-05, %v1400_v2  ;;  %v1419_v42 = vadd.f32 1e-05, %v1403_v61 }
 0x2e8   : > { %v1442_v39 = vmul.f32 %v2227_v22, %v3210_v62  ;;  %v1363_v43 = vpop.xlane.xlu0 %1362 }
 0x2e9   : > { %2234 = vrsqrt.f32 %v1416_v12  ;;  %v1393_v26 = vmul.f32 0.25, %v1363_v43 }
 0x2ea   : > { %v1474_v47 = vmul.f32 0.70710677, %v1442_v39  ;;  %2236 = vrsqrt.f32 %v1419_v42 }
 0x2eb   : > { %v2229_v0 = vpop.eup %2228  ;;  %v1409_v5 = vadd.f32 1e-05, %v1393_v26 }
 0x2ec   : > { %2238 = verf.f32 %v1474_v47  ;;  %v1450_v14 = vmul.f32 %v2229_v0, %v3216_v25  ;;  %v1379_v13 = vpop.xlane.xlu0 %1378 }
 0x2ed   : > { %2240 = vrsqrt.f32 %v1409_v5  ;;  %v1401_v20 = vmul.f32 0.25, %v1379_v13 }
 0x2ee   : > { %v1482_v59 = vmul.f32 0.70710677, %v1450_v14 }
 0x2ef   : > { %v2231_v30 = vpop.eup %2230  ;;  %v1417_v38 = vadd.f32 1e-05, %v1401_v20 }
 0x2f0   : > { %v2233_v9 = vpop.eup %2232  ;;  %2242 = verf.f32 %v1482_v59  ;;  %v1440_v62 = vmul.f32 %v2231_v30, %v3223_v1  ;;  %v1458_v1 = vmul.f32 0.5, %v1442_v39 }
 0x2f1   : > { %v1443_v44 = vmul.f32 %v2233_v9, %v3227_v34  ;;  %2244 = vrsqrt.f32 %v1417_v38 }
 0x2f2   : > { %v1472_v7 = vmul.f32 0.70710677, %v1440_v62  ;;  %v1456_v42 = vmul.f32 0.5, %v1440_v62 }
 0x2f3   : > { %v2235_v45 = vpop.eup %2234  ;;  %v1475_v41 = vmul.f32 0.70710677, %v1443_v44 }
 0x2f4   : > { %v2237_v49 = vpop.eup %2236  ;;  %2246 = verf.f32 %v1472_v7  ;;  %v1448_v25 = vmul.f32 %v2235_v45, %v3237_v29 }
 0x2f5   : > { %2248 = verf.f32 %v1475_v41  ;;  %v1451_v10 = vmul.f32 %v2237_v49, %v3241_v18  ;;  %v1466_v18 = vmul.f32 0.5, %v1450_v14 }
 0x2f6   : > { %v2239_v17 = vpop.eup %2238  ;;  %v1480_v48 = vmul.f32 0.70710677, %v1448_v25  ;;  %v1464_v14 = vmul.f32 0.5, %v1448_v25 }
 0x2f7   : > { %v2241_v21 = vpop.eup %2240  ;;  %v1506_v19 = vadd.f32 1.0, %v2239_v17  ;;  %v1483_v34 = vmul.f32 0.70710677, %v1451_v10  ;;  %v1467_v20 = vmul.f32 0.5, %v1451_v10 }
 0x2f8   : > { %2250 = verf.f32 %v1480_v48  ;;  %v1441_v63 = vmul.f32 %v2241_v21, %v3250_v3 }
 0x2f9   : > { %v1522_v54 = vmul.f32 %v1506_v19, %v1458_v1  ;;  %2252 = verf.f32 %v1483_v34 }
 0x2fa   : > { %v2243_v57 = vpop.eup %2242  ;;  %v1473_v46 = vmul.f32 0.70710677, %v1441_v63  ;;  %v1457_v62 = vmul.f32 0.5, %v1441_v63 }
 0x2fb   : > { %v2245_v56 = vpop.eup %2244  ;;  %1538 = vst [vmem:[%s3326_s28 + $0x10] sm:$0xff] %v1522_v54  ;;  %v1570_v29 = vadd.f32 %v1522_v54, %v2663_v31  ;;  %v1514_v51 = vadd.f32 1.0, %v2243_v57  ;;  %v1459_v31 = vmul.f32 0.5, %v1443_v44 }
 0x2fc   : > { %2254 = verf.f32 %v1473_v46  ;;  %v1449_v55 = vmul.f32 %v2245_v56, %v3256_v60 }
 0x2fd   : > { %1586 = vst.msk [vmem:[%s3326_s28 + $0x10] sm:$0xff] %vm964_vm3, %v1570_v29  ;;  %v1530_v3 = vmul.f32 %v1514_v51, %v1466_v18 }
 0x2fe   : > { %v2247_v2 = vpop.eup %2246  ;;  %v1481_v61 = vmul.f32 0.70710677, %v1449_v55  ;;  %v1465_v49 = vmul.f32 0.5, %v1449_v55 }
 0x2ff   : > { %v2249_v22 = vpop.eup %2248  ;;  %1546 = vst [vmem:[%s3326_s28 + $0x50] sm:$0xff] %v1530_v3  ;;  %v1578_v12 = vadd.f32 %v1530_v3, %v2653_v27  ;;  %v1504_v39 = vadd.f32 1.0, %v2247_v2 }
 0x300   : > { %v1507_v43 = vadd.f32 1.0, %v2249_v22  ;;  %2256 = verf.f32 %v1481_v61 }
 0x301   : > { %1594 = vst.msk [vmem:[%s3326_s28 + $0x50] sm:$0xff] %vm964_vm3, %v1578_v12  ;;  %v1520_v60 = vmul.f32 %v1504_v39, %v1456_v42 }
 0x302   : > { %v2251_v26 = vpop.eup %2250  ;;  %v1523_v47 = vmul.f32 %v1507_v43, %v1459_v31 }
 0x303   : > { %v2253_v0 = vpop.eup %2252  ;;  %1536 = vst [vmem:[%s3326_s28] sm:$0xff] %v1520_v60  ;;  %v1568_v5 = vadd.f32 %v1520_v60, %v2525_v15  ;;  %v1512_v27 = vadd.f32 1.0, %v2251_v26 }
 0x304   : > { %1539 = vst [vmem:[%s3326_s28 + $0x18] sm:$0xff] %v1523_v47  ;;  %v1571_v13 = vadd.f32 %v1523_v47, %v2666_v33  ;;  %v1515_v59 = vadd.f32 1.0, %v2253_v0 }
 0x305   : > { %1584 = vst.msk [vmem:[%s3326_s28] sm:$0xff] %vm964_vm3, %v1568_v5  ;;  %v1528_v30 = vmul.f32 %v1512_v27, %v1464_v14 }
 0x306   : > { %v2255_v38 = vpop.eup %2254  ;;  %1587 = vst.msk [vmem:[%s3326_s28 + $0x18] sm:$0xff] %vm964_vm3, %v1571_v13  ;;  %v1531_v9 = vmul.f32 %v1515_v59, %v1467_v20 }
 0x307   : > { %1544 = vst [vmem:[%s3326_s28 + $0x40] sm:$0xff] %v1528_v30  ;;  %v1576_v15 = vadd.f32 %v1528_v30, %v2551_v32  ;;  %v1505_v44 = vadd.f32 1.0, %v2255_v38 }
 0x308   : > { %1547 = vst [vmem:[%s3326_s28 + $0x58] sm:$0xff] %v1531_v9  ;;  %v1579_v33 = vadd.f32 %v1531_v9, %v2656_v28 }
 0x309   : > { %1592 = vst.msk [vmem:[%s3326_s28 + $0x40] sm:$0xff] %vm964_vm3, %v1576_v15  ;;  %v1521_v7 = vmul.f32 %v1505_v44, %v1457_v62 }
 0x30a   : > { %v2257_v45 = vpop.eup %2256  ;;  %1595 = vst.msk [vmem:[%s3326_s28 + $0x58] sm:$0xff] %vm964_vm3, %v1579_v33 }
 0x30b   : > { %1537 = vst [vmem:[%s3326_s28 + $0x8] sm:$0xff] %v1521_v7  ;;  %v1569_v41 = vadd.f32 %v1521_v7, %v2528_v16  ;;  %v1513_v25 = vadd.f32 1.0, %v2257_v45 }
 0x30d   : > { %1585 = vst.msk [vmem:[%s3326_s28 + $0x8] sm:$0xff] %vm964_vm3, %v1569_v41  ;;  %v1529_v32 = vmul.f32 %v1513_v25, %v1465_v49 }
 0x30f   : > { %1545 = vst [vmem:[%s3326_s28 + $0x48] sm:$0xff] %v1529_v32  ;;  %v1577_v10 = vadd.f32 %v1529_v32, %v2555_v35 }
 0x311   : > { %1593 = vst.msk [vmem:[%s3326_s28 + $0x48] sm:$0xff] %vm964_vm3, %v1577_v10 }
 0x314   : > { %v1373_v28 = vpop.xlane.xlu1 %1372 }
 0x315   : > { %v1398_v17 = vmul.f32 0.25, %v1373_v28 }
 0x316   : > { %v1375_v48 = vpop.xlane.xlu0 %1374 }
 0x317   : > { %v1414_v21 = vadd.f32 1e-05, %v1398_v17  ;;  %v1399_v1 = vmul.f32 0.25, %v1375_v48 }
 0x318   : > { %v1369_v19 = vpop.xlane.xlu1 %1368 }
 0x319   : > { %2258 = vrsqrt.f32 %v1414_v21  ;;  %v1415_v34 = vadd.f32 1e-05, %v1399_v1  ;;  %v1396_v63 = vmul.f32 0.25, %v1369_v19 }
 0x31a   : > { %v1371_v16 = vpop.xlane.xlu0 %1370 }
 0x31b   : > { %2260 = vrsqrt.f32 %v1415_v34  ;;  %v1412_v54 = vadd.f32 1e-05, %v1396_v63  ;;  %v1397_v57 = vmul.f32 0.25, %v1371_v16 }
 0x31c   : > { %v1385_v46 = vpop.xlane.xlu1 %1384 }
 0x31d   : > { %2262 = vrsqrt.f32 %v1412_v54  ;;  %v1413_v56 = vadd.f32 1e-05, %v1397_v57  ;;  %v1404_v29 = vmul.f32 0.25, %v1385_v46 }
 0x31e   : > { %v1387_v35 = vpop.xlane.xlu0 %1386 }
 0x31f   : > { %2264 = vrsqrt.f32 %v1413_v56  ;;  %v1420_v18 = vadd.f32 1e-05, %v1404_v29  ;;  %v1405_v51 = vmul.f32 0.25, %v1387_v35 }
 0x320   : > { %v1389_v55 = vpop.xlane.xlu1 %1388 }
 0x321   : > { %2266 = vrsqrt.f32 %v1420_v18  ;;  %v1421_v3 = vadd.f32 1e-05, %v1405_v51  ;;  %v1406_v2 = vmul.f32 0.25, %v1389_v55 }
 0x322   : > { %v1391_v61 = vpop.xlane.xlu0 %1390 }
 0x323   : > { %v2259_v22 = vpop.eup %2258  ;;  %2268 = vrsqrt.f32 %v1421_v3  ;;  %v1422_v12 = vadd.f32 1e-05, %v1406_v2  ;;  %v1407_v42 = vmul.f32 0.25, %v1391_v61 }
 0x324   : > { %v1446_v39 = vmul.f32 %v2259_v22, %v3264_v52  ;;  %v3482_v22 = vld [vmem:[#allocation6_spill] sm:$0xff] }
 0x325   : > { %v2261_v31 = vpop.eup %2260  ;;  %2270 = vrsqrt.f32 %v1422_v12  ;;  %v1423_v43 = vadd.f32 1e-05, %v1407_v42 }
 0x326   : > { %v1478_v60 = vmul.f32 0.70710677, %v1446_v39  ;;  %v1447_v26 = vmul.f32 %v2261_v31, %v3271_v6  ;;  %v1462_v7 = vmul.f32 0.5, %v1446_v39 }
 0x327   : > { %v2263_v47 = vpop.eup %2262  ;;  %2272 = vrsqrt.f32 %v1423_v43 }
 0x328   : > { %2274 = verf.f32 %v1478_v60  ;;  %v1479_v0 = vmul.f32 0.70710677, %v1447_v26  ;;  %v1444_v5 = vmul.f32 %v2263_v47, %v3278_v58  ;;  %v1463_v49 = vmul.f32 0.5, %v1447_v26 }
 0x329   : > { %v2265_v14 = vpop.eup %2264 }
 0x32a   : > { %2276 = verf.f32 %v1479_v0  ;;  %v1476_v27 = vmul.f32 0.70710677, %v1444_v5  ;;  %v1445_v13 = vmul.f32 %v2265_v14, %v3285_v24  ;;  %v1460_v28 = vmul.f32 0.5, %v1444_v5 }
 0x32b   : > { %v2267_v20 = vpop.eup %2266 }
 0x32c   : > { %2278 = verf.f32 %v1476_v27  ;;  %v1477_v52 = vmul.f32 0.70710677, %v1445_v13  ;;  %v1452_v59 = vmul.f32 %v2267_v20, %v3292_v23  ;;  %v1461_v1 = vmul.f32 0.5, %v1445_v13 }
 0x32d   : > { %v2269_v30 = vpop.eup %2268 }
 0x32e   : > { %2280 = verf.f32 %v1477_v52  ;;  %v1484_v38 = vmul.f32 0.70710677, %v1452_v59  ;;  %v1453_v6 = vmul.f32 %v2269_v30, %v3299_v11  ;;  %v1468_v16 = vmul.f32 0.5, %v1452_v59 }
 0x32f   : > { %v2271_v9 = vpop.eup %2270 }
 0x330   : > { %2282 = verf.f32 %v1484_v38  ;;  %v1485_v15 = vmul.f32 0.70710677, %v1453_v6  ;;  %v1454_v58 = vmul.f32 %v2271_v9, %v3306_v8  ;;  %v1469_v29 = vmul.f32 0.5, %v1453_v6 }
 0x331   : > { %v2273_v62 = vpop.eup %2272 }
 0x332   : > { %v2275_v44 = vpop.eup %2274  ;;  %2284 = verf.f32 %v1485_v15  ;;  %v1486_v24 = vmul.f32 0.70710677, %v1454_v58  ;;  %v1455_v33 = vmul.f32 %v2273_v62, %v3312_v4  ;;  %v1470_v3 = vmul.f32 0.5, %v1454_v58 }
 0x333   : > { %v1510_v23 = vadd.f32 1.0, %v2275_v44 }
 0x334   : > { %v2277_v45 = vpop.eup %2276  ;;  %2286 = verf.f32 %v1486_v24  ;;  %v1487_v41 = vmul.f32 0.70710677, %v1455_v33  ;;  %v1471_v39 = vmul.f32 0.5, %v1455_v33 }
 0x335   : > { %v1526_v11 = vmul.f32 %v1510_v23, %v1462_v7  ;;  %v1511_v25 = vadd.f32 1.0, %v2277_v45 }
 0x336   : > { %v2279_v32 = vpop.eup %2278  ;;  %2288 = verf.f32 %v1487_v41 }
 0x337   : > { %1542 = vst [vmem:[%s3326_s28 + $0x30] sm:$0xff] %v1526_v11  ;;  %v1574_v8 = vadd.f32 %v1526_v11, %v2558_v36  ;;  %v1527_v10 = vmul.f32 %v1511_v25, %v1463_v49  ;;  %v1508_v4 = vadd.f32 1.0, %v2279_v32 }
 0x338   : > { %v2281_v17 = vpop.eup %2280 }
 0x339   : > { %1590 = vst.msk [vmem:[%s3326_s28 + $0x30] sm:$0xff] %vm964_vm3, %v1574_v8  ;;  %1543 = vst [vmem:[%s3326_s28 + $0x38] sm:$0xff] %v1527_v10  ;;  %v1575_v48 = vadd.f32 %v1527_v10, %v2567_v40  ;;  %v1524_v21 = vmul.f32 %v1508_v4, %v1460_v28  ;;  %v1509_v19 = vadd.f32 1.0, %v2281_v17  ;;  %v3480_v40 = vld [vmem:[#allocation7_spill] sm:$0xff] }
 0x33a   : > { %v2283_v34 = vpop.eup %2282 }
 0x33b   : > { %1591 = vst.msk [vmem:[%s3326_s28 + $0x38] sm:$0xff] %vm964_vm3, %v1575_v48  ;;  %1540 = vst [vmem:[%s3326_s28 + $0x20] sm:$0xff] %v1524_v21  ;;  %v1572_v36 = vadd.f32 %v1524_v21, %v2787_v37  ;;  %v1525_v63 = vmul.f32 %v1509_v19, %v1461_v1  ;;  %v1516_v54 = vadd.f32 1.0, %v2283_v34  ;;  %v3481_v37 = vld [vmem:[#allocation5_spill] sm:$0xff] }
 0x33c   : > { %v2285_v57 = vpop.eup %2284 }
 0x33d   : > { %1588 = vst.msk [vmem:[%s3326_s28 + $0x20] sm:$0xff] %vm964_vm3, %v1572_v36  ;;  %1541 = vst [vmem:[%s3326_s28 + $0x28] sm:$0xff] %v1525_v63  ;;  %v1573_v46 = vadd.f32 %v1525_v63, %v3480_v40  ;;  %v1532_v56 = vmul.f32 %v1516_v54, %v1468_v16  ;;  %v1517_v35 = vadd.f32 1.0, %v2285_v57 }
 0x33e   : > { %v2287_v18 = vpop.eup %2286 }
 0x33f   : > { %1589 = vst.msk [vmem:[%s3326_s28 + $0x28] sm:$0xff] %vm964_vm3, %v1573_v46  ;;  %1548 = vst [vmem:[%s3326_s28 + $0x60] sm:$0xff] %v1532_v56  ;;  %v1580_v51 = vadd.f32 %v1532_v56, %v3481_v37  ;;  %v1533_v55 = vmul.f32 %v1517_v35, %v1469_v29  ;;  %v1518_v2 = vadd.f32 1.0, %v2287_v18 }
 0x340   : > { %v2289_v61 = vpop.eup %2288 }
 0x341   : > { %1596 = vst.msk [vmem:[%s3326_s28 + $0x60] sm:$0xff] %vm964_vm3, %v1580_v51  ;;  %1549 = vst [vmem:[%s3326_s28 + $0x68] sm:$0xff] %v1533_v55  ;;  %v1581_v12 = vadd.f32 %v1533_v55, %v3482_v22  ;;  %v1534_v42 = vmul.f32 %v1518_v2, %v1470_v3  ;;  %v1519_v31 = vadd.f32 1.0, %v2289_v61 }
 0x343   : > { %1597 = vst.msk [vmem:[%s3326_s28 + $0x68] sm:$0xff] %vm964_vm3, %v1581_v12  ;;  %1550 = vst [vmem:[%s3326_s28 + $0x70] sm:$0xff] %v1534_v42  ;;  %v1582_v43 = vadd.f32 %v1534_v42, %v2686_v50  ;;  %v1535_v60 = vmul.f32 %v1519_v31, %v1471_v39 }
 0x345   : > { %1598 = vst.msk [vmem:[%s3326_s28 + $0x70] sm:$0xff] %vm964_vm3, %v1582_v43  ;;  %1551 = vst [vmem:[%s3326_s28 + $0x78] sm:$0xff] %v1535_v60  ;;  %v1583_v26 = vadd.f32 %v1535_v60, %v2693_v53 }
 0x347   : > { %1599 = vst.msk [vmem:[%s3326_s28 + $0x78] sm:$0xff] %vm964_vm3, %v1583_v26 }
 0x348   : > { %2303 = shalt.err (!%p2300_p6)
}
 0x349   : > { %s2304_s24 = scalar_lea.hbm %s3401_s8, 2048  ;;  %s2308_s4 = scalar_lea.hbm %s3469_s3, 8192 }
 0x34a   : > { %p2305_p7 = scmp.ne.s32.totalorder %s3401_s8, %s2304_s24  ;;  %p2309_p11 = scmp.lt.u32.totalorder %s3401_s8, %s3469_s3 }
 0x34b   : > { %p2310_p12 = scmp.lt.u32.totalorder %s2308_s4, %s2304_s24  ;;  %p2312_p0 = scmp.lt.u32.totalorder %s2304_s24, %s3401_s8 }
 0x34c   : > { %p2306_p9 = pnand %p2305_p7, %p2467_p3 }
 0x34d   : > { %p2311_p13 = por %p2310_p12, %p2309_p11 }
 0x34e   : > { %p2307_p10 = pneg %p2306_p9 }
 0x34f   : > { %p2313_p1 = por %p2312_p0, %p2311_p13 }
 0x351   : > { %p2314_p2 = pnand %p2313_p1, %p2307_p10 }
 0x353   : > { %2317 = shalt.err (!%p2314_p2)
}
 0x354   : > { %s2395_s6 = smov 128  }
 0x355   : > { %1823 = dma.vmem_to_hbm [thread:$0]  (%p2467_p3), %s3407_s16, 2048, %s3401_s8, %s3413_s9, %s2395_s6, %s2395_s6, %s2387_s20  }
 0x356 PF: > { %p1829_p4 = scmp.ge.s32.totalorder %s2384_s19, 2  ;;  %s1631_s7 = sand.u32 1, %s2356_s12  }
 0x357   : > { %s1632_s10 = scalar_lea.sflag [#allocation3], %s1631_s7 }
 0x358   : > { %p1826_p5 = pnand %p1829_p4, %p2476_p8 }
 0x35a   : > { %2351 = dma.done.wait (!%p1826_p5), %s1632_s10, 2048  }
 0x35b   : > { %2353 = vsyncadd (!%p1826_p5), %s1632_s10, 4294965248  ;;  %s16_s19 = sadd.s32 1, %s2384_s19   ;;  %s3483_s12 = smov %s2360_s13 }
 0x35c   : > { %p13_p6 = scmp.ge.s32.totalorder %s16_s19, 6   ;;  %s3484_s13 = smov %s2364_s14 }
 0x35d   : > { %s3485_s14 = smov %s2485_s30  ;;  %s3486_s15 = smov %s2376_s17 }
 0x35e   : > { %s3487_s16 = smov %s2380_s18  ;;  %s3488_s17 = smov %s3491_s22 }
 0x35f   : > { %s3489_s18 = smov %s3495_s23  ;;  %15 = sbr.rel (!%p13_p6) target bundleno = 5 (0x5), region = 70 }
 0x366   :  { %1637 = vsyncpa [#allocation3], 1 }
 0x367   :  { %1639 = vsyncpa [#allocation3 + $0x1], 1 }

// kernel: tpu_custom_call.1
= control target key start
LH: loop header
LB: loop body
LE: loop exit
PB: predicated region body
PF: predicated region fallthrough
CT: control target
= control target key end

     0   :  { %8 = vsyncpa [#allocation3], 0  ;;  %s4182_s0 = inlined_call_operand.vmem [shape: f32[2,18,24,4], index: 0, kind: input, shape index: {}]   ;;  %s4183_s1 = inlined_call_operand.vmem [shape: bf16[36,128], index: 1, kind: input, shape index: {}]   ;;  %s4184_s2 = inlined_call_operand.vmem [shape: f32[1,128], index: 2, kind: input, shape index: {}]   ;;  %s4185_s3 = inlined_call_operand.hbm [shape: f32[2,256,128], index: 3, kind: output, shape index: {}]  }
   0x1   :  { %10 = vsyncpa [#allocation3 + $0x1], 0  ;;  %s3239_s12 = smov 0   ;;  %s3241_s13 = smov 0  }
   0x2   :  { %s3243_s14 = smov 0   ;;  %s3245_s15 = smov 0  }
   0x3   :  { %s3247_s16 = smov 0   ;;  %s3249_s17 = smov 0  }
   0x4   :  { %s3251_s18 = smov 0   ;;  %s3253_s19 = smov 0  }
   0x5 LB: > { %s2451_s20 = sadd.s32 4294967295, %s3214_s19   ;;  %s2452_s21 = sadd.s32 4294967294, %s3214_s19   ;;  %s3214_s19 = sphi %s3253_s19, %s16_s19   ;;  %s3210_s18 = sphi %s3251_s18, %s4209_s18   ;;  %s3206_s17 = sphi %s3249_s17, %s4208_s17   ;;  %s3202_s16 = sphi %s3247_s16, %s4207_s16   ;;  %s3198_s15 = sphi %s3245_s15, %s4206_s15   ;;  %s3194_s14 = sphi %s3243_s14, %s4205_s14   ;;  %s3190_s13 = sphi %s3241_s13, %s4204_s13   ;;  %s3186_s12 = sphi %s3239_s12, %s4203_s12  }
   0x6   : > { %s25_s22 = sadd.s32 1, %s3206_s17  ;;  %s28_s23 = sadd.s32 1, %s3210_s18 }
   0x7   : > { %p26_p0 = scmp.ge.s32.totalorder %s25_s22, 2  ;;  %p115_p1 = scmp.ne.s32.totalorder %s3194_s14, %s3190_s13 }
   0x8   : > { %p116_p2 = scmp.eq.s32.totalorder %s2451_s20, 3  ;;  %p121_p5 = scmp.ne.s32.totalorder %s3190_s13, %s3186_s12 }
   0x9   : > { %s4211_s22 = smov (%p26_p0, %s25_s22), 0  ;;  %s4213_s23 = smov (!%p26_p0, %s28_s23), %s3210_s18 }
   0xa   : > { %s101_s24 = ssub.s32 %s3206_s17, %s4211_s22  ;;  %p3290_p3 = por %p116_p2, %p115_p1 }
   0xb   : > { %p30_p4 = scmp.ge.s32.totalorder %s4213_s23, 2  ;;  %p122_p6 = scmp.eq.s32.totalorder %s2452_s21, 3 }
   0xc   : > { %p2455_p7 = scmp.ge.s32.totalorder %s3214_s19, 1  ;;  %p154_p9 = scmp.lt.s32.totalorder %s3214_s19, 5 }
   0xd   : > { %s4215_s23 = smov (%p30_p4, %s4213_s23), 0  ;;  %p3299_p8 = por %p122_p6, %p121_p5 }
   0xe   : > { %s100_s27 = ssub.s32 %s3210_s18, %s4215_s23  ;;  %s105_s28 = sadd.s32 1, %s3194_s14 }
   0xf   : > { %s102_s29 = sor.u32 %s101_s24, %s100_s27  ;;  %p155_p10 = pnand %p2455_p7, %p154_p9 }
  0x10   : > { %p103_p11 = scmp.eq.s32.totalorder %s102_s29, 0 }
  0x11   : > { %158 = sbr.rel (%p155_p10) target bundleno = 753 (0x2f1), region = 32 }
  0x12   : > { %s3308_s30 = scalar_select %p103_p11, %s3194_s14, %s105_s28  }
  0x18   : > { %vm394_vm0 = vcmask 1041408   ;;  %v3313_v0 = vld [vmem:[%s4183_s1 + $0x8] sm:$0x3]  ;;  %p178_p12 = scmp.lt.s32.totalorder %s3202_s16, 1  ;;  %s2459_s9 = smul.u32 192, %s3198_s15  ;;  %vm299_vm1 = vcmask 1046528  }
  0x19   : > { %2972 = vmatprep.subr.msk.bf16.mxu0 %vm394_vm0, %v3313_v0  ;;  %v3052_v1 = vld [vmem:[%s4183_s1] ss:$0 sps:$4 sm:$0xcc]   ;;  %v3323_v2 = vsel %vm394_vm0, %v3313_v0, 0  ;;  %vm369_vm2 = vcmask 31744   ;;  %vm619_vm3 = vcmask 1045504  }
  0x1a   : > { %2749 = vmatpush3.bf16.msra.mxu0 %v3323_v2  ;;  %s179_s8 = scalar_select %p178_p12, %s3202_s16, 1  ;;  %v368_v3 = vrot.slane %v3052_v1, 2  ;;  %v3053_v4 = vld [vmem:[%s4183_s1 + $0x8] ss:$0 sps:$4 sm:$0xcc]  }
  0x1b   : > { %v274_v5 = vld [vmem:[%s4183_s1] sm:$0x3]  ;;  %v1275_v7 = vrot.slane %v3053_v4, 2  ;;  %v3429_v51 = vld [vmem:[%s4183_s1 + $0x4] sm:$0x3]  ;;  %s2590_s6 = sshll.u32 %s3198_s15, 4 }
  0x1c   : > { %s2978_s20 = smul.u32 432, %s179_s8  ;;  %2968 = vmatprep.subr.msk.bf16.mxu1 %vm394_vm0, %v368_v3  ;;  %v396_v6 = vsel %vm394_vm0, %v368_v3, 0  ;;  %v520_v28 = vsel %vm394_vm0, %v274_v5, 0  ;;  %v1424_v54 = vld [vmem:[%s4183_s1 + $0xc] sm:$0x3]  ;;  %s2591_s7 = sshll.u32 %s3202_s16, 5 }
  0x1d   : > { %2677 = vmatpush3.bf16.msra.mxu1 %v396_v6  ;;  %2974 = vmatprep.subr.msk.bf16.mxu0 %vm394_vm0, %v1275_v7  ;;  %v1301_v27 = vsel %vm394_vm0, %v1275_v7, 0  ;;  %s2362_s8 = sadd.s32 %s2591_s7, %s2590_s6  ;;  %s3216_s24 = smov [#allocation2]  }
  0x1e   : > { %s182_s29 = scalar_lea.vmem %s4182_s0, %s2978_s20  ;;  %2969 = vmatprep.subr.msk.bf16.mxu1 %vm394_vm0, %v274_v5  ;;  %s3124_s27 = sshll.u32 %s3216_s24, 4  ;;  %s3125_s27 = int_to_ptr.vmem [resolvable:$false] %s3124_s27 }
  0x1f   : > { %s3339_s4 = scalar_lea.vmem %s182_s29, %s2459_s9  ;;  %s175_s29 = sand.u32 1, %s3190_s13  }
  0x20   : > { %v3344_v8 = vld [vmem:[%s3339_s4] sm:$0xff]  ;;  %v3347_v9 = vld [vmem:[%s3339_s4 + $0x8] sm:$0xff]  ;;  %v3350_v10 = vld [vmem:[%s3339_s4 + $0x10] sm:$0xff]  ;;  %s2592_s9 = sshll.u32 %s2362_s8, 7  ;;  %s4130_s15 = scalar_lea.sflag [#allocation3], %s175_s29 }
  0x21   : > { %v300_v11 = vrot.slane %v3344_v8, 1  ;;  %v301_v12 = vrot.slane %v3347_v9, 1  ;;  %v303_v13 = vrot.slane %v3350_v10, 1  ;;  %v3356_v14 = vld [vmem:[%s3339_s4 + $0x18] sm:$0xff]  ;;  %v3359_v15 = vld [vmem:[%s3339_s4 + $0x20] sm:$0xff]  ;;  %v2464_v16 = vld [vmem:[%s3339_s4 + $0x28] sm:$0xff]  ;;  %s4120_s21 = scalar_lea.hbm %s4185_s3, %s2592_s9 }
  0x22   : > { %v1002_v17 = vrot.slane %v3356_v14, 1  ;;  %v1003_v18 = vrot.slane %v3359_v15, 1  ;;  %v3365_v19 = vld [vmem:[%s3339_s4 + $0x30] sm:$0xff]  ;;  %v1005_v22 = vrot.slane %v2464_v16, 1  ;;  %v3370_v23 = vld [vmem:[%s3339_s4 + $0x38] sm:$0xff]  ;;  %v3373_v24 = vld [vmem:[%s3339_s4 + $0x40] sm:$0xff] }
  0x23   : > { %v302_v20 = vsel %vm299_vm1, %v300_v11, %v301_v12  ;;  %v304_v21 = vsel %vm299_vm1, %v301_v12, %v303_v13  ;;  %v3381_v29 = vld [vmem:[%s3339_s4 + $0x48] sm:$0xff]  ;;  %v3384_v30 = vld [vmem:[%s3339_s4 + $0x50] sm:$0xff]  ;;  %v1007_v32 = vrot.slane %v3365_v19, 1  ;;  %v1008_v33 = vrot.slane %v3370_v23, 1  ;;  %v3393_v35 = vld [vmem:[%s3339_s4 + $0x58] sm:$0xff]  ;;  %s3126_s28 = scalar_lea.vmem %s3125_s27, 4096 }
  0x24   : > { %v356_v25 = vpack.c.bf16 %v304_v21, %v302_v20  ;;  %v3376_v26 = vsel %vm299_vm1, %v1002_v17, %v1003_v18  ;;  %v3387_v31 = vsel %vm299_vm1, %v1003_v18, %v1005_v22  ;;  %v1010_v34 = vrot.slane %v3373_v24, 1  ;;  %v3396_v36 = vld [vmem:[%s3339_s4 + $0x60] sm:$0xff]  ;;  %v3399_v37 = vld [vmem:[%s3339_s4 + $0x68] sm:$0xff]  ;;  %v3407_v42 = vld [vmem:[%s3339_s4 + $0x70] sm:$0xff] }
  0x25   : > { %v1058_v38 = vpack.c.bf16 %v3387_v31, %v3376_v26  ;;  %v1207_v39 = vrot.slane %v3356_v14, 2  ;;  %v1208_v40 = vrot.slane %v3359_v15, 2  ;;  %v1210_v41 = vrot.slane %v2464_v16, 2  ;;  %v3446_v56 = vld [vmem:[%s3339_s4 + $0x78] sm:$0xff]  ;;  %v3449_v57 = vld [vmem:[%s3339_s4 + $0x80] sm:$0xff]  ;;  %v3452_v58 = vld [vmem:[%s3339_s4 + $0x88] sm:$0xff] }
  0x26   : > { %2678 = vmatprep.mubr.msk.bf16.mxu1 %vm369_vm2, %v356_v25  ;;  %v3410_v43 = vsel %vm299_vm1, %v1007_v32, %v1008_v33  ;;  %v3413_v44 = vsel %vm299_vm1, %v1008_v33, %v1010_v34  ;;  %v1012_v45 = vrot.slane %v3381_v29, 1  ;;  %v1013_v46 = vrot.slane %v3384_v30, 1  ;;  %v3465_v62 = vld [vmem:[%s3339_s4 + $0x90] sm:$0xff]  ;;  %v3468_v63 = vld [vmem:[%s3339_s4 + $0x98] sm:$0xff]  ;;  %v3471_v1 = vld [vmem:[%s3339_s4 + $0xa0] sm:$0xff] }
  0x27   : > { %2750 = vmatprep.mubr.msk.bf16.mxu0 %vm369_vm2, %v1058_v38  ;;  %2679 = vmatmul.mubr.msk.bf16.vlgmr.msra.gmra.mrb[0].mxu1 %vm369_vm2, %v1058_v38  ;;  %v3421_v47 = vpack.c.bf16 %v3413_v44, %v3410_v43  ;;  %v1015_v48 = vrot.slane %v3393_v35, 1  ;;  %v1017_v49 = vrot.slane %v3396_v36, 1  ;;  %v1018_v50 = vrot.slane %v3399_v37, 1  ;;  %v3517_v34 = vld [vmem:[%s3339_s4 + $0xa8] sm:$0xff]  ;;  %v3523_v38 = vld [vmem:[%s3339_s4 + $0xb8] sm:$0xff] }
  0x28   : > { %2695 = vmatpush3.bf16.msra.mxu1 %v520_v28  ;;  %v3432_v52 = vsel %vm299_vm1, %v1012_v45, %v1013_v46  ;;  %v1020_v53 = vrot.slane %v3407_v42, 1  ;;  %v1209_v3 = vsel %vm619_vm3, %v1207_v39, %v1208_v40  ;;  %v1211_v4 = vsel %vm619_vm3, %v1208_v40, %v1210_v41 }
  0x29   : > { %2751 = vmatmul.mubr.msk.bf16.vlgmr.msra.gmra.mrb[0].mxu0 %vm369_vm2, %v3421_v47  ;;  %2682 = vmatprep.mubr.msk.bf16.mxu1 %vm369_vm2, %v3421_v47  ;;  %v3443_v55 = vsel %vm299_vm1, %v1013_v46, %v1015_v48  ;;  %v3459_v60 = vsel %vm299_vm1, %v1017_v49, %v1018_v50  ;;  %v325_v5 = vrot.slane %v3446_v56, 1  ;;  %v326_v6 = vrot.slane %v3449_v57, 1  ;;  %v3538_v48 = vld [vmem:[%s4183_s1 + $0xc] ss:$0 sps:$4 sm:$0xcc]  }
  0x2a   : > { %2767 = vmatpush3.bf16.msra.mxu0 %v1301_v27  ;;  %v3456_v59 = vpack.c.bf16 %v3443_v55, %v3432_v52  ;;  %v3462_v61 = vsel %vm299_vm1, %v1018_v50, %v1020_v53  ;;  %2970 = vmatprep.subr.msk.bf16.mxu1 %vm394_vm0, %v3429_v51  ;;  %v328_v7 = vrot.slane %v3452_v58, 1  ;;  %v330_v12 = vrot.slane %v3465_v62, 1 }
  0x2b   : > { %2975 = vmatprep.subr.msk.bf16.mxu0 %vm394_vm0, %v1424_v54  ;;  %v3485_v11 = vpack.c.bf16 %v3462_v61, %v3459_v60  ;;  %v331_v13 = vrot.slane %v3468_v63, 1  ;;  %v333_v16 = vrot.slane %v3471_v1, 1  ;;  %v1212_v17 = vrot.slane %v3365_v19, 2 }
  0x2c   : > { %2754 = vmatprep.mubr.msk.bf16.mxu0 %vm369_vm2, %v3456_v59  ;;  %v1213_v18 = vrot.slane %v3370_v23, 2  ;;  %v1215_v20 = vrot.slane %v3373_v24, 2  ;;  %v3493_v21 = vpack.c.bf16 %v1211_v4, %v1209_v3  ;;  %v1217_v22 = vrot.slane %v3381_v29, 2 }
  0x2d   : > { %v1218_v25 = vrot.slane %v3384_v30, 2  ;;  %v1220_v27 = vrot.slane %v3393_v35, 2  ;;  %v3503_v28 = vsel %vm299_vm1, %v325_v5, %v326_v6  ;;  %v3506_v32 = vsel %vm299_vm1, %v326_v6, %v328_v7  ;;  %v3520_v35 = vld [vmem:[%s3339_s4 + $0xb0] sm:$0xff] }
  0x2e   : > { %4193 = vst [vmem:[#allocation5_spill] sm:$0xff] %v3503_v28  ;;  %4194 = vst [vmem:[#allocation6_spill] sm:$0xff] %v3506_v32  ;;  %v3511_v24 = vsel %vm299_vm1, %v330_v12, %v331_v13  ;;  %v3514_v33 = vsel %vm299_vm1, %v331_v13, %v333_v16  ;;  %v1214_v39 = vsel %vm619_vm3, %v1212_v17, %v1213_v18  ;;  %v335_v50 = vrot.slane %v3517_v34, 1 }
  0x2f   : > { %2683 = vmatmul.mubr.msk.bf16.gmra.mrb[4].mxu1 %vm369_vm2, %v3456_v59  ;;  %v1216_v40 = vsel %vm619_vm3, %v1213_v18, %v1215_v20  ;;  %v3531_v41 = vpack.c.bf16 %v3506_v32, %v3503_v28  ;;  %v1219_v45 = vsel %vm619_vm3, %v1217_v22, %v1218_v25  ;;  %v1221_v46 = vsel %vm619_vm3, %v1218_v25, %v1220_v27  ;;  %v3648_v28 = vld [vmem:[%s3339_s4 + $0xd0] sm:$0xff] }
  0x30   : > { %2686 = vmatprep.mubr.msk.bf16.mxu1 %vm369_vm2, %v3485_v11  ;;  %v3542_v49 = vpack.c.bf16 %v3514_v33, %v3511_v24  ;;  %v336_v53 = vrot.slane %v3520_v35, 1  ;;  %v338_v3 = vrot.slane %v3523_v38, 1  ;;  %v3547_v4 = vpack.c.bf16 %v1216_v40, %v1214_v39  ;;  %v2511_v40 = vld [vmem:[%s3339_s4 + $0xe8] sm:$0xff] }
  0x31   : > { %2755 = vmatmul.mubr.msk.bf16.gmra.mrb[4].mxu0 %vm369_vm2, %v3485_v11  ;;  %v1222_v5 = vrot.slane %v3396_v36, 2  ;;  %v1223_v6 = vrot.slane %v3399_v37, 2  ;;  %v1225_v7 = vrot.slane %v3407_v42, 2  ;;  %v1450_v12 = vsel %vm394_vm0, %v1424_v54, 0 }
  0x32   : > { %2768 = vmatprep.mubr.msk.bf16.mxu0 %vm369_vm2, %v3493_v21  ;;  %v3553_v13 = vpack.c.bf16 %v1221_v46, %v1219_v45  ;;  %v1227_v16 = vrot.slane %v3446_v56, 2  ;;  %v1228_v17 = vrot.slane %v3449_v57, 2  ;;  %v1230_v18 = vrot.slane %v3452_v58, 2 }
  0x33   : > { %v4186_v20 = vrot.slane %v3538_v48, 2  ;;  %v3564_v42 = vsel %vm299_vm1, %v335_v50, %v336_v53  ;;  %v3567_v54 = vsel %vm299_vm1, %v336_v53, %v338_v3  ;;  %v1224_v22 = vsel %vm619_vm3, %v1222_v5, %v1223_v6  ;;  %v3592_v3 = vld [vmem:[%s3339_s4 + $0xd8] sm:$0xff]  ;;  %v3595_v5 = vld [vmem:[%s3339_s4 + $0xe0] sm:$0xff] }
  0x34   : > { %4195 = vst [vmem:[#allocation7_spill] sm:$0xff] %v3564_v42  ;;  %4196 = vst [vmem:[#allocation8_spill] sm:$0xff] %v3567_v54  ;;  %v1226_v58 = vsel %vm619_vm3, %v1223_v6, %v1225_v7  ;;  %v3577_v25 = vpack.c.bf16 %v3567_v54, %v3564_v42  ;;  %v1229_v27 = vsel %vm619_vm3, %v1227_v16, %v1228_v17  ;;  %v1232_v50 = vrot.slane %v3465_v62, 2 }
  0x35   : > { %v1231_v39 = vsel %vm619_vm3, %v1228_v17, %v1230_v18  ;;  %v3585_v45 = vpack.c.bf16 %v1226_v58, %v1224_v22  ;;  %v266_v46 = vpack.c.bf16 %v3347_v9, %v3344_v8  ;;  %v1233_v53 = vrot.slane %v3468_v63, 2 }
  0x36   : > { %v1235_v6 = vrot.slane %v3471_v1, 2  ;;  %v1624_v7 = vrot.slane %v3592_v3, 1  ;;  %v1833_v16 = vrot.slane %v3592_v3, 2  ;;  %v3601_v17 = vpack.c.bf16 %v1231_v39, %v1229_v27 }
  0x37   : > { %2687 = vmatmul.mubr.msk.bf16.gmra.mrb[8].mxu1 %vm369_vm2, %v3531_v41  ;;  %v1237_v18 = vrot.slane %v3517_v34, 2  ;;  %v1834_v22 = vrot.slane %v3595_v5, 2  ;;  %v1627_v58 = vrot.slane %v2511_v40, 1  ;;  %v1240_v1 = vrot.slane %v3523_v38, 2 }
  0x38   : > { %2690 = vmatprep.mubr.msk.bf16.mxu1 %vm369_vm2, %v3542_v49  ;;  %v1836_v42 = vrot.slane %v2511_v40, 2  ;;  %v3055_v38 = vld [vmem:[%s4183_s1 + $0x4] ss:$0 sps:$4 sm:$0xcc]  }
  0x39   : > { %2769 = vmatmul.mubr.msk.bf16.vlgmr.msra.gmra.mrb[0].mxu0 %vm369_vm2, %v3547_v4  ;;  %v3617_v39 = vsel %vm619_vm3, %v1833_v16, %v1834_v22 }
  0x3a   : > { %2785 = vmatpush3.bf16.msra.mxu0 %v1450_v12  ;;  %2772 = vmatprep.mubr.msk.bf16.mxu0 %vm369_vm2, %v3553_v13  ;;  %v1625_v12 = vrot.slane %v3595_v5, 1 }
  0x3b   : > { %2976 = vmatprep.subr.msk.bf16.mxu0 %vm394_vm0, %v4186_v20  ;;  %v1238_v20 = vrot.slane %v3520_v35, 2 }
  0x3c   : > { %v3610_v54 = vsel %vm299_vm1, %v1624_v7, %v1625_v12  ;;  %v3614_v27 = vsel %vm299_vm1, %v1625_v12, %v1627_v58  ;;  %v3627_v7 = vsel %vm619_vm3, %v1834_v22, %v1836_v42  ;;  %v1236_v12 = vsel %vm619_vm3, %v1233_v53, %v1235_v6  ;;  %v3642_v42 = vld [vmem:[%s3339_s4 + $0xc0] sm:$0xff]  ;;  %v3645_v22 = vld [vmem:[%s3339_s4 + $0xc8] sm:$0xff]  ;;  %s2456_s4 = sshll.u32 %s175_s29, 7 }
  0x3d   : > { %v1861_v16 = vpack.c.bf16 %v3627_v7, %v3617_v39  ;;  %v3637_v58 = vpack.c.bf16 %v3359_v15, %v3356_v14  ;;  %v1239_v32 = vsel %vm619_vm3, %v1237_v18, %v1238_v20  ;;  %v1241_v40 = vsel %vm619_vm3, %v1238_v20, %v1240_v1  ;;  %s4020_s5 = scalar_lea.vmem [#allocation2], %s2456_s4 }
  0x3e   : > { %v710_v14 = vsel %vm394_vm0, %v3429_v51, 0  ;;  %v837_v15 = vrot.slane %v3055_v38, 2  ;;  %v3658_v6 = vpack.c.bf16 %v1241_v40, %v1239_v32  ;;  %v1242_v20 = vrot.slane %v3642_v42, 2  ;;  %s2365_s10 = sshll.u32 %s4020_s5, 4  ;;  %s4122_s10 = int_to_ptr.vmem [resolvable:$true] %s2365_s10 }
  0x3f   : > { %2691 = vmatmul.mubr.msk.bf16.gmra.mrb[12].mxu1 %vm369_vm2, %v3577_v25  ;;  %v1243_v18 = vrot.slane %v3645_v22, 2  ;;  %v1245_v1 = vrot.slane %v3648_v28, 2  ;;  %v269_v51 = vpack.c.bf16 %v3384_v30, %v3381_v29  ;;  %v270_v32 = vpack.c.bf16 %v3399_v37, %v3396_v36  ;;  %s3120_s16 = scalar_lea.vmem %s4122_s10, 2048  ;;  %p3127_p2 = scmp.lt.s32.totalorder %s4122_s10, %s3125_s27 }
  0x40   : > { %2696 = vmatprep.mubr.msk.bf16.mxu1 %vm369_vm2, %v266_v46  ;;  %v1234_v46 = vsel %vm619_vm3, %v1232_v50, %v1233_v53  ;;  %v3652_v50 = vpack.c.bf16 %v3370_v23, %v3365_v19  ;;  %v271_v40 = vpack.c.bf16 %v3449_v57, %v3446_v56  ;;  %v272_v29 = vpack.c.bf16 %v3468_v63, %v3465_v62  ;;  %v1862_v56 = vld [vmem:[%s4183_s1 + $0x10] sm:$0x3]  ;;  %p3121_p13 = scmp.ne.s32.totalorder %s4122_s10, %s3120_s16  ;;  %p3128_p4 = scmp.lt.s32.totalorder %s3126_s28, %s3120_s16 }
  0x41   : > { %2773 = vmatmul.mubr.msk.bf16.gmra.mrb[4].mxu0 %vm369_vm2, %v3585_v45  ;;  %v3654_v53 = vpack.c.bf16 %v1236_v12, %v1234_v46  ;;  %v1244_v19 = vsel %vm619_vm3, %v1242_v20, %v1243_v18  ;;  %v1246_v23 = vsel %vm619_vm3, %v1243_v18, %v1245_v1  ;;  %v620_v30 = vrot.slane %v3344_v8, 2 }
  0x42   : > { %2776 = vmatprep.mubr.msk.bf16.mxu0 %vm369_vm2, %v3601_v17  ;;  %v3678_v38 = vpack.c.bf16 %v1246_v23, %v1244_v19  ;;  %v621_v36 = vrot.slane %v3347_v9, 2  ;;  %v623_v37 = vrot.slane %v3350_v10, 2  ;;  %v4197_v46 = vrot.slane %v3538_v48, 2  ;;  %p3122_p0 = pnand %p3121_p13, %p3290_p3  ;;  %p3129_p5 = por %p3128_p4, %p3127_p2 }
  0x43   : > { %v273_v10 = vpack.c.bf16 %v3520_v35, %v3517_v34  ;;  %v863_v62 = vsel %vm394_vm0, %v837_v15, 0  ;;  %v1422_v63 = vpack.c.bf16 %v3645_v22, %v3642_v42  ;;  %v1423_v34 = vpack.c.bf16 %v3595_v5, %v3592_v3  ;;  %v3804_v5 = vld [vmem:[%s4184_s2] ss:$0 sm:$0xff] }
  0x44   : > { %v1683_v12 = vsel %vm394_vm0, %v4197_v46, 0  ;;  %v622_v8 = vsel %vm619_vm3, %v620_v30, %v621_v36  ;;  %v624_v9 = vsel %vm619_vm3, %v621_v36, %v623_v37  ;;  %v1620_v35 = vrot.slane %v3645_v22, 1  ;;  %p3123_p1 = pneg %p3122_p0 }
  0x45   : > { %v676_v57 = vpack.c.bf16 %v624_v9, %v622_v8 }
  0x46   : > { %p3130_p6 = pnand %p3129_p5, %p3123_p1 }
  0x47   : > { %2697 = vmatmul.mubr.msk.bf16.vlgmr.msra.gmra.mrb[0].mxu1 %vm369_vm2, %v3637_v58 }
  0x48   : > { %2713 = vmatpush3.bf16.msra.mxu1 %v710_v14  ;;  %2700 = vmatprep.mubr.msk.bf16.mxu1 %vm369_vm2, %v3652_v50 }
  0x49   : > { %2777 = vmatmul.mubr.msk.bf16.gmra.mrb[8].mxu0 %vm369_vm2, %v3654_v53  ;;  %2971 = vmatprep.subr.msk.bf16.mxu1 %vm394_vm0, %v837_v15 }
  0x4a   : > { %2780 = vmatprep.mubr.msk.bf16.mxu0 %vm369_vm2, %v3658_v6 }
  0x4f   : > { %2701 = vmatmul.mubr.msk.bf16.gmra.mrb[4].mxu1 %vm369_vm2, %v269_v51 }
  0x50   : > { %2704 = vmatprep.mubr.msk.bf16.mxu1 %vm369_vm2, %v270_v32 }
  0x51   : > { %2781 = vmatmul.mubr.msk.bf16.gmra.mrb[12].mxu0 %vm369_vm2, %v3678_v38 }
  0x52   : > { %2786 = vmatprep.mubr.msk.bf16.mxu0 %vm369_vm2, %v3652_v50 }
  0x57   : > { %2705 = vmatmul.mubr.msk.bf16.gmra.mrb[8].mxu1 %vm369_vm2, %v271_v40 }
  0x58   : > { %2708 = vmatprep.mubr.msk.bf16.mxu1 %vm369_vm2, %v272_v29 }
  0x59   : > { %2787 = vmatmul.mubr.msk.bf16.vlgmr.msra.gmra.mrb[0].mxu0 %vm369_vm2, %v269_v51 }
  0x5a   : > { %2803 = vmatpush3.bf16.msra.mxu0 %v1683_v12  ;;  %2790 = vmatprep.mubr.msk.bf16.mxu0 %vm369_vm2, %v270_v32 }
  0x5b   : > { %2977 = vmatprep.subr.msk.bf16.mxu0 %vm394_vm0, %v1862_v56 }
  0x5f   : > { %2709 = vmatmul.mubr.msk.bf16.gmra.mrb[12].mxu1 %vm369_vm2, %v273_v10 }
  0x60   : > { %2714 = vmatprep.mubr.msk.bf16.mxu1 %vm369_vm2, %v676_v57 }
  0x61   : > { %2791 = vmatmul.mubr.msk.bf16.gmra.mrb[4].mxu0 %vm369_vm2, %v271_v40 }
  0x62   : > { %2794 = vmatprep.mubr.msk.bf16.mxu0 %vm369_vm2, %v272_v29 }
  0x67   : > { %2715 = vmatmul.mubr.msk.bf16.vlgmr.msra.gmra.mrb[0].mxu1 %vm369_vm2, %v3493_v21  ;;  %v1619_v21 = vrot.slane %v3642_v42, 1 }
  0x68   : > { %2731 = vmatpush3.bf16.msra.mxu1 %v863_v62  ;;  %2718 = vmatprep.mubr.msk.bf16.mxu1 %vm369_vm2, %v3547_v4 }
  0x69   : > { %2795 = vmatmul.mubr.msk.bf16.gmra.mrb[8].mxu0 %vm369_vm2, %v273_v10  ;;  %2973 = vmatprep.subr.msk.bf16.mxu1 %vm394_vm0, %v3313_v0  ;;  %v1888_v0 = vsel %vm394_vm0, %v1862_v56, 0 }
  0x6a   : > { %2798 = vmatprep.mubr.msk.bf16.mxu0 %vm369_vm2, %v1422_v63 }
  0x6f   : > { %2719 = vmatmul.mubr.msk.bf16.gmra.mrb[4].mxu1 %vm369_vm2, %v3553_v13 }
  0x70   : > { %2722 = vmatprep.mubr.msk.bf16.mxu1 %vm369_vm2, %v3585_v45 }
  0x71   : > { %2799 = vmatmul.mubr.msk.bf16.gmra.mrb[12].mxu0 %vm369_vm2, %v1423_v34 }
  0x72   : > { %2804 = vmatprep.mubr.msk.bf16.mxu0 %vm369_vm2, %v3421_v47  ;;  %v1622_v47 = vrot.slane %v3648_v28, 1  ;;  %v4198_v28 = vpack.c.bf16 %v3614_v27, %v3610_v54 }
  0x77   : > { %2723 = vmatmul.mubr.msk.bf16.gmra.mrb[8].mxu1 %vm369_vm2, %v3601_v17 }
  0x78   : > { %2726 = vmatprep.mubr.msk.bf16.mxu1 %vm369_vm2, %v3654_v53 }
  0x79   : > { %2805 = vmatmul.mubr.msk.bf16.vlgmr.msra.gmra.mrb[0].mxu0 %vm369_vm2, %v3456_v59  ;;  %v3753_v59 = vsel %vm299_vm1, %v1619_v21, %v1620_v35 }
  0x7a   : > { %2821 = vmatpush3.bf16.msra.mxu0 %v1888_v0  ;;  %2808 = vmatprep.mubr.msk.bf16.mxu0 %vm369_vm2, %v3485_v11  ;;  %v3756_v11 = vsel %vm299_vm1, %v1620_v35, %v1622_v47 }
  0x7b   : > { %v1651_v48 = vpack.c.bf16 %v3756_v11, %v3753_v59 }
  0x7f   : > { %2727 = vmatmul.mubr.msk.bf16.gmra.mrb[12].mxu1 %vm369_vm2, %v3658_v6 }
  0x80   : > { %2732 = vmatprep.mubr.msk.bf16.mxu1 %vm369_vm2, %v3637_v58 }
  0x81   : > { %2809 = vmatmul.mubr.msk.bf16.gmra.mrb[4].mxu0 %vm369_vm2, %v3531_v41 }
  0x82   : > { %2812 = vmatprep.mubr.msk.bf16.mxu0 %vm369_vm2, %v3542_v49 }
  0x87   : > { %2733 = vmatmul.mubr.msk.bf16.vlgmr.msra.gmra.mrb[0].mxu1 %vm369_vm2, %v3652_v50 }
  0x88   : > { %2839 = vmatpush3.bf16.msra.mxu1 %v3323_v2  ;;  %2736 = vmatprep.mubr.msk.bf16.mxu1 %vm369_vm2, %v269_v51 }
  0x89   : > { %2813 = vmatmul.mubr.msk.bf16.gmra.mrb[8].mxu0 %vm369_vm2, %v3577_v25 }
  0x8a   : > { %2816 = vmatprep.mubr.msk.bf16.mxu0 %vm369_vm2, %v1651_v48 }
  0x8f   : > { %2737 = vmatmul.mubr.msk.bf16.gmra.mrb[4].mxu1 %vm369_vm2, %v270_v32 }
  0x90   : > { %2740 = vmatprep.mubr.msk.bf16.mxu1 %vm369_vm2, %v271_v40 }
  0x91   : > { %2817 = vmatmul.mubr.msk.bf16.gmra.mrb[12].mxu0 %vm369_vm2, %v4198_v28 }
  0x92   : > { %2822 = vmatprep.mubr.msk.bf16.mxu0 %vm369_vm2, %v3547_v4 }
  0x97   : > { %2741 = vmatmul.mubr.msk.bf16.gmra.mrb[8].mxu1 %vm369_vm2, %v272_v29 }
  0x98   : > { %2744 = vmatprep.mubr.msk.bf16.mxu1 %vm369_vm2, %v273_v10 }
  0x99   : > { %2823 = vmatmul.mubr.msk.bf16.vlgmr.msra.gmra.mrb[0].mxu0 %vm369_vm2, %v3553_v13 }
  0x9a   : > { %2826 = vmatprep.mubr.msk.bf16.mxu0 %vm369_vm2, %v3585_v45 }
  0x9f   : > { %2745 = vmatmul.mubr.msk.bf16.gmra.mrb[12].mxu1 %vm369_vm2, %v1422_v63 }
  0xa0   : > { %2758 = vmatprep.mubr.msk.bf16.mxu1 %vm369_vm2, %v3531_v41 }
  0xa1   : > { %2827 = vmatmul.mubr.msk.bf16.gmra.mrb[4].mxu0 %vm369_vm2, %v3601_v17 }
  0xa2   : > { %2830 = vmatprep.mubr.msk.bf16.mxu0 %vm369_vm2, %v3654_v53 }
  0xa7   : > { %2759 = vmatmul.mubr.msk.bf16.vlgmr.msra.gmra.mrb[8].mxu1 %vm369_vm2, %v3542_v49 }
  0xa8   : > { %2762 = vmatprep.mubr.msk.bf16.mxu1 %vm369_vm2, %v3577_v25 }
  0xa9   : > { %2831 = vmatmul.mubr.msk.bf16.gmra.mrb[8].mxu0 %vm369_vm2, %v3658_v6 }
  0xaa   : > { %2834 = vmatprep.mubr.msk.bf16.mxu0 %vm369_vm2, %v3678_v38 }
  0xaf   : > { %2763 = vmatmul.mubr.msk.bf16.gmra.mrb[12].mxu1 %vm369_vm2, %v1651_v48 }
  0xb1   : > { %2835 = vmatmul.mubr.msk.bf16.gmra.mrb[12].mxu0 %vm369_vm2, %v1861_v16 }
 0x15a   : > { %v2734_v2 = vpop.f32.mrb[0].mxu1 }
 0x15b   : > { %v899_v41 = vpop.f32.mrb[1].mxu1 }
 0x15c   : > { %v2735_v4 = vpop.f32.mrb[2].mxu1 }
 0x15d   : > { %v902_v49 = vpop.f32.mrb[3].mxu1 }
 0x162   : > { %v2738_v13 = vpop.f32.mrb[4].mxu1 }
 0x163   : > { %v915_v54 = vpop.f32.mrb[5].mxu1 }
 0x164   : > { %v2739_v25 = vpop.f32.mrb[6].mxu1 }
 0x165   : > { %v918_v45 = vpop.f32.mrb[7].mxu1 }
 0x16c   : > { %v2824_v3 = vpop.f32.mrb[0].mxu0 }
 0x16d   : > { %v2840_v17 = vadd.f32 %v2824_v3, %v2734_v2  ;;  %v1924_v27 = vpop.f32.mrb[1].mxu0 }
 0x16e   : > { %v2841_v58 = vadd.f32 %v1924_v27, %v899_v41  ;;  %v2825_v39 = vpop.f32.mrb[2].mxu0 }
 0x16f   : > { %v2842_v7 = vadd.f32 %v2825_v39, %v2735_v4  ;;  %v1927_v16 = vpop.f32.mrb[3].mxu0  ;;  %v3807_v42 = vadd.f32 %v2840_v17, %v3804_v5 }
 0x170   : > { %v2843_v22 = vadd.f32 %v1927_v16, %v902_v49  ;;  %v3810_v50 = vadd.f32 %v2841_v58, %v3804_v5 }
 0x171   : > { %2030 = vadd.xlane.f32.xlu1 %v3807_v42  ;;  %v3815_v53 = vadd.f32 %v2842_v7, %v3804_v5  ;;  %v2090_v7 = vlaneseq }
 0x172   : > { %2026 = vadd.xlane.f32.xlu0 %v3810_v50  ;;  %v3818_v15 = vadd.f32 %v2843_v22, %v3804_v5 }
 0x173   : > { %v3870_v16 = vand.u32 127, %v2090_v7 }
 0x174   : > { %v2828_v14 = vpop.f32.mrb[4].mxu0 }
 0x175   : > { %v2844_v6 = vadd.f32 %v2828_v14, %v2738_v13  ;;  %v1940_v20 = vpop.f32.mrb[5].mxu0  ;;  %2032 = vadd.xlane.f32.xlu1 %v3815_v53  ;;  %vm2092_vm4 = vcmp.lt.s32.totalorder %v3870_v16, 4 }
 0x176   : > { %v2845_v18 = vadd.f32 %v1940_v20, %v915_v54  ;;  %v2829_v1 = vpop.f32.mrb[6].mxu0  ;;  %2028 = vadd.xlane.f32.xlu0 %v3818_v15 }
 0x177   : > { %v2846_v19 = vadd.f32 %v2829_v1, %v2739_v25  ;;  %v1943_v23 = vpop.f32.mrb[7].mxu0  ;;  %v3823_v51 = vadd.f32 %v2844_v6, %v3804_v5 }
 0x178   : > { %v2847_v32 = vadd.f32 %v1943_v23, %v918_v45  ;;  %v3831_v36 = vadd.f32 %v2845_v18, %v3804_v5 }
 0x179   : > { %v3826_v38 = vadd.f32 %v2846_v19, %v3804_v5 }
 0x17a   : > { %2038 = vadd.xlane.f32.xlu0 %v3823_v51  ;;  %v2760_v40 = vpop.f32.mrb[8].mxu1  ;;  %v3834_v56 = vadd.f32 %v2847_v32, %v3804_v5 }
 0x17b   : > { %2040 = vadd.xlane.f32.xlu1 %v3826_v38  ;;  %v1160_v29 = vpop.f32.mrb[9].mxu1 }
 0x17c   : > { %v2832_v30 = vpop.f32.mrb[8].mxu0  ;;  %v2761_v37 = vpop.f32.mrb[10].mxu1 }
 0x17d   : > { %v2848_v46 = vadd.f32 %v2832_v30, %v2760_v40  ;;  %v1956_v12 = vpop.f32.mrb[9].mxu0  ;;  %v1163_v8 = vpop.f32.mrb[11].mxu1 }
 0x17e   : > { %v2849_v9 = vadd.f32 %v1956_v12, %v1160_v29  ;;  %v2833_v10 = vpop.f32.mrb[10].mxu0  ;;  %2034 = vadd.xlane.f32.xlu0 %v3831_v36 }
 0x17f   : > { %v2850_v57 = vadd.f32 %v2833_v10, %v2761_v37  ;;  %v1959_v62 = vpop.f32.mrb[11].mxu0  ;;  %2036 = vadd.xlane.f32.xlu1 %v3834_v56  ;;  %v3839_v63 = vadd.f32 %v2848_v46, %v3804_v5 }
 0x180   : > { %v2851_v34 = vadd.f32 %v1959_v62, %v1163_v8  ;;  %v3847_v48 = vadd.f32 %v2849_v9, %v3804_v5 }
 0x181   : > { %v3842_v0 = vadd.f32 %v2850_v57, %v3804_v5 }
 0x182   : > { %2046 = vadd.xlane.f32.xlu0 %v3839_v63  ;;  %v2764_v21 = vpop.f32.mrb[12].mxu1  ;;  %v3850_v4 = vadd.f32 %v2851_v34, %v3804_v5 }
 0x183   : > { %2048 = vadd.xlane.f32.xlu1 %v3842_v0  ;;  %v1176_v35 = vpop.f32.mrb[13].mxu1 }
 0x184   : > { %v2836_v47 = vpop.f32.mrb[12].mxu0  ;;  %v2765_v28 = vpop.f32.mrb[14].mxu1 }
 0x185   : > { %v2852_v2 = vadd.f32 %v2836_v47, %v2764_v21  ;;  %v1972_v41 = vpop.f32.mrb[13].mxu0  ;;  %v1179_v49 = vpop.f32.mrb[15].mxu1 }
 0x186   : > { %v2853_v13 = vadd.f32 %v1972_v41, %v1176_v35  ;;  %v2837_v54 = vpop.f32.mrb[14].mxu0  ;;  %2042 = vadd.xlane.f32.xlu0 %v3847_v48 }
 0x187   : > { %v2854_v25 = vadd.f32 %v2837_v54, %v2765_v28  ;;  %v1975_v45 = vpop.f32.mrb[15].mxu0  ;;  %2044 = vadd.xlane.f32.xlu1 %v3850_v4  ;;  %v3863_v58 = vadd.f32 %v2852_v2, %v3804_v5 }
 0x188   : > { %v2855_v3 = vadd.f32 %v1975_v45, %v1179_v49  ;;  %v3855_v17 = vadd.f32 %v2853_v13, %v3804_v5 }
 0x189   : > { %v3867_v39 = vadd.f32 %v2854_v25, %v3804_v5 }
 0x18a   : > { %2050 = vadd.xlane.f32.xlu0 %v3855_v17  ;;  %v3859_v27 = vadd.f32 %v2855_v3, %v3804_v5 }
 0x18c   : > { %2052 = vadd.xlane.f32.xlu1 %v3859_v27 }
 0x18e   : > { %2054 = vadd.xlane.f32.xlu0 %v3863_v58 }
 0x190   : > { %2056 = vadd.xlane.f32.xlu1 %v3867_v39 }
 0x1fe   : > { %v2031_v22 = vpop.xlane.xlu1 %2030 }
 0x1ff   : > { %v2060_v14 = vmul.f32 0.25, %v2031_v22  ;;  %v2027_v6 = vpop.xlane.xlu0 %2026 }
 0x200   : > { %v2058_v20 = vmul.f32 0.25, %v2027_v6 }
 0x201   : > { %v2076_v18 = vsub.f32 %v3807_v42, %v2060_v14 }
 0x202   : > { %v2074_v1 = vsub.f32 %v3810_v50, %v2058_v20  ;;  %v2033_v19 = vpop.xlane.xlu1 %2032 }
 0x203   : > { %v2061_v23 = vmul.f32 0.25, %v2033_v19  ;;  %v2029_v32 = vpop.xlane.xlu0 %2028  ;;  %v3877_v5 = vsel %vm2092_vm4, %v2076_v18, 0.0 }
 0x204   : > { %v2059_v40 = vmul.f32 0.25, %v2029_v32  ;;  %v2111_v29 = vmul.f32 %v3877_v5, %v3877_v5  ;;  %v3884_v37 = vsel %vm2092_vm4, %v2074_v1, 0.0 }
 0x205   : > { %v2077_v30 = vsub.f32 %v3815_v53, %v2061_v23  ;;  %v2109_v9 = vmul.f32 %v3884_v37, %v3884_v37 }
 0x206   : > { %v2075_v42 = vsub.f32 %v3818_v15, %v2059_v40  ;;  %2129 = vadd.xlane.f32.xlu0 %v2111_v29 }
 0x207   : > { %v2039_v50 = vpop.xlane.xlu0 %2038  ;;  %v3889_v46 = vsel %vm2092_vm4, %v2077_v30, 0.0 }
 0x208   : > { %v2064_v12 = vmul.f32 0.25, %v2039_v50  ;;  %v2041_v8 = vpop.xlane.xlu1 %2040  ;;  %v2112_v53 = vmul.f32 %v3889_v46, %v3889_v46  ;;  %v3897_v57 = vsel %vm2092_vm4, %v2075_v42, 0.0 }
 0x209   : > { %v2065_v10 = vmul.f32 0.25, %v2041_v8  ;;  %v2110_v47 = vmul.f32 %v3897_v57, %v3897_v57 }
 0x20a   : > { %v2080_v15 = vsub.f32 %v3823_v51, %v2064_v12  ;;  %2125 = vadd.xlane.f32.xlu0 %v2109_v9  ;;  %2131 = vadd.xlane.f32.xlu1 %v2112_v53 }
 0x20b   : > { %v2081_v62 = vsub.f32 %v3826_v38, %v2065_v10  ;;  %v2035_v34 = vpop.xlane.xlu0 %2034 }
 0x20c   : > { %v2062_v21 = vmul.f32 0.25, %v2035_v34  ;;  %v2037_v35 = vpop.xlane.xlu1 %2036  ;;  %v3905_v28 = vsel %vm2092_vm4, %v2080_v15, 0.0 }
 0x20d   : > { %v2063_v2 = vmul.f32 0.25, %v2037_v35  ;;  %v2115_v41 = vmul.f32 %v3905_v28, %v3905_v28  ;;  %v3911_v51 = vsel %vm2092_vm4, %v2081_v62, 0.0 }
 0x20e   : > { %v2078_v38 = vsub.f32 %v3831_v36, %v2062_v21  ;;  %2127 = vadd.xlane.f32.xlu1 %v2110_v47  ;;  %v2116_v45 = vmul.f32 %v3911_v51, %v3911_v51 }
 0x20f   : > { %v2079_v49 = vsub.f32 %v3834_v56, %v2063_v2  ;;  %v2047_v13 = vpop.xlane.xlu0 %2046  ;;  %2137 = vadd.xlane.f32.xlu0 %v2115_v41 }
 0x210   : > { %v2068_v54 = vmul.f32 0.25, %v2047_v13  ;;  %v2049_v25 = vpop.xlane.xlu1 %2048  ;;  %v3919_v3 = vsel %vm2092_vm4, %v2078_v38, 0.0 }
 0x211   : > { %v2069_v7 = vmul.f32 0.25, %v2049_v25  ;;  %v2113_v22 = vmul.f32 %v3919_v3, %v3919_v3  ;;  %v3925_v36 = vsel %vm2092_vm4, %v2079_v49, 0.0 }
 0x212   : > { %v2084_v56 = vsub.f32 %v3839_v63, %v2068_v54  ;;  %2139 = vadd.xlane.f32.xlu1 %v2116_v45  ;;  %v2114_v1 = vmul.f32 %v3925_v36, %v3925_v36 }
 0x213   : > { %v2085_v14 = vsub.f32 %v3842_v0, %v2069_v7  ;;  %v2043_v6 = vpop.xlane.xlu0 %2042  ;;  %2133 = vadd.xlane.f32.xlu0 %v2113_v22 }
 0x214   : > { %v2066_v20 = vmul.f32 0.25, %v2043_v6  ;;  %v2045_v18 = vpop.xlane.xlu1 %2044  ;;  %v3933_v19 = vsel %vm2092_vm4, %v2084_v56, 0.0 }
 0x215   : > { %v2067_v23 = vmul.f32 0.25, %v2045_v18  ;;  %v2119_v32 = vmul.f32 %v3933_v19, %v3933_v19  ;;  %v3939_v63 = vsel %vm2092_vm4, %v2085_v14, 0.0 }
 0x216   : > { %v2082_v0 = vsub.f32 %v3847_v48, %v2066_v20  ;;  %2135 = vadd.xlane.f32.xlu1 %v2114_v1  ;;  %v2120_v42 = vmul.f32 %v3939_v63, %v3939_v63 }
 0x217   : > { %v2083_v40 = vsub.f32 %v3850_v4, %v2067_v23  ;;  %2145 = vadd.xlane.f32.xlu0 %v2119_v32  ;;  %v2051_v29 = vpop.xlane.xlu0 %2050 }
 0x218   : > { %v2070_v30 = vmul.f32 0.25, %v2051_v29  ;;  %v3947_v50 = vsel %vm2092_vm4, %v2082_v0, 0.0 }
 0x219   : > { %v2053_v12 = vpop.xlane.xlu1 %2052  ;;  %v2117_v8 = vmul.f32 %v3947_v50, %v3947_v50  ;;  %v3953_v48 = vsel %vm2092_vm4, %v2083_v40, 0.0 }
 0x21a   : > { %v2086_v4 = vsub.f32 %v3855_v17, %v2070_v30  ;;  %v2071_v9 = vmul.f32 0.25, %v2053_v12  ;;  %2147 = vadd.xlane.f32.xlu1 %v2120_v42  ;;  %v2118_v62 = vmul.f32 %v3953_v48, %v3953_v48 }
 0x21b   : > { %2141 = vadd.xlane.f32.xlu0 %v2117_v8  ;;  %v2055_v53 = vpop.xlane.xlu0 %2054 }
 0x21c   : > { %v2087_v10 = vsub.f32 %v3859_v27, %v2071_v9  ;;  %v2072_v15 = vmul.f32 0.25, %v2055_v53  ;;  %v3961_v34 = vsel %vm2092_vm4, %v2086_v4, 0.0 }
 0x21d   : > { %v2057_v21 = vpop.xlane.xlu1 %2056  ;;  %v2121_v35 = vmul.f32 %v3961_v34, %v3961_v34 }
 0x21e   : > { %v2088_v17 = vsub.f32 %v3863_v58, %v2072_v15  ;;  %v2073_v47 = vmul.f32 0.25, %v2057_v21  ;;  %2143 = vadd.xlane.f32.xlu1 %v2118_v62  ;;  %v3968_v2 = vsel %vm2092_vm4, %v2087_v10, 0.0 }
 0x21f   : > { %2149 = vadd.xlane.f32.xlu0 %v2121_v35  ;;  %v2122_v27 = vmul.f32 %v3968_v2, %v3968_v2 }
 0x220   : > { %v2089_v41 = vsub.f32 %v3867_v39, %v2073_v47  ;;  %v3975_v38 = vsel %vm2092_vm4, %v2088_v17, 0.0 }
 0x221   : > { %v2123_v49 = vmul.f32 %v3975_v38, %v3975_v38 }
 0x222   : > { %2151 = vadd.xlane.f32.xlu1 %v2122_v27  ;;  %v3981_v58 = vsel %vm2092_vm4, %v2089_v41, 0.0 }
 0x223   : > { %2153 = vadd.xlane.f32.xlu0 %v2123_v49  ;;  %v2124_v13 = vmul.f32 %v3981_v58, %v3981_v58 }
 0x226   : > { %2155 = vadd.xlane.f32.xlu1 %v2124_v13 }
 0x293   : > { %v2130_v54 = vpop.xlane.xlu0 %2129 }
 0x294   : > { %v2159_v25 = vmul.f32 0.25, %v2130_v54 }
 0x296   : > { %v2175_v39 = vadd.f32 1e-05, %v2159_v25 }
 0x297   : > { %v2126_v45 = vpop.xlane.xlu0 %2125  ;;  %v2132_v7 = vpop.xlane.xlu1 %2131 }
 0x298   : > { %3056 = vrsqrt.f32 %v2175_v39  ;;  %v2157_v22 = vmul.f32 0.25, %v2126_v45  ;;  %v2160_v56 = vmul.f32 0.25, %v2132_v7 }
 0x29a   : > { %v2173_v14 = vadd.f32 1e-05, %v2157_v22  ;;  %v2176_v6 = vadd.f32 1e-05, %v2160_v56 }
 0x29b   : > { %v2128_v20 = vpop.xlane.xlu1 %2127 }
 0x29c   : > { %3058 = vrsqrt.f32 %v2173_v14  ;;  %v2158_v16 = vmul.f32 0.25, %v2128_v20  ;;  %v2138_v18 = vpop.xlane.xlu0 %2137 }
 0x29d   : > { %3060 = vrsqrt.f32 %v2176_v6  ;;  %v2163_v1 = vmul.f32 0.25, %v2138_v18 }
 0x29e   : > { %v2174_v23 = vadd.f32 1e-05, %v2158_v16 }
 0x29f   : > { %v2179_v32 = vadd.f32 1e-05, %v2163_v1  ;;  %v2140_v0 = vpop.xlane.xlu1 %2139 }
 0x2a0   : > { %3062 = vrsqrt.f32 %v2174_v23  ;;  %v2164_v40 = vmul.f32 0.25, %v2140_v0  ;;  %v2134_v29 = vpop.xlane.xlu0 %2133 }
 0x2a1   : > { %3064 = vrsqrt.f32 %v2179_v32  ;;  %v2161_v30 = vmul.f32 0.25, %v2134_v29 }
 0x2a2   : > { %v3057_v42 = vpop.eup %3056  ;;  %v2180_v12 = vadd.f32 1e-05, %v2164_v40 }
 0x2a3   : > { %v2207_v8 = vmul.f32 %v3057_v42, %v3877_v5  ;;  %v2177_v4 = vadd.f32 1e-05, %v2161_v30  ;;  %v2136_v9 = vpop.xlane.xlu1 %2135 }
 0x2a4   : > { %3066 = vrsqrt.f32 %v2180_v12  ;;  %v2162_v53 = vmul.f32 0.25, %v2136_v9  ;;  %v2146_v10 = vpop.xlane.xlu0 %2145 }
 0x2a5   : > { %v2239_v15 = vmul.f32 0.70710677, %v2207_v8  ;;  %3068 = vrsqrt.f32 %v2177_v4  ;;  %v2167_v62 = vmul.f32 0.25, %v2146_v10  ;;  %v2223_v10 = vmul.f32 0.5, %v2207_v8 }
 0x2a6   : > { %v3059_v21 = vpop.eup %3058  ;;  %v2178_v35 = vadd.f32 1e-05, %v2162_v53 }
 0x2a7   : > { %v3061_v17 = vpop.eup %3060  ;;  %3070 = verf.f32 %v2239_v15  ;;  %v3987_v47 = vmul.f32 %v3059_v21, %v3884_v37  ;;  %v2183_v27 = vadd.f32 1e-05, %v2167_v62  ;;  %v2148_v41 = vpop.xlane.xlu1 %2147 }
 0x2a8   : > { %v3990_v49 = vmul.f32 %v3061_v17, %v3889_v46  ;;  %3072 = vrsqrt.f32 %v2178_v35  ;;  %v2168_v5 = vmul.f32 0.25, %v2148_v41  ;;  %v2142_v13 = vpop.xlane.xlu0 %2141 }
 0x2a9   : > { %v2237_v54 = vmul.f32 0.70710677, %v3987_v47  ;;  %3074 = vrsqrt.f32 %v2183_v27  ;;  %v2165_v25 = vmul.f32 0.25, %v2142_v13  ;;  %v2221_v13 = vmul.f32 0.5, %v3987_v47 }
 0x2aa   : > { %v3063_v39 = vpop.eup %3062  ;;  %v2240_v45 = vmul.f32 0.70710677, %v3990_v49  ;;  %v2184_v7 = vadd.f32 1e-05, %v2168_v5 }
 0x2ab   : > { %v3065_v22 = vpop.eup %3064  ;;  %3076 = verf.f32 %v2237_v54  ;;  %v3995_v37 = vmul.f32 %v3063_v39, %v3897_v57  ;;  %v2181_v56 = vadd.f32 1e-05, %v2165_v25  ;;  %v2144_v46 = vpop.xlane.xlu1 %2143  ;;  %v2224_v39 = vmul.f32 0.5, %v3990_v49 }
 0x2ac   : > { %3078 = verf.f32 %v2240_v45  ;;  %v3998_v14 = vmul.f32 %v3065_v22, %v3905_v28  ;;  %v2166_v6 = vmul.f32 0.25, %v2144_v46  ;;  %v2150_v20 = vpop.xlane.xlu0 %2149 }
 0x2ad   : > { %v2238_v16 = vmul.f32 0.70710677, %v3995_v37  ;;  %3080 = vrsqrt.f32 %v2184_v7  ;;  %v2169_v18 = vmul.f32 0.25, %v2150_v20 }
 0x2ae   : > { %v3067_v1 = vpop.eup %3066  ;;  %v2243_v23 = vmul.f32 0.70710677, %v3998_v14  ;;  %3082 = vrsqrt.f32 %v2181_v56  ;;  %v2182_v57 = vadd.f32 1e-05, %v2166_v6  ;;  %v2222_v6 = vmul.f32 0.5, %v3995_v37 }
 0x2af   : > { %v3069_v32 = vpop.eup %3068  ;;  %3084 = verf.f32 %v2238_v16  ;;  %v4004_v0 = vmul.f32 %v3067_v1, %v3911_v51  ;;  %v2185_v28 = vadd.f32 1e-05, %v2169_v18  ;;  %v2152_v40 = vpop.xlane.xlu1 %2151  ;;  %v2227_v1 = vmul.f32 0.5, %v3998_v14 }
 0x2b0   : > { %3086 = verf.f32 %v2243_v23  ;;  %v4009_v29 = vmul.f32 %v3069_v32, %v3919_v3  ;;  %v2170_v30 = vmul.f32 0.25, %v2152_v40  ;;  %v2154_v42 = vpop.xlane.xlu0 %2153 }
 0x2b1   : > { %v3071_v12 = vpop.eup %3070  ;;  %v2244_v4 = vmul.f32 0.70710677, %v4004_v0  ;;  %3088 = vrsqrt.f32 %v2182_v57  ;;  %v2171_v9 = vmul.f32 0.25, %v2154_v42 }
 0x2b2   : > { %v3073_v53 = vpop.eup %3072  ;;  %v2271_v15 = vadd.f32 1.0, %v3071_v12  ;;  %v2241_v51 = vmul.f32 0.70710677, %v4009_v29  ;;  %3090 = vrsqrt.f32 %v2185_v28  ;;  %v2186_v3 = vadd.f32 1e-05, %v2170_v30 }
 0x2b3   : > { %v3075_v62 = vpop.eup %3074  ;;  %3092 = verf.f32 %v2244_v4  ;;  %v4014_v21 = vmul.f32 %v3073_v53, %v3925_v36  ;;  %v2187_v8 = vadd.f32 1e-05, %v2171_v9 }
 0x2b4   : > { %v2287_v35 = vmul.f32 %v2271_v15, %v2223_v10  ;;  %3094 = verf.f32 %v2241_v51  ;;  %v4017_v17 = vmul.f32 %v3075_v62, %v3933_v19 }
 0x2b5   : > { %v3077_v27 = vpop.eup %3076  ;;  %v2242_v41 = vmul.f32 0.70710677, %v4014_v21  ;;  %3096 = vrsqrt.f32 %v2186_v3 }
 0x2b6   : > { %v3079_v5 = vpop.eup %3078  ;;  %2303 = vst [vmem:[%s4020_s5 + $0x10] sm:$0xff] %v2287_v35  ;;  %v2319_v36 = vadd.f32 %v2287_v35, %v3410_v43  ;;  %v2269_v54 = vadd.f32 1.0, %v3077_v27  ;;  %v2247_v25 = vmul.f32 0.70710677, %v4017_v17  ;;  %v2156_v43 = vpop.xlane.xlu1 %2155  ;;  %v2226_v27 = vmul.f32 0.5, %v4014_v21 }
 0x2b7   : > { %v3081_v19 = vpop.eup %3080  ;;  %v2272_v45 = vadd.f32 1.0, %v3079_v5  ;;  %3098 = verf.f32 %v2242_v41  ;;  %v2172_v32 = vmul.f32 0.25, %v2156_v43 }
 0x2b8   : > { %v3083_v7 = vpop.eup %3082  ;;  %2335 = vst.msk [vmem:[%s4020_s5 + $0x10] sm:$0xff] %vm369_vm2, %v2319_v36  ;;  %v2285_v22 = vmul.f32 %v2269_v54, %v2221_v13  ;;  %3100 = verf.f32 %v2247_v25  ;;  %v4030_v56 = vmul.f32 %v3081_v19, %v3939_v63  ;;  %v2231_v36 = vmul.f32 0.5, %v4017_v17 }
 0x2b9   : > { %v3085_v47 = vpop.eup %3084  ;;  %v2288_v46 = vmul.f32 %v2272_v45, %v2224_v39  ;;  %v4034_v20 = vmul.f32 %v3083_v7, %v3947_v50  ;;  %3102 = vrsqrt.f32 %v2187_v8 }
 0x2ba   : > { %v3087_v49 = vpop.eup %3086  ;;  %2301 = vst [vmem:[%s4020_s5] sm:$0xff] %v2285_v22  ;;  %v2317_v16 = vadd.f32 %v2285_v22, %v3376_v26  ;;  %v2270_v18 = vadd.f32 1.0, %v3085_v47  ;;  %v2248_v63 = vmul.f32 0.70710677, %v4030_v56  ;;  %v2232_v45 = vmul.f32 0.5, %v4030_v56 }
 0x2bb   : > { %v3089_v23 = vpop.eup %3088  ;;  %2304 = vst [vmem:[%s4020_s5 + $0x18] sm:$0xff] %v2288_v46  ;;  %v2320_v57 = vadd.f32 %v2288_v46, %v3413_v44  ;;  %v2275_v37 = vadd.f32 1.0, %v3087_v49  ;;  %v2245_v50 = vmul.f32 0.70710677, %v4034_v20  ;;  %v2228_v44 = vmul.f32 0.5, %v4004_v0 }
 0x2bc   : > { %v3091_v28 = vpop.eup %3090  ;;  %2333 = vst.msk [vmem:[%s4020_s5] sm:$0xff] %vm369_vm2, %v2317_v16  ;;  %v2286_v40 = vmul.f32 %v2270_v18, %v2222_v6  ;;  %3104 = verf.f32 %v2248_v63  ;;  %v4046_v26 = vmul.f32 %v3089_v23, %v3953_v48  ;;  %v2225_v48 = vmul.f32 0.5, %v4009_v29 }
 0x2bd   : > { %v3093_v14 = vpop.eup %3092  ;;  %2336 = vst.msk [vmem:[%s4020_s5 + $0x18] sm:$0xff] %vm369_vm2, %v2320_v57  ;;  %v2291_v30 = vmul.f32 %v2275_v37, %v2227_v1  ;;  %3106 = verf.f32 %v2245_v50  ;;  %v4052_v42 = vmul.f32 %v3091_v28, %v3961_v34  ;;  %v2188_v34 = vadd.f32 1e-05, %v2172_v32  ;;  %v4200_v37 = vld [vmem:[#allocation6_spill] sm:$0xff] }
 0x2be   : > { %v3095_v12 = vpop.eup %3094  ;;  %2302 = vst [vmem:[%s4020_s5 + $0x8] sm:$0xff] %v2286_v40  ;;  %v2318_v4 = vadd.f32 %v2286_v40, %v3387_v31  ;;  %v2276_v9 = vadd.f32 1.0, %v3093_v14  ;;  %v2246_v53 = vmul.f32 0.70710677, %v4046_v26  ;;  %v2230_v56 = vmul.f32 0.5, %v4046_v26  ;;  %v4201_v40 = vld [vmem:[#allocation7_spill] sm:$0xff] }
 0x2bf   : > { %v3097_v10 = vpop.eup %3096  ;;  %2307 = vst [vmem:[%s4020_s5 + $0x30] sm:$0xff] %v2291_v30  ;;  %v2323_v15 = vadd.f32 %v2291_v30, %v3459_v60  ;;  %v2273_v0 = vadd.f32 1.0, %v3095_v12  ;;  %v2249_v51 = vmul.f32 0.70710677, %v4052_v42  ;;  %v2233_v16 = vmul.f32 0.5, %v4052_v42 }
 0x2c0   : > { %2334 = vst.msk [vmem:[%s4020_s5 + $0x8] sm:$0xff] %vm369_vm2, %v2318_v4  ;;  %v2292_v62 = vmul.f32 %v2276_v9, %v2228_v44  ;;  %3108 = verf.f32 %v2246_v53  ;;  %v2218_v31 = vmul.f32 %v3097_v10, %v3968_v2 }
 0x2c1   : > { %v3099_v3 = vpop.eup %3098  ;;  %2339 = vst.msk [vmem:[%s4020_s5 + $0x30] sm:$0xff] %vm369_vm2, %v2323_v15  ;;  %v2289_v29 = vmul.f32 %v2273_v0, %v2225_v48  ;;  %3110 = verf.f32 %v2249_v51 }
 0x2c2   : > { %v3101_v35 = vpop.eup %3100  ;;  %2308 = vst [vmem:[%s4020_s5 + $0x38] sm:$0xff] %v2292_v62  ;;  %v2324_v60 = vadd.f32 %v2292_v62, %v3462_v61  ;;  %v2274_v41 = vadd.f32 1.0, %v3099_v3  ;;  %v2250_v8 = vmul.f32 0.70710677, %v2218_v31  ;;  %3112 = vrsqrt.f32 %v2188_v34 }
 0x2c3   : > { %v3103_v5 = vpop.eup %3102  ;;  %2305 = vst [vmem:[%s4020_s5 + $0x20] sm:$0xff] %v2289_v29  ;;  %v2321_v2 = vadd.f32 %v2289_v29, %v3432_v52  ;;  %v2279_v13 = vadd.f32 1.0, %v3101_v35  ;;  %v2234_v32 = vmul.f32 0.5, %v2218_v31 }
 0x2c4   : > { %2340 = vst.msk [vmem:[%s4020_s5 + $0x38] sm:$0xff] %vm369_vm2, %v2324_v60  ;;  %v2290_v54 = vmul.f32 %v2274_v41, %v2226_v27  ;;  %3114 = verf.f32 %v2250_v8  ;;  %v2219_v61 = vmul.f32 %v3103_v5, %v3975_v38  ;;  %v2229_v38 = vmul.f32 0.5, %v4034_v20  ;;  %v4199_v20 = vld [vmem:[#allocation5_spill] sm:$0xff] }
 0x2c5   : > { %2337 = vst.msk [vmem:[%s4020_s5 + $0x20] sm:$0xff] %vm369_vm2, %v2321_v2  ;;  %v2295_v21 = vmul.f32 %v2279_v13, %v2231_v36 }
 0x2c6   : > { %v3105_v25 = vpop.eup %3104  ;;  %2306 = vst [vmem:[%s4020_s5 + $0x28] sm:$0xff] %v2290_v54  ;;  %v2322_v19 = vadd.f32 %v2290_v54, %v3443_v55  ;;  %v2251_v52 = vmul.f32 0.70710677, %v2219_v61  ;;  %v2235_v12 = vmul.f32 0.5, %v2219_v61 }
 0x2c7   : > { %v3107_v17 = vpop.eup %3106  ;;  %2311 = vst [vmem:[%s4020_s5 + $0x50] sm:$0xff] %v2295_v21  ;;  %v2327_v39 = vadd.f32 %v2295_v21, %v3511_v24  ;;  %v2280_v7 = vadd.f32 1.0, %v3105_v25 }
 0x2c8   : > { %2338 = vst.msk [vmem:[%s4020_s5 + $0x28] sm:$0xff] %vm369_vm2, %v2322_v19  ;;  %v2277_v22 = vadd.f32 1.0, %v3107_v17  ;;  %3116 = verf.f32 %v2251_v52 }
 0x2c9   : > { %2343 = vst.msk [vmem:[%s4020_s5 + $0x50] sm:$0xff] %vm369_vm2, %v2327_v39  ;;  %v2296_v55 = vmul.f32 %v2280_v7, %v2232_v45 }
 0x2ca   : > { %v3109_v43 = vpop.eup %3108  ;;  %v2293_v47 = vmul.f32 %v2277_v22, %v2229_v38 }
 0x2cb   : > { %v3111_v46 = vpop.eup %3110  ;;  %2312 = vst [vmem:[%s4020_s5 + $0x58] sm:$0xff] %v2296_v55  ;;  %v2328_v24 = vadd.f32 %v2296_v55, %v3514_v33  ;;  %v2278_v6 = vadd.f32 1.0, %v3109_v43 }
 0x2cc   : > { %2309 = vst [vmem:[%s4020_s5 + $0x40] sm:$0xff] %v2293_v47  ;;  %v2325_v49 = vadd.f32 %v2293_v47, %v4199_v20  ;;  %v2281_v18 = vadd.f32 1.0, %v3111_v46  ;;  %v3113_v1 = vpop.eup %3112 }
 0x2cd   : > { %2344 = vst.msk [vmem:[%s4020_s5 + $0x58] sm:$0xff] %vm369_vm2, %v2328_v24  ;;  %v2294_v63 = vmul.f32 %v2278_v6, %v2230_v56  ;;  %v2220_v57 = vmul.f32 %v3113_v1, %v3981_v58  ;;  %v4202_v58 = vld [vmem:[#allocation8_spill] sm:$0xff] }
 0x2ce   : > { %v3115_v23 = vpop.eup %3114  ;;  %2341 = vst.msk [vmem:[%s4020_s5 + $0x40] sm:$0xff] %vm369_vm2, %v2325_v49  ;;  %v2297_v33 = vmul.f32 %v2281_v18, %v2233_v16 }
 0x2cf   : > { %2310 = vst [vmem:[%s4020_s5 + $0x48] sm:$0xff] %v2294_v63  ;;  %v2326_v50 = vadd.f32 %v2294_v63, %v4200_v37  ;;  %v2282_v28 = vadd.f32 1.0, %v3115_v23  ;;  %v2252_v14 = vmul.f32 0.70710677, %v2220_v57  ;;  %v2236_v10 = vmul.f32 0.5, %v2220_v57 }
 0x2d0   : > { %2313 = vst [vmem:[%s4020_s5 + $0x60] sm:$0xff] %v2297_v33  ;;  %v2329_v26 = vadd.f32 %v2297_v33, %v4201_v40 }
 0x2d1   : > { %2342 = vst.msk [vmem:[%s4020_s5 + $0x48] sm:$0xff] %vm369_vm2, %v2326_v50  ;;  %v2298_v30 = vmul.f32 %v2282_v28, %v2234_v32  ;;  %3118 = verf.f32 %v2252_v14 }
 0x2d2   : > { %v3117_v44 = vpop.eup %3116  ;;  %2345 = vst.msk [vmem:[%s4020_s5 + $0x60] sm:$0xff] %vm369_vm2, %v2329_v26 }
 0x2d3   : > { %2314 = vst [vmem:[%s4020_s5 + $0x68] sm:$0xff] %v2298_v30  ;;  %v2330_v42 = vadd.f32 %v2298_v30, %v4202_v58  ;;  %v2283_v4 = vadd.f32 1.0, %v3117_v44 }
 0x2d5   : > { %2346 = vst.msk [vmem:[%s4020_s5 + $0x68] sm:$0xff] %vm369_vm2, %v2330_v42  ;;  %v2299_v9 = vmul.f32 %v2283_v4, %v2235_v12 }
 0x2d7   : > { %2315 = vst [vmem:[%s4020_s5 + $0x70] sm:$0xff] %v2299_v9  ;;  %v2331_v48 = vadd.f32 %v2299_v9, %v3753_v59 }
 0x2d9   : > { %2347 = vst.msk [vmem:[%s4020_s5 + $0x70] sm:$0xff] %vm369_vm2, %v2331_v48 }
 0x2db   : > { %v3119_v53 = vpop.eup %3118 }
 0x2dc   : > { %v2284_v15 = vadd.f32 1.0, %v3119_v53 }
 0x2de   : > { %v2300_v0 = vmul.f32 %v2284_v15, %v2236_v10 }
 0x2e0   : > { %2316 = vst [vmem:[%s4020_s5 + $0x78] sm:$0xff] %v2300_v0  ;;  %v2332_v59 = vadd.f32 %v2300_v0, %v3756_v11 }
 0x2e2   : > { %2348 = vst.msk [vmem:[%s4020_s5 + $0x78] sm:$0xff] %vm369_vm2, %v2332_v59 }
 0x2e3   : > { %3133 = shalt.err (!%p3130_p6)
}
 0x2e4   : > { %s3134_s29 = scalar_lea.hbm %s4120_s21, 2048  ;;  %s3138_s6 = scalar_lea.hbm %s4185_s3, 8192 }
 0x2e5   : > { %p3135_p7 = scmp.ne.s32.totalorder %s4120_s21, %s3134_s29  ;;  %p3139_p11 = scmp.lt.u32.totalorder %s4120_s21, %s4185_s3 }
 0x2e6   : > { %p3140_p12 = scmp.lt.u32.totalorder %s3138_s6, %s3134_s29  ;;  %p3142_p0 = scmp.lt.u32.totalorder %s3134_s29, %s4120_s21 }
 0x2e7   : > { %p3136_p9 = pnand %p3135_p7, %p3290_p3 }
 0x2e8   : > { %p3141_p13 = por %p3140_p12, %p3139_p11 }
 0x2e9   : > { %p3137_p10 = pneg %p3136_p9 }
 0x2ea   : > { %p3143_p1 = por %p3142_p0, %p3141_p13 }
 0x2ec   : > { %p3144_p2 = pnand %p3143_p1, %p3137_p10 }
 0x2ee   : > { %3147 = shalt.err (!%p3144_p2)
}
 0x2ef   : > { %s3217_s9 = smov 128   ;;  %s3218_s11 = smov 8  }
 0x2f0   : > { %2979 = dma.vmem_to_hbm [thread:$0]  (%p3290_p3), %s4122_s10, 2048, %s4120_s21, %s4130_s15, %s3217_s9, %s3217_s9, %s3218_s11  }
 0x2f1 PF: > { %p2985_p4 = scmp.ge.s32.totalorder %s3214_s19, 2  ;;  %s2380_s20 = sand.u32 1, %s3186_s12  }
 0x2f2   : > { %s2381_s16 = scalar_lea.sflag [#allocation3], %s2380_s20 }
 0x2f3   : > { %p2982_p5 = pnand %p2985_p4, %p3299_p8 }
 0x2f5   : > { %3181 = dma.done.wait (!%p2982_p5), %s2381_s16, 2048  }
 0x2f6   : > { %3183 = vsyncadd (!%p2982_p5), %s2381_s16, 4294965248  ;;  %s16_s19 = sadd.s32 1, %s3214_s19   ;;  %s4203_s12 = smov %s3190_s13 }
 0x2f7   : > { %p13_p6 = scmp.ge.s32.totalorder %s16_s19, 6   ;;  %s4204_s13 = smov %s3194_s14 }
 0x2f8   : > { %s4205_s14 = smov %s3308_s30  ;;  %s4206_s15 = smov %s3206_s17 }
 0x2f9   : > { %s4207_s16 = smov %s3210_s18  ;;  %s4208_s17 = smov %s4211_s22 }
 0x2fa   : > { %s4209_s18 = smov %s4215_s23  ;;  %15 = sbr.rel (!%p13_p6) target bundleno = 5 (0x5), region = 70 }
 0x301   :  { %2386 = vsyncpa [#allocation3], 1 }
 0x302   :  { %2388 = vsyncpa [#allocation3 + $0x1], 1 }

</bundles_post_ra>
